<compile_context>
chip_gen: v7x
topology: tpu7x:2x2x1
jax: 0.10.0
libtpu: 0.0.40
codegen_flags: <defaults>
</compile_context>

<pallas_src>
import functools

import numpy as np
import jax
import jax.numpy as jnp
from jax.experimental import pallas as pl
from jax.experimental.pallas import tpu as pltpu


# ---------------------------------------------------------------------------
# helpers
# ---------------------------------------------------------------------------
def _as_int(v):
    if isinstance(v, (tuple, list)):
        assert len(set(v)) == 1, "asymmetric stride/padding not supported"
        # TODO(synk): support asymmetric stride/padding of the wrapped conv.
        return int(v[0])
    return int(v)


# ---------------------------------------------------------------------------
# one-time parameter packing (hoisted out of the per-call path)
# ---------------------------------------------------------------------------
def prepare_fixed_conv_transpose2d(weight, bias, *, stride, padding, output_size):
    """weight: (Cin, Cout, kH, kW)  (nn.ConvTranspose2d layout), bias: (Cout,)."""
    s, pad = _as_int(stride), _as_int(padding)
    Cin, Cout, kH, kW = weight.shape
    Ho, Wo = output_size

    Hq, Wq = -(-Ho // s), -(-Wo // s)          # output row/col groups (ceil)
    Ho_full, Wo_full = Hq * s, Wq * s

    # unified tap ranges shared by all phases (invalid combos -> zero weight)
    a_min = -((s - 1 + pad) // s)
    a_max = (kH - 1 - pad) // s
    b_min = -((s - 1 + pad) // s)
    b_max = (kW - 1 - pad) // s
    Th, Tw = a_max - a_min + 1, b_max - b_min + 1
    assert Th >= 1 and Tw >= 1

    # matmul weights: rows = (phase, Cout), cols = (row tap, col tap, Cin); bf16
    blocks = []
    for ch in range(s):
        for cw in range(s):
            for ai in range(Th):
                kh = (a_max - ai) * s + ch + pad
                for bi in range(Tw):
                    kw_ = (b_max - bi) * s + cw + pad
                    if 0 <= kh < kH and 0 <= kw_ < kW:
                        blocks.append(weight[:, :, kh, kw_])        # (Cin, Cout)
                    else:
                        blocks.append(jnp.zeros((Cin, Cout), weight.dtype))
    w_mat = jnp.stack(blocks).reshape(s * s, Th, Tw, Cin, Cout)
    w_mat = jnp.transpose(w_mat, (0, 4, 1, 2, 3))
    w_mat = w_mat.reshape(s * s * Cout, Th * Tw * Cin).astype(jnp.bfloat16)

    Kdim = Th * Tw * Cin
    lane = s * Wo_full                         # flat output cols per row-group
    # interleave regime: small/K-dominant widths -> 0/1 selection matmul + one
    # unmasked full-tile store; wide outputs -> per-phase lane-strided stores.
    use_sel = (s * s * Wq) <= max(Kdim, 256)

    sel = None
    if use_sel:
        # constant 0/1 matrix interleaving per-phase columns into NCHW order:
        #   sel[ph*Wq + w, ch*Wo_full + w*s + cw] = 1,  (ch, cw) = divmod(ph, s)
        sel_np = np.zeros((s * s * Wq, lane), np.float32)
        for ph in range(s * s):
            ch, cw = divmod(ph, s)
            for w in range(Wq):
                sel_np[ph * Wq + w, ch * Wo_full + w * s + cw] = 1.0
        sel = jnp.asarray(sel_np, dtype=jnp.bfloat16)   # 0/1 -> exact in bf16

    b3d = bias.reshape(Cout, 1, 1).astype(jnp.float32)

    meta = dict(stride=s, padding=pad, kH=kH, kW=kW, Cin=Cin, Cout=Cout,
                output_size=(Ho, Wo), Hq=Hq, Wq=Wq, Ho_full=Ho_full,
                Wo_full=Wo_full, a_min=a_min, a_max=a_max, b_min=b_min,
                b_max=b_max, Th=Th, Tw=Tw, Kdim=Kdim, lane=lane,
                use_sel=use_sel)
    return dict(w_mat=w_mat, sel=sel, bias=b3d, meta=meta)


# ---------------------------------------------------------------------------
# kernels
# ---------------------------------------------------------------------------
def _im2col_matmul(x_ref, w_ref, *, Q, Wq, Th, Tw):
    """Load the row tile, build the fused lane-dense im2col RHS and do ONE
    MXU matmul: (s*s*Cout, K) @ (K, Q*Wq), bf16 in / f32 accumulate."""
    Cin = x_ref.shape[1]
    # Q is a multiple of 8 (or there is a single tile) -> sublane-aligned slice
    r0 = pl.multiple_of(pl.program_id(1) * Q, Q)
    x_tile = x_ref[0, :, pl.ds(r0, Q + Th - 1), :]          # (Cin, Q+Th-1, Wp)

    # in-register im2col on the original-resolution input (no upsample zeros)
    windows = [x_tile[:, a:a + Q, b:b + Wq]                 # (Cin, Q, Wq)
               for a in range(Th) for b in range(Tw)]
    patches = jnp.stack(windows, axis=0)                    # (Th*Tw, Cin, Q, Wq)
    patches = patches.reshape(Th * Tw * Cin, Q * Wq)        # lane-dense RHS
    patches = patches.astype(jnp.bfloat16)
    return jnp.dot(w_ref[...], patches,
                   preferred_element_type=jnp.float32)      # (s*s*Cout, Q*Wq) f32


def _convt_kernel_sel(x_ref, w_ref, sel_ref, b_ref, o_ref, *,
                      Q, Wq, Th, Tw, Cout, s):
    # narrow-output regime: one 0/1 interleave matmul for the whole row tile,
    # then a single unmasked full-tile store (no per-q loop, no lane concats).
    y = _im2col_matmul(x_ref, w_ref, Q=Q, Wq=Wq, Th=Th, Tw=Tw)  # (s*s*Cout, Q*Wq)
    # (phase, Cout, Q, Wq) -> (Cout, Q, phase, Wq): put phase next to w so one
    # selection matmul scatters all phases into NCHW column order at once.
    z = y.reshape(s * s, Cout, Q, Wq).transpose(1, 2, 0, 3)
    z = z.reshape(Cout * Q, s * s * Wq).astype(jnp.bfloat16)
    res = jnp.dot(z, sel_ref[...],
                  preferred_element_type=jnp.float32)        # (Cout*Q, lane)
    res = res.reshape(Cout, Q, s * s * Wq)                   # lane == s*s*Wq
    o_ref[0] = (res + b_ref[...]).astype(o_ref.dtype)


def _convt_kernel_strided(x_ref, w_ref, b_ref, o_ref, *,
                          Q, Wq, Th, Tw, Cout, s, Wo_full):
    # wide-output regime: skip the O(Wq^2) permutation matmul; scatter each
    # phase's columns into NCHW order with O(Wq) lane-strided stores.
    y = _im2col_matmul(x_ref, w_ref, Q=Q, Wq=Wq, Th=Th, Tw=Tw)  # (s*s*Cout, Q*Wq)
    b = b_ref[...]                                              # (Cout, 1, 1)
    for ph in range(s * s):                                     # static unroll
        ch, cw = divmod(ph, s)
        blk = y[ph * Cout:(ph + 1) * Cout, :].reshape(Cout, Q, Wq) + b
        o_ref[0, :, :, pl.ds(ch * Wo_full + cw, Wq, stride=s)] = (
            blk.astype(o_ref.dtype))


# ---------------------------------------------------------------------------
# forward wrapper
# ---------------------------------------------------------------------------
def fixed_conv_transpose2d(x, params):
    """Equivalent of FixedConvTranspose2d.forward; x: (N, Cin, H, W) NCHW."""
    meta = params["meta"]
    s, pad = meta["stride"], meta["padding"]
    Cin, Cout = meta["Cin"], meta["Cout"]
    Hq, Wq = meta["Hq"], meta["Wq"]
    Ho_full, Wo_full = meta["Ho_full"], meta["Wo_full"]
    Th, Tw = meta["Th"], meta["Tw"]
    Kdim, lane = meta["Kdim"], meta["lane"]
    Ho, Wo = meta["output_size"]
    use_sel = meta["use_sel"]
    N, Cin_x, H, W = x.shape
    assert Cin_x == Cin

    # output_padding implied by the fixed output_size (PyTorch's check)
    out_pad_h = Ho - ((H - 1) * s - 2 * pad + meta["kH"])
    out_pad_w = Wo - ((W - 1) * s - 2 * pad + meta["kW"])
    assert 0 <= out_pad_h < s and 0 <= out_pad_w < s

    # small halo pad of the ORIGINAL-resolution input (no zero-upsample);
    # bf16 halves the resident VMEM slab and the HBM DMA.
    pad_t, pad_l = meta["a_max"], meta["b_max"]
    pad_b = Hq - meta["a_min"] - H
    pad_r = Wq - meta["b_min"] - W
    if pad_b < 0:
        x = x[:, :, :H + pad_b, :]
        pad_b = 0
    if pad_r < 0:
        x = x[:, :, :, :W + pad_r]
        pad_r = 0
    x_pad = jnp.pad(x, ((0, 0), (0, 0), (pad_t, pad_b), (pad_l, pad_r)))
    x_pad = x_pad.astype(jnp.bfloat16)
    Hp, Wp = Hq + Th - 1, Wq + Tw - 1
    assert x_pad.shape == (N, Cin, Hp, Wp)

    Mrows = s * s * Cout

    # --- pick Q: multiple of 8 dividing Hq, as large as the VMEM budget allows
    # (few grid steps + large MXU N dimension Q*Wq) ----------------------------
    def _tile_bytes(q):
        x_blk = Cin * Hp * Wp * 2 * 2                      # bf16, double-buffered
        w_b = Mrows * Kdim * 2 * 2
        sel_b = (s * s * Wq) * lane * 2 * 2 if use_sel else 0
        out_blk = Cout * q * lane * x.dtype.itemsize * 2
        inter = (Kdim * q * Wq + Mrows * q * Wq + Cout * q * lane) * 4
        return x_blk + w_b + sel_b + out_blk + inter

    budget = 48 * 1024 * 1024                              # v7x has only 64 MiB VMEM
    cands = sorted(q for q in range(1, Hq + 1)
                   if Hq % q == 0 and (q % 8 == 0 or q == Hq))
    Q = cands[0]
    for q in cands:
        if _tile_bytes(q) <= budget:
            Q = q                                           # largest that fits
    n_row_tiles = Hq // Q
    vmem_limit = int(min(64 * 1024 * 1024,
                         max(32 * 1024 * 1024, 2 * _tile_bytes(Q))))

    flops = 2 * N * Hq * Wq * Mrows * Kdim
    if use_sel:
        flops += 2 * N * Cout * Hq * (s * s * Wq) * lane
    bytes_accessed = (x_pad.size * 2 + Mrows * Kdim * 2
                      + ((s * s * Wq) * lane * 2 if use_sel else 0)
                      + Cout * 4 + N * Cout * Hq * lane * x.dtype.itemsize)
    cost = pl.CostEstimate(flops=int(flops), transcendentals=0,
                           bytes_accessed=int(bytes_accessed))

    x_spec = pl.BlockSpec((1, Cin, Hp, Wp), lambda n, t: (n, 0, 0, 0))
    w_spec = pl.BlockSpec((Mrows, Kdim), lambda n, t: (0, 0))
    b_spec = pl.BlockSpec((Cout, 1, 1), lambda n, t: (0, 0, 0))
    o_spec = pl.BlockSpec((1, Cout, Q, lane), lambda n, t: (n, 0, t, 0))
    # TODO(synk): pipeline_mode=pl.Buffered(1) on the constant-index weight/sel/
    # bias specs would drop their second pipeline buffer (pure VMEM saving);
    # left out pending verified support on the targeted jax release.

    compiler_params = pltpu.CompilerParams(
        dimension_semantics=("parallel", "parallel"),
        vmem_limit_bytes=vmem_limit)

    if use_sel:
        kernel = functools.partial(_convt_kernel_sel, Q=Q, Wq=Wq, Th=Th, Tw=Tw,
                                   Cout=Cout, s=s)
        sel_spec = pl.BlockSpec((s * s * Wq, lane), lambda n, t: (0, 0))
        out4 = pl.pallas_call(
            kernel,
            out_shape=jax.ShapeDtypeStruct((N, Cout, Hq, lane), x.dtype),
            grid_spec=pltpu.PrefetchScalarGridSpec(
                num_scalar_prefetch=0,
                grid=(N, n_row_tiles),
                in_specs=[x_spec, w_spec, sel_spec, b_spec],
                out_specs=o_spec),
            compiler_params=compiler_params,
            cost_estimate=cost,
        )(x_pad, params["w_mat"], params["sel"], params["bias"])
    else:
        kernel = functools.partial(_convt_kernel_strided, Q=Q, Wq=Wq, Th=Th,
                                   Tw=Tw, Cout=Cout, s=s, Wo_full=Wo_full)
        out4 = pl.pallas_call(
            kernel,
            out_shape=jax.ShapeDtypeStruct((N, Cout, Hq, lane), x.dtype),
            grid_spec=pltpu.PrefetchScalarGridSpec(
                num_scalar_prefetch=0,
                grid=(N, n_row_tiles),
                in_specs=[x_spec, w_spec, b_spec],
                out_specs=o_spec),
            compiler_params=compiler_params,
            cost_estimate=cost,
        )(x_pad, params["w_mat"], params["bias"])

    # (N, Cout, Hq, s*Wo_full) -> NCHW is a free row-major reshape (no transpose)
    out = out4.reshape(N, Cout, Ho_full, Wo_full)
    if (Ho_full, Wo_full) != (Ho, Wo):
        out = out[:, :, :Ho, :Wo]
    return out
    # TODO(synk): dilation > 1 / groups > 1 of the wrapped ConvTranspose2d are
    # not handled; very large images would additionally need row-haloed input
    # DMA (manual make_async_copy) instead of keeping the whole padded image
    # resident per batch element.


# ---------------------------------------------------------------------------
# self-test
# ---------------------------------------------------------------------------
def _reference(x, weight, bias, stride, padding, output_size):
    """Pure-JAX reference with exact conv_transpose2d semantics."""
    N, Cin, H, W = x.shape
    kH, kW = weight.shape[2], weight.shape[3]
    out_pad_h = output_size[0] - ((H - 1) * stride - 2 * padding + kH)
    out_pad_w = output_size[1] - ((W - 1) * stride - 2 * padding + kW)
    w_ref = jnp.transpose(weight[:, :, ::-1, ::-1], (1, 0, 2, 3))  # (Cout,Cin,kH,kW)
    out = jax.lax.conv_general_dilated(
        x, w_ref,
        window_strides=(1, 1),
        padding=[(kH - 1 - padding, kH - 1 - padding + out_pad_h),
                 (kW - 1 - padding, kW - 1 - padding + out_pad_w)],
        lhs_dilation=(stride, stride),
        dimension_numbers=("NCHW", "OIHW", "NCHW"),
    )
    return out + bias[None, :, None, None]


if __name__ == "__main__":
    key = jax.random.PRNGKey(0)

    # conv = nn.ConvTranspose2d(4, 8, kernel_size=k, stride=2, padding=1)
    # FixedConvTranspose2d(conv, output_size=(32, 32))
    configs = [
        dict(N=2, Cin=4, H=16, W=16, Cout=8, k=4, stride=2, padding=1,
             output_size=(32, 32)),
        dict(N=2, Cin=4, H=16, W=16, Cout=8, k=3, stride=2, padding=1,
             output_size=(32, 32)),   # output_padding=1 implied by output_size
    ]

    ok = True
    for i, cfg in enumerate(configs):
        key, kx, kw_, kb = jax.random.split(key, 4)
        x = jax.random.normal(kx, (cfg["N"], cfg["Cin"], cfg["H"], cfg["W"]),
                              dtype=jnp.float32)
        weight = 0.1 * jax.random.normal(
            kw_, (cfg["Cin"], cfg["Cout"], cfg["k"], cfg["k"]), dtype=jnp.float32)
        bias = 0.1 * jax.random.normal(kb, (cfg["Cout"],), dtype=jnp.float32)

        params = prepare_fixed_conv_transpose2d(
            weight, bias, stride=cfg["stride"], padding=cfg["padding"],
            output_size=cfg["output_size"])

        fwd = jax.jit(lambda xx, p=params: fixed_conv_transpose2d(xx, p))
        out = jax.block_until_ready(fwd(x))
        assert out.shape == (cfg["N"], cfg["Cout"]) + tuple(cfg["output_size"])

        ref = _reference(x, weight, bias, cfg["stride"], cfg["padding"],
                         cfg["output_size"])
        err = float(jnp.max(jnp.abs(out - ref)))
        # bf16 MXU inputs (f32 accumulation) -> looser tolerance than pure f32
        if not bool(jnp.allclose(out, ref, atol=2e-2, rtol=2e-2)):
            ok = False
            print(f"config {i}: FAILED, max abs err = {err}")

    if ok:
        print("KERNEL_OK")
</pallas_src>

<mosaic_0001>
module attributes {stable_mosaic.version = 11 : i64} {
  func.func @_convt_kernel_sel(%arg0: i32, %arg1: i32, %arg2: memref<1x4x18x18xbf16, #tpu.memory_space<vmem>>, %arg3: memref<32x36xbf16, #tpu.memory_space<vmem>>, %arg4: memref<64x64xbf16, #tpu.memory_space<vmem>>, %arg5: memref<8x1x1xf32, #tpu.memory_space<vmem>>, %arg6: memref<1x8x16x64xf32, #tpu.memory_space<vmem>>) attributes {dimension_semantics = [#tpu.dimension_semantics<parallel>, #tpu.dimension_semantics<parallel>], iteration_bounds = array<i64: 2, 1>, scalar_prefetch = 0 : i64, scratch_operands = 0 : i64, tpu.core_type = #tpu.core_type<tc>, window_params = [{transform_indices = @transform_0, window_bounds = array<i64: 1, 4, 18, 18>}, {pipeline_mode = #tpu.pipeline_mode<synchronous>, transform_indices = @transform_1, window_bounds = array<i64: 32, 36>}, {pipeline_mode = #tpu.pipeline_mode<synchronous>, transform_indices = @transform_2, window_bounds = array<i64: 64, 64>}, {pipeline_mode = #tpu.pipeline_mode<synchronous>, transform_indices = @transform_3, window_bounds = array<i64: 8, 1, 1>}, {transform_indices = @transform_4, window_bounds = array<i64: 1, 8, 16, 64>}]} {
    %c16_i32 = arith.constant 16 : i32
    %0 = arith.muli %arg1, %c16_i32 : i32
    %1 = tpu.assume_multiple %0, 16 : i32
    %c0 = arith.constant 0 : index
    %c0_0 = arith.constant 0 : index
    %2 = arith.index_cast %1 : i32 to index
    %c0_1 = arith.constant 0 : index
    %3 = vector.load %arg2[%c0, %c0_0, %2, %c0_1] : memref<1x4x18x18xbf16, #tpu.memory_space<vmem>>, vector<1x4x18x18xbf16>
    %4 = vector.shape_cast %3 : vector<1x4x18x18xbf16> to vector<4x18x18xbf16>
    %5 = vector.extract_strided_slice %4 {offsets = [0, 0, 0], sizes = [4, 16, 16], strides = [1, 1, 1]} : vector<4x18x18xbf16> to vector<4x16x16xbf16>
    %6 = vector.extract_strided_slice %4 {offsets = [0, 0, 1], sizes = [4, 16, 16], strides = [1, 1, 1]} : vector<4x18x18xbf16> to vector<4x16x16xbf16>
    %7 = vector.extract_strided_slice %4 {offsets = [0, 0, 2], sizes = [4, 16, 16], strides = [1, 1, 1]} : vector<4x18x18xbf16> to vector<4x16x16xbf16>
    %8 = vector.extract_strided_slice %4 {offsets = [0, 1, 0], sizes = [4, 16, 16], strides = [1, 1, 1]} : vector<4x18x18xbf16> to vector<4x16x16xbf16>
    %9 = vector.extract_strided_slice %4 {offsets = [0, 1, 1], sizes = [4, 16, 16], strides = [1, 1, 1]} : vector<4x18x18xbf16> to vector<4x16x16xbf16>
    %10 = vector.extract_strided_slice %4 {offsets = [0, 1, 2], sizes = [4, 16, 16], strides = [1, 1, 1]} : vector<4x18x18xbf16> to vector<4x16x16xbf16>
    %11 = vector.extract_strided_slice %4 {offsets = [0, 2, 0], sizes = [4, 16, 16], strides = [1, 1, 1]} : vector<4x18x18xbf16> to vector<4x16x16xbf16>
    %12 = vector.extract_strided_slice %4 {offsets = [0, 2, 1], sizes = [4, 16, 16], strides = [1, 1, 1]} : vector<4x18x18xbf16> to vector<4x16x16xbf16>
    %13 = vector.extract_strided_slice %4 {offsets = [0, 2, 2], sizes = [4, 16, 16], strides = [1, 1, 1]} : vector<4x18x18xbf16> to vector<4x16x16xbf16>
    %14 = vector.shape_cast %5 : vector<4x16x16xbf16> to vector<1x4x16x16xbf16>
    %15 = vector.shape_cast %6 : vector<4x16x16xbf16> to vector<1x4x16x16xbf16>
    %16 = vector.shape_cast %7 : vector<4x16x16xbf16> to vector<1x4x16x16xbf16>
    %17 = vector.shape_cast %8 : vector<4x16x16xbf16> to vector<1x4x16x16xbf16>
    %18 = vector.shape_cast %9 : vector<4x16x16xbf16> to vector<1x4x16x16xbf16>
    %19 = vector.shape_cast %10 : vector<4x16x16xbf16> to vector<1x4x16x16xbf16>
    %20 = vector.shape_cast %11 : vector<4x16x16xbf16> to vector<1x4x16x16xbf16>
    %21 = vector.shape_cast %12 : vector<4x16x16xbf16> to vector<1x4x16x16xbf16>
    %22 = vector.shape_cast %13 : vector<4x16x16xbf16> to vector<1x4x16x16xbf16>
    %23 = tpu.concatenate %14, %15, %16, %17, %18, %19, %20, %21, %22 in 0 : vector<1x4x16x16xbf16>, vector<1x4x16x16xbf16>, vector<1x4x16x16xbf16>, vector<1x4x16x16xbf16>, vector<1x4x16x16xbf16>, vector<1x4x16x16xbf16>, vector<1x4x16x16xbf16>, vector<1x4x16x16xbf16>, vector<1x4x16x16xbf16> -> vector<9x4x16x16xbf16>
    %24 = vector.shape_cast %23 : vector<9x4x16x16xbf16> to vector<36x256xbf16>
    %c0_2 = arith.constant 0 : index
    %c0_3 = arith.constant 0 : index
    %25 = vector.load %arg3[%c0_2, %c0_3] : memref<32x36xbf16, #tpu.memory_space<vmem>>, vector<32x36xbf16>
    %cst = arith.constant dense<0.000000e+00> : vector<32x256xf32>
    %26 = tpu.matmul %25, %24, %cst {dimension_numbers = #tpu.dot_dimension_numbers<[1], [0], [0], [1], [0, 0, 1, 1], [], []>} : vector<32x36xbf16>, vector<36x256xbf16>, vector<32x256xf32> -> vector<32x256xf32>
    %27 = vector.shape_cast %26 : vector<32x256xf32> to vector<4x8x16x16xf32>
    %28 = tpu.transpose %27, [1, 2, 0, 3] : vector<4x8x16x16xf32> -> vector<8x16x4x16xf32>
    %29 = vector.shape_cast %28 : vector<8x16x4x16xf32> to vector<128x64xf32>
    %30 = arith.truncf %29 : vector<128x64xf32> to vector<128x64xbf16>
    %c0_4 = arith.constant 0 : index
    %c0_5 = arith.constant 0 : index
    %31 = vector.load %arg4[%c0_4, %c0_5] : memref<64x64xbf16, #tpu.memory_space<vmem>>, vector<64x64xbf16>
    %cst_6 = arith.constant dense<0.000000e+00> : vector<128x64xf32>
    %32 = tpu.matmul %30, %31, %cst_6 {dimension_numbers = #tpu.dot_dimension_numbers<[1], [0], [0], [1], [0, 0, 1, 1], [], []>} : vector<128x64xbf16>, vector<64x64xbf16>, vector<128x64xf32> -> vector<128x64xf32>
    %33 = vector.shape_cast %32 : vector<128x64xf32> to vector<8x16x64xf32>
    %c0_7 = arith.constant 0 : index
    %c0_8 = arith.constant 0 : index
    %c0_9 = arith.constant 0 : index
    %34 = vector.load %arg5[%c0_7, %c0_8, %c0_9] : memref<8x1x1xf32, #tpu.memory_space<vmem>>, vector<8x1x1xf32>
    %35 = vector.broadcast %34 : vector<8x1x1xf32> to vector<8x16x64xf32>
    %36 = arith.addf %33, %35 : vector<8x16x64xf32>
    %c0_10 = arith.constant 0 : index
    %c0_11 = arith.constant 0 : index
    %c0_12 = arith.constant 0 : index
    %c0_13 = arith.constant 0 : index
    %37 = vector.load %arg6[%c0_10, %c0_11, %c0_12, %c0_13] : memref<1x8x16x64xf32, #tpu.memory_space<vmem>>, vector<1x8x16x64xf32>
    %38 = vector.shape_cast %37 : vector<1x8x16x64xf32> to vector<8x16x64xf32>
    %39 = vector.shape_cast %36 : vector<8x16x64xf32> to vector<1x8x16x64xf32>
    tpu.vector_store %arg6[%c0_10, %c0_11, %c0_12, %c0_13], %39 {strides = array<i32>} : memref<1x8x16x64xf32, #tpu.memory_space<vmem>>, vector<1x8x16x64xf32>,
    return
  }
  func.func @transform_0(%arg0: i32, %arg1: i32) -> (i32, i32, i32, i32) {
    %c0_i32 = arith.constant 0 : i32
    %c0_i32_0 = arith.constant 0 : i32
    %c0_i32_1 = arith.constant 0 : i32
    %c0_i32_2 = arith.constant 0 : i32
    return %arg0, %c0_i32, %c0_i32_0, %c0_i32_1 : i32, i32, i32, i32
  }
  func.func @transform_1(%arg0: i32, %arg1: i32) -> (i32, i32) {
    %c0_i32 = arith.constant 0 : i32
    %c0_i32_0 = arith.constant 0 : i32
    %c0_i32_1 = arith.constant 0 : i32
    return %c0_i32, %c0_i32_0 : i32, i32
  }
  func.func @transform_2(%arg0: i32, %arg1: i32) -> (i32, i32) {
    %c0_i32 = arith.constant 0 : i32
    %c0_i32_0 = arith.constant 0 : i32
    %c0_i32_1 = arith.constant 0 : i32
    return %c0_i32, %c0_i32_0 : i32, i32
  }
  func.func @transform_3(%arg0: i32, %arg1: i32) -> (i32, i32, i32) {
    %c0_i32 = arith.constant 0 : i32
    %c0_i32_0 = arith.constant 0 : i32
    %c0_i32_1 = arith.constant 0 : i32
    %c0_i32_2 = arith.constant 0 : i32
    return %c0_i32, %c0_i32_0, %c0_i32_1 : i32, i32, i32
  }
  func.func @transform_4(%arg0: i32, %arg1: i32) -> (i32, i32, i32, i32) {
    %c0_i32 = arith.constant 0 : i32
    %c0_i32_0 = arith.constant 0 : i32
    %c0_i32_1 = arith.constant 0 : i32
    return %arg0, %c0_i32, %arg1, %c0_i32_0 : i32, i32, i32, i32
  }
}

</mosaic_0001>

<bundles_post_ra>
// kernel: _lambda_.1
= control target key start
LH: loop header
LB: loop body
LE: loop exit
PB: predicated region body
PF: predicated region fallthrough
CT: control target
= control target key end

     0   :  { %s6407_s15 = smov 0   ;;  %s6409_s16 = smov 0   ;;  %s8893_s0 = inlined_call_operand.vmem [shape: bf16[2,4,18,18], index: 0, kind: input, shape index: {}]   ;;  %s8894_s1 = inlined_call_operand.vmem [shape: bf16[32,36], index: 1, kind: input, shape index: {}]   ;;  %s8895_s2 = inlined_call_operand.vmem [shape: bf16[64,64], index: 2, kind: input, shape index: {}]   ;;  %s8896_s3 = inlined_call_operand.vmem [shape: f32[8,1,1], index: 3, kind: input, shape index: {}]   ;;  %s8897_s4 = inlined_call_operand.vmem [shape: f32[2,8,16,64], index: 4, kind: output, shape index: {}]  }
   0x1   :  { %s6411_s17 = smov 0  }
   0x2 LB: > { %s26_s18 = sadd.s32 1, %s6364_s16  ;;  %p5933_p0 = scmp.ge.s32.totalorder %s6368_s17, 1  ;;  %s6368_s17 = sphi %s6411_s17, %s14_s17   ;;  %s6364_s16 = sphi %s6409_s16, %s9020_s16   ;;  %s6360_s15 = sphi %s6407_s15, %s9019_s15  }
   0x3   : > { %p28_p1 = scmp.ge.s32.totalorder %s26_s18, 2  ;;  %p176_p2 = scmp.lt.s32.totalorder %s6368_s17, 3 }
   0x5   : > { %s9022_s18 = smov (%p28_p1, %s26_s18), 0  ;;  %p177_p3 = pnand %p5933_p0, %p176_p2 }
   0x7   : > { %180 = sbr.rel (%p177_p3) target bundleno = 1327 (0x52f), region = 36 }
   0xe   : > { %p206_p4 = scmp.lt.s32.totalorder %s6360_s15, 1  ;;  %s6370_s23 = smov 127   ;;  %vm279_vm0 = vsmask.f32 3328  ;;  %vm280_vm1 = vsmask.f32 7440 }
   0xf   : > { %s6371_s24 = smov 126   ;;  %vm6537_vm2 = vmor %vm279_vm0, %vm280_vm1  ;;  %vm414_vm3 = vcmask 1042432   ;;  %vm415_vm4 = vcmask 1046532   ;;  %s6374_s25 = smov 32   ;;  %vm1713_vm6 = vcmask 130048   ;;  %vm1723_vm7 = vcmask 261120  }
  0x10   : > { %s9024_s15 = smov (!%p206_p4, %s6360_s15), 1  ;;  %vm6654_vm5 = vmor %vm414_vm3, %vm415_vm4  ;;  %s6375_s26 = smov 64   ;;  %vm1730_vm8 = vcmask 392192   ;;  %vm1737_vm9 = vcmask 523264   ;;  %vm1744_vm10 = vcmask 654336   ;;  %vm1751_vm11 = vcmask 785408  }
  0x11   : > { %s6181_s19 = smul.u32 48, %s9024_s15  ;;  %s6376_s27 = smov 16   ;;  %vm1758_vm12 = vcmask 916480   ;;  %vm1835_vm13 = vcmask 1041408   ;;  %vm1828_vm14 = vcmask 293888  }
  0x12   : > { %s6377_s28 = smov 48   ;;  %s6378_s29 = smov 96  }
  0x13   : > { %s6431_s22 = scalar_lea.vmem %s8893_s0, %s6181_s19  ;;  %s6379_s30 = smov 80  }
  0x14   : > { %v6434_v0 = vld [vmem:[%s6431_s22 + $0x1c] sm:$0xf]  ;;  %v6437_v1 = vld [vmem:[%s6431_s22 + $0x4] sm:$0xf]  ;;  %v6440_v2 = vld [vmem:[%s6431_s22 + $0x28] sm:$0xf] }
  0x15   : > { %257 = vrot.lane.b32.xlu1 %v6434_v0, %s6370_s23  ;;  %249 = vrot.lane.b32.xlu0 %v6437_v1, %s6370_s23  ;;  %v6447_v3 = vld [vmem:[%s6431_s22 + $0x10] sm:$0xf]  ;;  %v613_v4 = vpack.i.b16 %v6440_v2, %v6434_v0  ;;  %v292_v6 = vshll.u32 %v6437_v1, 16  ;;  %v296_v7 = vshrl.u32 %v6437_v1, 16  ;;  %v6462_v10 = vld [vmem:[%s6431_s22 + $0x14] sm:$0x1] }
  0x16   : > { %v609_v5 = vpack.i.b16 %v6447_v3, %v6437_v1  ;;  %v316_v8 = vshll.u32 %v6447_v3, 16  ;;  %v320_v9 = vshrl.u32 %v6447_v3, 16  ;;  %v364_v11 = vshll.u32 %v6440_v2, 16  ;;  %v6471_v13 = vld [vmem:[%s6431_s22 + $0x8] sm:$0x1]  ;;  %s6380_s5 = smov 112  }
  0x17   : > { %v368_v12 = vshrl.u32 %v6440_v2, 16  ;;  %v6473_v14 = vrot.slane %v292_v6, 5  ;;  %v298_v15 = vrot.slane %v296_v7, 4  ;;  %v340_v16 = vshll.u32 %v6434_v0, 16  ;;  %v6484_v20 = vld [vmem:[%s6431_s22 + $0x2c] sm:$0x1] }
  0x18   : > { %v344_v17 = vshrl.u32 %v6434_v0, 16  ;;  %v6479_v18 = vrot.slane %v316_v8, 5  ;;  %v322_v19 = vrot.slane %v320_v9, 4  ;;  %v6487_v21 = vld [vmem:[%s6431_s22 + $0x20] sm:$0x1]  ;;  %v326_v22 = vshll.u32 %v6462_v10, 16 }
  0x19   : > { %261 = vrot.lane.b32.xlu1 %v6440_v2, %s6370_s23  ;;  %253 = vrot.lane.b32.xlu0 %v6447_v3, %s6370_s23  ;;  %v302_v23 = vshll.u32 %v6471_v13, 16  ;;  %v6491_v24 = vrot.slane %v364_v11, 5  ;;  %v370_v25 = vrot.slane %v368_v12, 4  ;;  %v299_v26 = vor.u32 %v298_v15, %v6473_v14  ;;  %v6506_v30 = vld [vmem:[%s6431_s22 + $0xc] sm:$0xf]  ;;  %s6112_s12 = sshll.u32 %s9024_s15, 7 }
  0x1a   : > { %v374_v27 = vshll.u32 %v6484_v20, 16  ;;  %v6501_v28 = vrot.slane %v340_v16, 5  ;;  %v346_v29 = vrot.slane %v344_v17, 4  ;;  %v6509_v31 = vld [vmem:[%s6431_s22] sm:$0xf]  ;;  %v323_v32 = vor.u32 %v322_v19, %v6479_v18  ;;  %s8850_s19 = scalar_lea.vmem %s8897_s4, %s6112_s12 }
  0x1b   : > { %v350_v33 = vshll.u32 %v6487_v21, 16  ;;  %v307_v34 = vshrl.u32 %v6506_v30, 16  ;;  %v328_v35 = vrot.slane %v326_v22, 5  ;;  %v371_v36 = vor.u32 %v370_v25, %v6491_v24  ;;  %v6522_v39 = vld [vmem:[%s6431_s22 + $0x24] sm:$0xf] }
  0x1c   : > { %v310_v37 = vshll.u32 %v6506_v30, 16  ;;  %v283_v38 = vshrl.u32 %v6509_v31, 16  ;;  %v300_v40 = vrot.slane %v299_v26, 4  ;;  %v304_v41 = vrot.slane %v302_v23, 5  ;;  %v6526_v44 = vld [vmem:[%s6431_s22 + $0x18] sm:$0xf] }
  0x1d   : > { %269 = vrot.lane.b32.xlu1 %v6447_v3, %s6371_s24  ;;  %265 = vrot.lane.b32.xlu0 %v6437_v1, %s6371_s24  ;;  %v376_v42 = vrot.slane %v374_v27, 5  ;;  %v347_v43 = vor.u32 %v346_v29, %v6501_v28  ;;  %v324_v45 = vrot.slane %v323_v32, 4  ;;  %v352_v46 = vrot.slane %v350_v33, 5 }
  0x1e   : > { %v309_v47 = vrot.slane %v307_v34, 4  ;;  %v312_v48 = vrot.slane %v310_v37, 5  ;;  %v285_v49 = vrot.slane %v283_v38, 4  ;;  %v286_v50 = vshll.u32 %v6509_v31, 16 }
  0x1f   : > { %v355_v51 = vshrl.u32 %v6522_v39, 16  ;;  %v358_v52 = vshll.u32 %v6522_v39, 16  ;;  %v372_v54 = vrot.slane %v371_v36, 4  ;;  %v331_v56 = vshrl.u32 %v6526_v44, 16 }
  0x20   : > { %v313_v55 = vor.u32 %v312_v48, %v309_v47  ;;  %v334_v57 = vshll.u32 %v6526_v44, 16  ;;  %v348_v58 = vrot.slane %v347_v43, 4  ;;  %v288_v59 = vrot.slane %v286_v50, 5 }
  0x21   : > { %277 = vrot.lane.b32.xlu1 %v6440_v2, %s6371_s24  ;;  %273 = vrot.lane.b32.xlu0 %v6434_v0, %s6371_s24  ;;  %v357_v60 = vrot.slane %v355_v51, 4  ;;  %v360_v61 = vrot.slane %v358_v52, 5  ;;  %v333_v63 = vrot.slane %v331_v56, 4  ;;  %v6549_v8 = vsel %vm6537_vm2, %v324_v45, %v328_v35 }
  0x22   : > { %v314_v62 = vrot.slane %v313_v55, 4  ;;  %v336_v6 = vrot.slane %v334_v57, 5  ;;  %v6553_v11 = vsel %vm6537_vm2, %v300_v40, %v304_v41  ;;  %v289_v15 = vor.u32 %v288_v59, %v285_v49 }
  0x23   : > { %v361_v16 = vor.u32 %v360_v61, %v357_v60  ;;  %v654_v19 = vshrl.u32 %v6549_v8, 16  ;;  %v653_v22 = vshrl.u32 %v6553_v11, 16  ;;  %v6559_v23 = vsel %vm6537_vm2, %v372_v54, %v376_v42 }
  0x24   : > { %v337_v25 = vor.u32 %v336_v6, %v333_v63  ;;  %v662_v26 = vshrl.u32 %v6559_v23, 16  ;;  %v6568_v27 = vsel %vm6537_vm2, %v348_v58, %v352_v46  ;;  %v290_v29 = vrot.slane %v289_v15, 4 }
  0x25   : > { %251 = vrot.lane.b32.xlu1 %v6506_v30, %s6370_s23  ;;  %247 = vrot.lane.b32.xlu0 %v6509_v31, %s6370_s23  ;;  %v362_v32 = vrot.slane %v361_v16, 4  ;;  %v661_v33 = vshrl.u32 %v6568_v27, 16  ;;  %v6574_v35 = vsel %vm6537_vm2, %v314_v62, %v6479_v18  ;;  %v6580_v37 = vpack.i.b16 %v368_v12, %v344_v17 }
  0x26   : > { %v338_v36 = vrot.slane %v337_v25, 4  ;;  %v522_v40 = vshrl.u32 %v6574_v35, 16  ;;  %v6586_v41 = vsel %vm6537_vm2, %v290_v29, %v6473_v14  ;;  %v6597_v18 = vpack.i.b16 %v320_v9, %v296_v7 }
  0x27   : > { %v6591_v42 = vsel %vm6537_vm2, %v362_v32, %v6491_v24  ;;  %v521_v12 = vshrl.u32 %v6586_v41, 16  ;;  %v651_v7 = vpack.i.b16 %v6549_v8, %v6553_v11  ;;  %v6613_v9 = vpack.i.b16 %v654_v19, %v653_v22 }
  0x28   : > { %v530_v17 = vshrl.u32 %v6591_v42, 16  ;;  %v6604_v14 = vsel %vm6537_vm2, %v338_v36, %v6501_v28  ;;  %v659_v43 = vpack.i.b16 %v6559_v23, %v6568_v27  ;;  %v6617_v45 = vpack.i.b16 %v662_v26, %v661_v33 }
  0x29   : > { %259 = vrot.lane.b32.xlu1 %v6522_v39, %s6370_s23  ;;  %255 = vrot.lane.b32.xlu0 %v6526_v44, %s6370_s23  ;;  %v529_v24 = vshrl.u32 %v6604_v14, 16  ;;  %v477_v28 = vpack.i.b16 %v6506_v30, %v6509_v31  ;;  %v6625_v46 = vpack.i.b16 %v307_v34, %v283_v38  ;;  %v481_v47 = vpack.i.b16 %v6522_v39, %v6526_v44 }
  0x2a   : > { %v6629_v48 = vpack.i.b16 %v355_v51, %v331_v56  ;;  %v519_v49 = vpack.i.b16 %v6574_v35, %v6586_v41  ;;  %v6633_v50 = vpack.i.b16 %v522_v40, %v521_v12  ;;  %v527_v52 = vpack.i.b16 %v6591_v42, %v6604_v14 }
  0x2b   : > { %v6637_v53 = vpack.i.b16 %v530_v17, %v529_v24  ;;  %v426_v34 = vrot.slane %v6447_v3, 5  ;;  %v419_v38 = vrot.slane %v6437_v1, 5  ;;  %v429_v54 = vrot.slane %v6462_v10, 5 }
  0x2c   : > { %v422_v57 = vrot.slane %v6471_v13, 5  ;;  %v440_v58 = vrot.slane %v6440_v2, 5  ;;  %v433_v59 = vrot.slane %v6434_v0, 5  ;;  %v443_v60 = vrot.slane %v6484_v20, 5 }
  0x2d   : > { %267 = vrot.lane.b32.xlu1 %v6506_v30, %s6371_s24  ;;  %263 = vrot.lane.b32.xlu0 %v6509_v31, %s6371_s24  ;;  %v428_v51 = vrot.slane %v426_v34, 4  ;;  %v421_v56 = vrot.slane %v419_v38, 4  ;;  %v436_v63 = vrot.slane %v6487_v21, 5  ;;  %v5938_v21 = vrot.slane %v6506_v30, 9 }
  0x2e   : > { %v442_v13 = vrot.slane %v440_v58, 4  ;;  %v435_v62 = vrot.slane %v433_v59, 4  ;;  %v5937_v15 = vrot.slane %v6509_v31, 9  ;;  %v5940_v32 = vrot.slane %v6522_v39, 9 }
  0x2f   : > { %v6667_v10 = vsel %vm6654_vm5, %v428_v51, %v429_v54  ;;  %v6672_v61 = vsel %vm6654_vm5, %v421_v56, %v422_v57  ;;  %v6699_v16 = vsel %vm6654_vm5, %v5938_v21, %v426_v34  ;;  %v5939_v33 = vrot.slane %v6526_v44, 9 }
  0x30   : > { %v6681_v6 = vsel %vm6654_vm5, %v442_v13, %v443_v60  ;;  %v6685_v20 = vsel %vm6654_vm5, %v435_v62, %v436_v63  ;;  %v6703_v19 = vsel %vm6654_vm5, %v5937_v15, %v419_v38  ;;  %v570_v22 = vshrl.u32 %v6699_v16, 16 }
  0x31   : > { %275 = vrot.lane.b32.xlu1 %v6522_v39, %s6371_s24  ;;  %271 = vrot.lane.b32.xlu0 %v6526_v44, %s6371_s24  ;;  %v569_v25 = vshrl.u32 %v6703_v19, 16  ;;  %v6731_v36 = vsel %vm6654_vm5, %v5940_v32, %v440_v58  ;;  %v6735_v40 = vsel %vm6654_vm5, %v5939_v33, %v433_v59  ;;  %v6372_v12 = vmov 1983009808  }
  0x32   : > { %v743_v17 = vunpack.c.l.s4 %v6372_v12  ;;  %v745_v24 = vlaneseq  ;;  %v6373_v12 = vmov 1934713408  }
  0x33   : > { %v6713_v29 = vpack.i.b16 %v570_v22, %v569_v25 }
  0x34   : > { %v744_v51 = vunpack.c.0.s8 %v743_v17  ;;  %v746_v54 = vshrl.u32 %v745_v24, 7  ;;  %v760_v17 = vunpack.c.l.s4 %v6373_v12 }
  0x35   : > { %384 = vrot.lane.b32.xlu1 %v6549_v8, %s6370_s23  ;;  %380 = vrot.lane.b32.xlu0 %v6553_v11, %s6370_s23 }
  0x36   : > { %v6757_v57 = vsub.s32 %v744_v51, %v746_v54 }
  0x39   : > { %392 = vrot.lane.b32.xlu1 %v6559_v23, %s6370_s23  ;;  %388 = vrot.lane.b32.xlu0 %v6568_v27, %s6370_s23 }
  0x3d   : > { %400 = vrot.lane.b32.xlu1 %v6549_v8, %s6371_s24  ;;  %396 = vrot.lane.b32.xlu0 %v6553_v11, %s6371_s24 }
  0x41   : > { %408 = vrot.lane.b32.xlu1 %v6559_v23, %s6371_s24  ;;  %404 = vrot.lane.b32.xlu0 %v6568_v27, %s6371_s24 }
  0x45   : > { %451 = vrot.lane.b32.xlu1 %v6667_v10, %s6370_s23  ;;  %447 = vrot.lane.b32.xlu0 %v6672_v61, %s6370_s23 }
  0x49   : > { %459 = vrot.lane.b32.xlu1 %v6681_v6, %s6370_s23  ;;  %455 = vrot.lane.b32.xlu0 %v6685_v20, %s6370_s23 }
  0x4d   : > { %382 = vrot.lane.b32.xlu1 %v6574_v35, %s6370_s23  ;;  %378 = vrot.lane.b32.xlu0 %v6586_v41, %s6370_s23 }
  0x51   : > { %390 = vrot.lane.b32.xlu1 %v6591_v42, %s6370_s23  ;;  %386 = vrot.lane.b32.xlu0 %v6604_v14, %s6370_s23 }
  0x55   : > { %398 = vrot.lane.b32.xlu1 %v6574_v35, %s6371_s24  ;;  %394 = vrot.lane.b32.xlu0 %v6586_v41, %s6371_s24 }
  0x59   : > { %406 = vrot.lane.b32.xlu1 %v6591_v42, %s6371_s24  ;;  %402 = vrot.lane.b32.xlu0 %v6604_v14, %s6371_s24 }
  0x5d   : > { %449 = vrot.lane.b32.xlu1 %v6699_v16, %s6370_s23  ;;  %445 = vrot.lane.b32.xlu0 %v6703_v19, %s6370_s23 }
  0x61   : > { %457 = vrot.lane.b32.xlu1 %v6731_v36, %s6370_s23  ;;  %453 = vrot.lane.b32.xlu0 %v6735_v40, %s6370_s23 }
  0x65   : > { %463 = vrot.lane.b32.xlu1 %v6672_v61, %s6371_s24  ;;  %461 = vrot.lane.b32.xlu0 %v6703_v19, %s6371_s24 }
  0x69   : > { %467 = vrot.lane.b32.xlu1 %v6667_v10, %s6371_s24  ;;  %465 = vrot.lane.b32.xlu0 %v6699_v16, %s6371_s24 }
  0x6d   : > { %471 = vrot.lane.b32.xlu1 %v6685_v20, %s6371_s24  ;;  %469 = vrot.lane.b32.xlu0 %v6735_v40, %s6371_s24 }
  0x71   : > { %475 = vrot.lane.b32.xlu1 %v6681_v6, %s6371_s24  ;;  %473 = vrot.lane.b32.xlu0 %v6731_v36, %s6371_s24 }
  0x87   : > { %v258_v34 = vpop.permute.xlu1 %257  ;;  %v250_v38 = vpop.permute.xlu0 %249 }
  0x88   : > { %v629_v55 = vshrl.u32 %v258_v34, 16  ;;  %v621_v56 = vshrl.u32 %v250_v38, 16 }
  0x8b   : > { %v262_v58 = vpop.permute.xlu1 %261  ;;  %v254_v59 = vpop.permute.xlu0 %253 }
  0x8c   : > { %v627_v60 = vpack.i.b16 %v262_v58, %v258_v34  ;;  %v630_v13 = vshrl.u32 %v262_v58, 16  ;;  %v619_v62 = vpack.i.b16 %v254_v59, %v250_v38  ;;  %v622_v63 = vshrl.u32 %v254_v59, 16 }
  0x8e   : > { %v631_v21 = vpack.i.b16 %v630_v13, %v629_v55  ;;  %v1089_v15 = vcombine.low %v613_v4, %v627_v60  ;;  %v623_v22 = vpack.i.b16 %v622_v63, %v621_v56  ;;  %v1081_v25 = vcombine.low %v609_v5, %v619_v62 }
  0x8f   : > { %v270_v32 = vpop.permute.xlu1 %269  ;;  %v266_v33 = vpop.permute.xlu0 %265  ;;  %v761_v60 = vunpack.c.0.s8 %v760_v17 }
  0x90   : > { %v1096_v24 = vrot.slane %v1089_v15, %v6757_v57  ;;  %v1123_v34 = vcombine.low %v6580_v37, %v631_v21  ;;  %v1088_v38 = vrot.slane %v1081_v25, %v6757_v57  ;;  %v1115_v51 = vcombine.low %v6597_v18, %v623_v22 }
  0x91   : > { %v638_v55 = vshrl.u32 %v270_v32, 16  ;;  %v635_v0 = vpack.i.b16 %v270_v32, %v266_v33  ;;  %v637_v2 = vshrl.u32 %v266_v33, 16  ;;  %v6787_v32 = vsub.s32 %v761_v60, %v746_v54 }
  0x92   : > { %v6770_v4 = vrot.slane %v1123_v34, %v6757_v57  ;;  %v6773_v1 = vrot.slane %v1115_v51, %v6757_v57  ;;  %v1097_v3 = vcombine.low %v1088_v38, %v1096_v24  ;;  %v1098_v5 = vcombine.high %v1088_v38, %v1096_v24 }
  0x93   : > { %v639_v56 = vpack.i.b16 %v638_v55, %v637_v2  ;;  %v1149_v37 = vcombine.low %v635_v0, %v651_v7  ;;  %v278_v58 = vpop.permute.xlu1 %277  ;;  %v274_v59 = vpop.permute.xlu0 %273 }
  0x94   : > { %v646_v18 = vshrl.u32 %v278_v58, 16  ;;  %v643_v13 = vpack.i.b16 %v278_v58, %v274_v59  ;;  %v645_v62 = vshrl.u32 %v274_v59, 16  ;;  %v1131_v63 = vcombine.low %v6773_v1, %v6770_v4 }
  0x95   : > { %v1132_v22 = vcombine.high %v6773_v1, %v6770_v4  ;;  %v1156_v8 = vrot.slane %v1149_v37, %v6757_v57  ;;  %v1183_v11 = vcombine.low %v639_v56, %v6613_v9  ;;  %v6797_v0 = vrot.slane %v1097_v3, %v6787_v32 }
  0x96   : > { %v647_v21 = vpack.i.b16 %v646_v18, %v645_v62  ;;  %v1157_v15 = vcombine.low %v643_v13, %v659_v43  ;;  %v6800_v1 = vrot.slane %v1098_v5, %v6787_v32  ;;  %v1139_v31 = vrot.slane %v1131_v63, %v6787_v32 }
  0x97   : > { %v252_v7 = vpop.permute.xlu1 %251  ;;  %v248_v25 = vpop.permute.xlu0 %247  ;;  %v1190_v9 = vrot.slane %v1183_v11, %v6757_v57 }
  0x98   : > { %v1164_v33 = vrot.slane %v1157_v15, %v6757_v57  ;;  %v1191_v12 = vcombine.low %v647_v21, %v6617_v45  ;;  %v490_v17 = vshrl.u32 %v252_v7, 16  ;;  %v487_v24 = vpack.i.b16 %v252_v7, %v248_v25 }
  0x99   : > { %v489_v34 = vshrl.u32 %v248_v25, 16 }
  0x9a   : > { %v1198_v23 = vrot.slane %v1191_v12, %v6757_v57  ;;  %v741_v27 = vcombine.low %v477_v28, %v487_v24  ;;  %v1165_v43 = vcombine.low %v1156_v8, %v1164_v33  ;;  %v1166_v38 = vcombine.high %v1156_v8, %v1164_v33 }
  0x9b   : > { %v491_v51 = vpack.i.b16 %v490_v17, %v489_v34  ;;  %v260_v54 = vpop.permute.xlu1 %259  ;;  %v256_v55 = vpop.permute.xlu0 %255  ;;  %v6826_v12 = vrot.slane %v1132_v22, %v6787_v32 }
  0x9c   : > { %v498_v45 = vshrl.u32 %v260_v54, 16  ;;  %v495_v2 = vpack.i.b16 %v260_v54, %v256_v55  ;;  %v497_v4 = vshrl.u32 %v256_v55, 16  ;;  %v6803_v56 = vrot.slane %v1165_v43, %v6787_v32 }
  0x9d   : > { %v6806_v30 = vrot.slane %v1166_v38, %v6787_v32  ;;  %v1199_v28 = vcombine.low %v1190_v9, %v1198_v23  ;;  %v748_v37 = vrot.slane %v741_v27, %v6757_v57  ;;  %v1200_v59 = vcombine.high %v1190_v9, %v1198_v23 }
  0x9e   : > { %v499_v58 = vpack.i.b16 %v498_v45, %v497_v4  ;;  %v749_v3 = vcombine.low %v481_v47, %v495_v2  ;;  %v775_v5 = vcombine.low %v6625_v46, %v491_v51  ;;  %v6125_v13 = vcombine.high %v6797_v0, %v6803_v56 }
  0x9f   : > { %v268_v60 = vpop.permute.xlu1 %267  ;;  %v264_v18 = vpop.permute.xlu0 %263  ;;  %v5977_v62 = vcombine.low %v6800_v1, %v6806_v30  ;;  %v1207_v63 = vrot.slane %v1199_v28, %v6787_v32  ;;  %v6131_v11 = vcombine.high %v6800_v1, %v6806_v30  ;;  %v6830_v23 = vrot.slane %v1200_v59, %v6787_v32 }
  0xa0   : > { %v756_v21 = vrot.slane %v749_v3, %v6757_v57  ;;  %v783_v15 = vcombine.low %v6629_v48, %v499_v58  ;;  %v506_v8 = vshrl.u32 %v268_v60, 16  ;;  %v503_v39 = vpack.i.b16 %v268_v60, %v264_v18  ;;  %1612 = vrot.lane.b32.xlu0 %v6125_v13, %s6374_s25 }
  0xa1   : > { %v505_v44 = vshrl.u32 %v264_v18, 16  ;;  %v5968_v46 = vcombine.low %v1139_v31, %v1207_v63  ;;  %v6128_v47 = vcombine.high %v1139_v31, %v1207_v63  ;;  %v782_v48 = vrot.slane %v775_v5, %v6757_v57 }
  0xa2   : > { %v790_v7 = vrot.slane %v783_v15, %v6757_v57  ;;  %v757_v25 = vcombine.low %v748_v37, %v756_v21  ;;  %v758_v33 = vcombine.high %v748_v37, %v756_v21  ;;  %v809_v43 = vcombine.low %v503_v39, %v519_v49 }
  0xa3   : > { %v507_v17 = vpack.i.b16 %v506_v8, %v505_v44  ;;  %v276_v24 = vpop.permute.xlu1 %275  ;;  %v272_v34 = vpop.permute.xlu0 %271  ;;  %v5980_v45 = vcombine.low %v6826_v12, %v6830_v23  ;;  %v6134_v49 = vcombine.high %v6826_v12, %v6830_v23  ;;  %v8941_v23 = vpack.i.b16 %v6699_v16, %v6703_v19 }
  0xa4   : > { %v514_v38 = vshrl.u32 %v276_v24, 16  ;;  %v511_v9 = vpack.i.b16 %v276_v24, %v272_v34  ;;  %v513_v51 = vshrl.u32 %v272_v34, 16  ;;  %1650 = vrot.lane.b32.xlu0 %v5977_v62, %s6375_s26  ;;  %v791_v22 = vcombine.low %v782_v48, %v790_v7 }
  0xa5   : > { %v792_v2 = vcombine.high %v782_v48, %v790_v7  ;;  %v843_v4 = vcombine.low %v507_v17, %v6633_v50  ;;  %v816_v31 = vrot.slane %v809_v43, %v6757_v57  ;;  %v6861_v59 = vrot.slane %v757_v25, %v6787_v32 }
  0xa6   : > { %v515_v54 = vpack.i.b16 %v514_v38, %v513_v51  ;;  %v817_v55 = vcombine.low %v511_v9, %v527_v52  ;;  %v799_v63 = vrot.slane %v791_v22, %v6787_v32 }
  0xa7   : > { %v6844_v35 = vpop.permute.xlu1 %384  ;;  %v6846_v41 = vpop.permute.xlu0 %380  ;;  %v850_v37 = vrot.slane %v843_v4, %v6757_v57  ;;  %8937 = vst [vmem:[#allocation2_spill] sm:$0xff] %v6861_v59  ;;  %v6873_v21 = vrot.slane %v792_v2, %v6787_v32  ;;  %v699_v2 = vpack.i.b16 %v6667_v10, %v6672_v61 }
  0xa8   : > { %v824_v28 = vrot.slane %v817_v55, %v6757_v57  ;;  %v851_v42 = vcombine.low %v515_v54, %v6637_v53  ;;  %1593 = vrot.lane.b32.xlu0 %v5968_v46, %s6376_s27  ;;  %v772_v53 = vrot.slane %v758_v33, %v6787_v32  ;;  %v667_v54 = vpack.i.b16 %v6844_v35, %v6846_v41 }
  0xaa   : > { %v858_v14 = vrot.slane %v851_v42, %v6757_v57  ;;  %v825_v52 = vcombine.low %v816_v31, %v824_v28  ;;  %v826_v50 = vcombine.high %v816_v31, %v824_v28  ;;  %v707_v28 = vpack.i.b16 %v6681_v6, %v6685_v20 }
  0xab   : > { %v6856_v58 = vpop.permute.xlu1 %392  ;;  %v6858_v3 = vpop.permute.xlu0 %388 }
  0xac   : > { %v6864_v5 = vrot.slane %v825_v52, %v6787_v32  ;;  %1631 = vrot.lane.b32.xlu0 %v6128_v47, %s6377_s28  ;;  %v840_v60 = vrot.slane %v826_v50, %v6787_v32  ;;  %v859_v18 = vcombine.low %v850_v37, %v858_v14  ;;  %v860_v13 = vcombine.high %v850_v37, %v858_v14 }
  0xad   : > { %v675_v38 = vpack.i.b16 %v6856_v58, %v6858_v3 }
  0xae   : > { %8938 = vst [vmem:[#allocation3_spill] sm:$0xff] %v6864_v5  ;;  %v6113_v62 = vcombine.high %v6861_v59, %v6864_v5  ;;  %v5953_v44 = vcombine.low %v772_v53, %v840_v60  ;;  %v6119_v46 = vcombine.high %v772_v53, %v840_v60  ;;  %v867_v47 = vrot.slane %v859_v18, %v6787_v32 }
  0xaf   : > { %v6877_v8 = vpop.permute.xlu1 %400  ;;  %v6879_v39 = vpop.permute.xlu0 %396  ;;  %v6883_v7 = vrot.slane %v860_v13, %v6787_v32 }
  0xb0   : > { %1466 = vrot.lane.b32.xlu1 %v6113_v62, %s6374_s25  ;;  %v5944_v25 = vcombine.low %v799_v63, %v867_v47  ;;  %v6116_v33 = vcombine.high %v799_v63, %v867_v47  ;;  %v683_v9 = vpack.i.b16 %v6877_v8, %v6879_v39 }
  0xb1   : > { %v5956_v48 = vcombine.low %v6873_v21, %v6883_v7 }
  0xb2   : > { %v1217_v31 = vcombine.low %v667_v54, %v683_v9  ;;  %v701_v54 = vshrl.u32 %v6672_v61, 16  ;;  %v686_v61 = vshrl.u32 %v6877_v8, 16 }
  0xb3   : > { %v6890_v24 = vpop.permute.xlu1 %408  ;;  %v6892_v34 = vpop.permute.xlu0 %404 }
  0xb4   : > { %v691_v43 = vpack.i.b16 %v6890_v24, %v6892_v34  ;;  %1504 = vrot.lane.b32.xlu1 %v5953_v44, %s6375_s26  ;;  %v6928_v1 = vrot.slane %v1217_v31, %v6757_v57 }
  0xb6   : > { %v1225_v55 = vcombine.low %v675_v38, %v691_v43 }
  0xb7   : > { %v6901_v51 = vpop.permute.xlu1 %451  ;;  %v6903_v22 = vpop.permute.xlu0 %447 }
  0xb8   : > { %v715_v4 = vpack.i.b16 %v6901_v51, %v6903_v22  ;;  %1688 = vrot.lane.b32.xlu1 %v6131_v11, %s6378_s29  ;;  %v6922_v52 = vrot.slane %v1225_v55, %v6757_v57  ;;  %v710_v55 = vshrl.u32 %v6681_v6, 16  ;;  %v685_v6 = vshrl.u32 %v6879_v39, 16 }
  0xba   : > { %v1285_v50 = vcombine.low %v699_v2, %v715_v4  ;;  %v1233_v13 = vcombine.low %v6928_v1, %v6922_v52  ;;  %v709_v2 = vshrl.u32 %v6685_v20, 16  ;;  %v687_v27 = vpack.i.b16 %v686_v61, %v685_v6 }
  0xbb   : > { %v6917_v42 = vpop.permute.xlu1 %459  ;;  %v6919_v14 = vpop.permute.xlu0 %455 }
  0xbc   : > { %v723_v37 = vpack.i.b16 %v6917_v42, %v6919_v14  ;;  %1542 = vrot.lane.b32.xlu1 %v6119_v46, %s6378_s29  ;;  %v6935_v60 = vrot.slane %v1285_v50, %v6757_v57  ;;  %v6951_v46 = vrot.slane %v1233_v13, %v6787_v32  ;;  %v577_v50 = vshrl.u32 %v6735_v40, 16 }
  0xbd   : > { %v693_v13 = vshrl.u32 %v6892_v34, 16 }
  0xbe   : > { %v1293_v30 = vcombine.low %v707_v28, %v723_v37  ;;  %8939 = vst [vmem:[#allocation4_spill] sm:$0xff] %v6951_v46  ;;  %v578_v28 = vshrl.u32 %v6731_v36, 16  ;;  %v670_v37 = vshrl.u32 %v6844_v35, 16  ;;  %v717_v35 = vshrl.u32 %v6903_v22, 16 }
  0xbf   : > { %v6930_v11 = vpop.permute.xlu1 %382  ;;  %v6932_v53 = vpop.permute.xlu0 %378  ;;  %v711_v22 = vpack.i.b16 %v710_v55, %v709_v2  ;;  %v8942_v55 = vcombine.high %v6873_v21, %v6883_v7 }
  0xc0   : > { %v6938_v18 = vrot.slane %v1293_v30, %v6757_v57  ;;  %1447 = vrot.lane.b32.xlu1 %v5944_v25, %s6376_s27  ;;  %v694_v30 = vshrl.u32 %v6890_v24, 16  ;;  %v677_v24 = vshrl.u32 %v6858_v3, 16  ;;  %v575_v3 = vpack.i.b16 %v6731_v36, %v6735_v40 }
  0xc1   : > { %v579_v40 = vpack.i.b16 %v578_v28, %v577_v50 }
  0xc2   : > { %v1301_v62 = vcombine.low %v6935_v60, %v6938_v18  ;;  %v695_v17 = vpack.i.b16 %v694_v30, %v693_v13  ;;  %v538_v13 = vshrl.u32 %v6930_v11, 16 }
  0xc3   : > { %v6945_v63 = vpop.permute.xlu1 %390  ;;  %v6947_v44 = vpop.permute.xlu0 %386 }
  0xc4   : > { %1485 = vrot.lane.b32.xlu1 %v6116_v33, %s6377_s28  ;;  %v6954_v47 = vrot.slane %v1301_v62, %v6787_v32  ;;  %v702_v33 = vshrl.u32 %v6667_v10, 16  ;;  %v678_v10 = vshrl.u32 %v6856_v58, 16  ;;  %v718_v62 = vshrl.u32 %v6901_v51, 16 }
  0xc5   : > { %v543_v58 = vpack.i.b16 %v6945_v63, %v6947_v44 }
  0xc6   : > { %8940 = vst [vmem:[#allocation5_spill] sm:$0xff] %v6954_v47  ;;  %v6126_v25 = vcombine.high %v6951_v46, %v6954_v47  ;;  %v703_v51 = vpack.i.b16 %v702_v33, %v701_v54  ;;  %v719_v26 = vpack.i.b16 %v718_v62, %v717_v35  ;;  %v679_v12 = vpack.i.b16 %v678_v10, %v677_v24 }
  0xc7   : > { %v6960_v38 = vpop.permute.xlu1 %398  ;;  %v6962_v9 = vpop.permute.xlu0 %394  ;;  %v537_v62 = vshrl.u32 %v6932_v53, 16 }
  0xc8   : > { %1614 = vrot.lane.b32.xlu0 %v6126_v25, %s6374_s25  ;;  %1669 = vrot.lane.b32.xlu1 %v5980_v45, %s6379_s30  ;;  %v669_v45 = vshrl.u32 %v6846_v41, 16  ;;  %v726_v41 = vshrl.u32 %v6917_v42, 16  ;;  %v551_v8 = vpack.i.b16 %v6960_v38, %v6962_v9  ;;  %v535_v42 = vpack.i.b16 %v6930_v11, %v6932_v53 }
  0xc9   : > { %v553_v50 = vshrl.u32 %v6962_v9, 16 }
  0xca   : > { %v877_v47 = vcombine.low %v535_v42, %v551_v8  ;;  %v539_v42 = vpack.i.b16 %v538_v13, %v537_v62 }
  0xcb   : > { %v6973_v4 = vpop.permute.xlu1 %406  ;;  %v6975_v31 = vpop.permute.xlu0 %402 }
  0xcc   : > { %1523 = vrot.lane.b32.xlu1 %v5956_v48, %s6379_s30  ;;  %v559_v20 = vpack.i.b16 %v6973_v4, %v6975_v31  ;;  %v725_v48 = vshrl.u32 %v6919_v14, 16  ;;  %v7017_v16 = vrot.slane %v877_v47, %v6757_v57  ;;  %v562_v7 = vshrl.u32 %v6973_v4, 16 }
  0xcd   : > { %v561_v28 = vshrl.u32 %v6975_v31, 16 }
  0xce   : > { %v885_v14 = vcombine.low %v543_v58, %v559_v20 }
  0xcf   : > { %v450_v39 = vpop.permute.xlu1 %449  ;;  %v446_v25 = vpop.permute.xlu0 %445  ;;  %v563_v35 = vpack.i.b16 %v562_v7, %v561_v28 }
  0xd0   : > { %v586_v43 = vshrl.u32 %v450_v39, 16  ;;  %v583_v34 = vpack.i.b16 %v450_v39, %v446_v25  ;;  %v585_v15 = vshrl.u32 %v446_v25, 16  ;;  %1707 = vrot.lane.b32.xlu1 %v6134_v49, %s6380_s5  ;;  %v671_v39 = vpack.i.b16 %v670_v37, %v669_v45 }
  0xd1   : > { %v727_v25 = vpack.i.b16 %v726_v41, %v725_v48  ;;  %v7014_v36 = vrot.slane %v885_v14, %v6757_v57  ;;  %v1319_v37 = vcombine.low %v703_v51, %v719_v26 }
  0xd2   : > { %v587_v46 = vpack.i.b16 %v586_v43, %v585_v15  ;;  %v945_v49 = vcombine.low %v8941_v23, %v583_v34  ;;  %v1251_v15 = vcombine.low %v671_v39, %v687_v27  ;;  %v1259_v43 = vcombine.low %v679_v12, %v695_v17 }
  0xd3   : > { %v458_v5 = vpop.permute.xlu1 %457  ;;  %v454_v59 = vpop.permute.xlu0 %453  ;;  %v1327_v10 = vcombine.low %v711_v22, %v727_v25  ;;  %v545_v17 = vshrl.u32 %v6947_v44, 16  ;;  %v1234_v44 = vcombine.high %v6928_v1, %v6922_v52  ;;  %v7067_v11 = vrot.slane %v1319_v37, %v6757_v57 }
  0xd4   : > { %v594_v33 = vshrl.u32 %v458_v5, 16  ;;  %v591_v54 = vpack.i.b16 %v458_v5, %v454_v59  ;;  %1561 = vrot.lane.b32.xlu1 %v8942_v55, %s6380_s5  ;;  %v593_v2 = vshrl.u32 %v454_v59, 16  ;;  %v979_v19 = vcombine.low %v6713_v29, %v587_v46 }
  0xd5   : > { %v952_v27 = vrot.slane %v945_v49, %v6757_v57  ;;  %v546_v59 = vshrl.u32 %v6945_v63, 16  ;;  %v893_v29 = vcombine.low %v7017_v16, %v7014_v36  ;;  %v554_v46 = vshrl.u32 %v6960_v38, 16 }
  0xd6   : > { %v953_v45 = vcombine.low %v575_v3, %v591_v54  ;;  %v595_v5 = vpack.i.b16 %v594_v33, %v593_v2  ;;  %v7035_v31 = vrot.slane %v979_v19, %v6757_v57  ;;  %v1302_v38 = vcombine.high %v6935_v60, %v6938_v18 }
  0xd7   : > { %v7020_v61 = vpop.permute.xlu1 %463  ;;  %v7022_v21 = vpop.permute.xlu0 %461  ;;  %v7049_v9 = vrot.slane %v1327_v10, %v6757_v57  ;;  %v7054_v41 = vrot.slane %v893_v29, %v6787_v32  ;;  %v7064_v60 = vrot.slane %v1251_v15, %v6757_v57  ;;  %v547_v53 = vpack.i.b16 %v546_v59, %v545_v17 }
  0xd8   : > { %v960_v26 = vrot.slane %v953_v45, %v6757_v57  ;;  %v987_v47 = vcombine.low %v579_v40, %v595_v5  ;;  %v555_v18 = vpack.i.b16 %v554_v46, %v553_v50  ;;  %v7070_v58 = vrot.slane %v1259_v43, %v6757_v57 }
  0xd9   : > { %v7075_v51 = vrot.slane %v1234_v44, %v6787_v32  ;;  %v7078_v22 = vrot.slane %v1302_v38, %v6787_v32  ;;  %v919_v14 = vcombine.low %v547_v53, %v563_v35  ;;  %v894_v3 = vcombine.high %v7017_v16, %v7014_v36 }
  0xda   : > { %v961_v6 = vcombine.low %v952_v27, %v960_v26  ;;  %v962_v4 = vcombine.high %v952_v27, %v960_v26  ;;  %v7038_v20 = vrot.slane %v987_v47, %v6757_v57  ;;  %v1335_v39 = vcombine.low %v7067_v11, %v7049_v9 }
  0xdb   : > { %v7040_v30 = vpop.permute.xlu1 %467  ;;  %v7042_v63 = vpop.permute.xlu0 %465  ;;  %v732_v25 = vshrl.u32 %v7020_v61, 16  ;;  %v600_v12 = vshrl.u32 %v7022_v21, 16  ;;  %v911_v33 = vcombine.low %v539_v42, %v555_v18  ;;  %v5978_v15 = vcombine.low %v7075_v51, %v7078_v22 }
  0xdc   : > { %v7057_v48 = vrot.slane %v961_v6, %v6787_v32  ;;  %v995_v52 = vcombine.low %v7035_v31, %v7038_v20  ;;  %v996_v1 = vcombine.high %v7035_v31, %v7038_v20  ;;  %v733_v23 = vshrl.u32 %v7040_v30, 16 }
  0xdd   : > { %v601_v49 = vshrl.u32 %v7042_v63, 16  ;;  %v7094_v43 = vrot.slane %v962_v4, %v6787_v32  ;;  %v7097_v37 = vrot.slane %v919_v14, %v6757_v57  ;;  %v1267_v16 = vcombine.low %v7064_v60, %v7070_v58 }
  0xde   : > { %v6114_v34 = vcombine.high %v7054_v41, %v7057_v48  ;;  %v5942_v40 = vcombine.low %v7054_v41, %v7057_v48  ;;  %v734_v19 = vpack.i.b16 %v733_v23, %v732_v25  ;;  %v7103_v7 = vrot.slane %v894_v3, %v6787_v32 }
  0xdf   : > { %v472_v8 = vpop.permute.xlu1 %471  ;;  %v470_v24 = vpop.permute.xlu0 %469  ;;  %v602_v5 = vpack.i.b16 %v601_v49, %v600_v12  ;;  %v918_v28 = vrot.slane %v911_v33, %v6757_v57  ;;  %v1343_v59 = vrot.slane %v1335_v39, %v6787_v32  ;;  %v1275_v46 = vrot.slane %v1267_v16, %v6787_v32 }
  0xe0   : > { %1468 = vrot.lane.b32.xlu0 %v6114_v34, %s6374_s25  ;;  %v738_v54 = vshrl.u32 %v472_v8, 16  ;;  %v606_v55 = vshrl.u32 %v470_v24, 16  ;;  %v5954_v47 = vcombine.low %v7103_v7, %v7094_v43  ;;  %v7115_v6 = vrot.slane %v734_v19, %v6757_v57 }
  0xe1   : > { %v927_v50 = vcombine.low %v918_v28, %v7097_v37  ;;  %v599_v4 = vpack.i.b16 %v7042_v63, %v7022_v21  ;;  %v7120_v44 = vrot.slane %v602_v5, %v6757_v57  ;;  %v5969_v13 = vcombine.low %v1275_v46, %v1343_v59 }
  0xe2   : > { %v1003_v62 = vrot.slane %v995_v52, %v6787_v32  ;;  %v6129_v12 = vcombine.high %v1275_v46, %v1343_v59  ;;  %v1268_v33 = vcombine.high %v7064_v60, %v7070_v58  ;;  %v1010_v58 = vrot.slane %v996_v1, %v6787_v32 }
  0xe3   : > { %v476_v36 = vpop.permute.xlu1 %475  ;;  %v474_v2 = vpop.permute.xlu0 %473  ;;  %v935_v63 = vrot.slane %v927_v50, %v6787_v32  ;;  %v1020_v34 = vrot.slane %v599_v4, %v6757_v57  ;;  %v6132_v5 = vcombine.high %v7075_v51, %v7078_v22  ;;  %v6120_v20 = vcombine.high %v7103_v7, %v7094_v43 }
  0xe4   : > { %v739_v45 = vshrl.u32 %v476_v36, 16  ;;  %v607_v10 = vshrl.u32 %v474_v2, 16  ;;  %1652 = vrot.lane.b32.xlu0 %v5978_v15, %s6375_s26  ;;  %v605_v17 = vpack.i.b16 %v474_v2, %v470_v24  ;;  %v737_v35 = vpack.i.b16 %v476_v36, %v472_v8 }
  0xe5   : > { %v731_v24 = vpack.i.b16 %v7040_v30, %v7020_v61  ;;  %v5945_v8 = vcombine.low %v935_v63, %v1003_v62  ;;  %v1336_v61 = vcombine.high %v7067_v11, %v7049_v9  ;;  %v1282_v11 = vrot.slane %v1268_v33, %v6787_v32 }
  0xe6   : > { %v740_v27 = vpack.i.b16 %v739_v45, %v738_v54  ;;  %v608_v26 = vpack.i.b16 %v607_v10, %v606_v55  ;;  %v1028_v53 = vrot.slane %v605_v17, %v6757_v57  ;;  %v1368_v42 = vrot.slane %v737_v35, %v6757_v57 }
  0xe7   : > { %v1360_v25 = vrot.slane %v731_v24, %v6757_v57  ;;  %v6117_v54 = vcombine.high %v935_v63, %v1003_v62  ;;  %v1350_v36 = vrot.slane %v1336_v61, %v6787_v32  ;;  %v928_v2 = vcombine.high %v918_v28, %v7097_v37 }
  0xe8   : > { %v7110_v29 = vrot.slane %v740_v27, %v6757_v57  ;;  %v7123_v38 = vrot.slane %v608_v26, %v6757_v57  ;;  %1506 = vrot.lane.b32.xlu0 %v5954_v47, %s6375_s26  ;;  %v1029_v14 = vcombine.low %v1020_v34, %v1028_v53  ;;  %v1030_v10 = vcombine.high %v1020_v34, %v1028_v53 }
  0xe9   : > { %v1369_v30 = vcombine.low %v1360_v25, %v1368_v42  ;;  %v5981_v15 = vcombine.low %v1282_v11, %v1350_v36  ;;  %v942_v45 = vrot.slane %v928_v2, %v6787_v32  ;;  %v1370_v37 = vcombine.high %v1360_v25, %v1368_v42  ;;  %v8945_v25 = vld [vmem:[#allocation3_spill] sm:$0xff] }
  0xea   : > { %v1063_v18 = vcombine.low %v7120_v44, %v7123_v38  ;;  %v1403_v21 = vcombine.low %v7115_v6, %v7110_v29  ;;  %v7146_v49 = vrot.slane %v1029_v14, %v6787_v32  ;;  %v1044_v31 = vrot.slane %v1030_v10, %v6787_v32 }
  0xeb   : > { %v7156_v9 = vrot.slane %v1369_v30, %v6787_v32  ;;  %v5957_v16 = vcombine.low %v942_v45, %v1010_v58  ;;  %v1384_v27 = vrot.slane %v1370_v37, %v6787_v32  ;;  %v1404_v26 = vcombine.high %v7115_v6, %v7110_v29 }
  0xec   : > { %1595 = vrot.lane.b32.xlu0 %v5969_v13, %s6376_s27  ;;  %v1071_v52 = vrot.slane %v1063_v18, %v6787_v32  ;;  %v1411_v39 = vrot.slane %v1403_v21, %v6787_v32  ;;  %v6115_v55 = vcombine.high %v7146_v49, %v7146_v49  ;;  %v5955_v1 = vcombine.low %v1044_v31, %v1044_v31 }
  0xed   : > { %v6127_v60 = vcombine.high %v7156_v9, %v7156_v9  ;;  %v6135_v51 = vcombine.high %v1282_v11, %v1350_v36  ;;  %v5979_v22 = vcombine.low %v1384_v27, %v1384_v27  ;;  %v1418_v59 = vrot.slane %v1404_v26, %v6787_v32 }
  0xee   : > { %v5946_v3 = vcombine.low %v1071_v52, %v1071_v52  ;;  %v5970_v23 = vcombine.low %v1411_v39, %v1411_v39  ;;  %v6118_v19 = vcombine.high %v1071_v52, %v1071_v52  ;;  %v6130_v28 = vcombine.high %v1411_v39, %v1411_v39  ;;  %v8944_v39 = vld [vmem:[#allocation2_spill] sm:$0xff] }
  0xef   : > { %v1064_v17 = vcombine.high %v7120_v44, %v7123_v38  ;;  %v6123_v43 = vcombine.high %v942_v45, %v1010_v58  ;;  %v5982_v7 = vcombine.low %v1418_v59, %v1418_v59  ;;  %v6133_v46 = vcombine.high %v1384_v27, %v1384_v27 }
  0xf0   : > { %1449 = vrot.lane.b32.xlu0 %v5945_v8, %s6376_s27  ;;  %1451 = vrot.lane.b32.xlu1 %v5946_v3, %s6376_s27  ;;  %v6381_v50 = vmov 0   ;;  %v6121_v6 = vcombine.high %v1044_v31, %v1044_v31  ;;  %v6136_v4 = vcombine.high %v1418_v59, %v1418_v59  ;;  %v8943_v34 = vcombine.low %v6797_v0, %v6803_v56 }
  0xf1   : > { %v1078_v47 = vrot.slane %v1064_v17, %v6787_v32  ;;  %1872 = vmatprep.mubr.bf16.mxu0 %v6381_v50  ;;  %6338 = vset.pattern.permute.xlu0 %v6381_v50  ;;  %v8946_v61 = vcombine.low %v8944_v39, %v8945_v25  ;;  %v8947_v17 = vld [vmem:[#allocation4_spill] sm:$0xff] }
  0xf2   : > { %6339 = vset.pattern.permute.xlu1 %v6381_v50 }
  0xf3   : > { %v5958_v29 = vcombine.low %v1078_v47, %v1078_v47  ;;  %v6124_v44 = vcombine.high %v1078_v47, %v1078_v47 }
  0xf4   : > { %1633 = vrot.lane.b32.xlu0 %v6129_v12, %s6377_s28  ;;  %1597 = vrot.lane.b32.xlu1 %v5970_v23, %s6376_s27 }
  0xf8   : > { %1487 = vrot.lane.b32.xlu0 %v6117_v54, %s6377_s28  ;;  %1470 = vrot.lane.b32.xlu1 %v6115_v55, %s6374_s25 }
  0xfc   : > { %1671 = vrot.lane.b32.xlu0 %v5981_v15, %s6379_s30  ;;  %1616 = vrot.lane.b32.xlu1 %v6127_v60, %s6374_s25 }
 0x100   : > { %1525 = vrot.lane.b32.xlu0 %v5957_v16, %s6379_s30  ;;  %1489 = vrot.lane.b32.xlu1 %v6118_v19, %s6377_s28 }
 0x104   : > { %1690 = vrot.lane.b32.xlu0 %v6132_v5, %s6378_s29  ;;  %1635 = vrot.lane.b32.xlu1 %v6130_v28, %s6377_s28 }
 0x108   : > { %1544 = vrot.lane.b32.xlu0 %v6120_v20, %s6378_s29  ;;  %1508 = vrot.lane.b32.xlu1 %v5955_v1, %s6375_s26 }
 0x10c   : > { %1709 = vrot.lane.b32.xlu0 %v6135_v51, %s6380_s5  ;;  %1654 = vrot.lane.b32.xlu1 %v5979_v22, %s6375_s26 }
 0x110   : > { %1563 = vrot.lane.b32.xlu0 %v6123_v43, %s6380_s5  ;;  %1673 = vrot.lane.b32.xlu1 %v5982_v7, %s6379_s30  ;;  %v8948_v43 = vld [vmem:[#allocation5_spill] sm:$0xff] }
 0x111   : > { %v8949_v7 = vcombine.low %v8947_v17, %v8948_v43 }
 0x112   : > { %v1613_v13 = vpop.permute.xlu0 %1612 }
 0x114   : > { %1527 = vrot.lane.b32.xlu0 %v5958_v29, %s6379_s30  ;;  %1692 = vrot.lane.b32.xlu1 %v6133_v46, %s6378_s29 }
 0x116   : > { %v1651_v53 = vpop.permute.xlu0 %1650 }
 0x118   : > { %1546 = vrot.lane.b32.xlu0 %v6121_v6, %s6378_s29  ;;  %1711 = vrot.lane.b32.xlu1 %v6136_v4, %s6380_s5 }
 0x11a   : > { %v1594_v21 = vpop.permute.xlu0 %1593 }
 0x11b   : > { %v1769_v52 = vsel %vm1713_vm6, %v8943_v34, %v1594_v21 }
 0x11c   : > { %1565 = vrot.lane.b32.xlu0 %v6124_v44, %s6380_s5  ;;  %v1777_v42 = vsel %vm1723_vm7, %v1769_v52, %v1613_v13 }
 0x11e   : > { %v1632_v8 = vpop.permute.xlu0 %1631 }
 0x11f   : > { %v1783_v3 = vsel %vm1730_vm8, %v1777_v42, %v1632_v8  ;;  %v5967_v42 = vcombine.low %v7156_v9, %v7156_v9 }
 0x120   : > { %v1789_v0 = vsel %vm1737_vm9, %v1783_v3, %v1651_v53 }
 0x122   : > { %v1467_v38 = vpop.permute.xlu1 %1466 }
 0x126   : > { %v1505_v62 = vpop.permute.xlu1 %1504 }
 0x12a   : > { %v1689_v35 = vpop.permute.xlu1 %1688 }
 0x12e   : > { %v1543_v18 = vpop.permute.xlu1 %1542 }
 0x132   : > { %v1448_v63 = vpop.permute.xlu1 %1447 }
 0x133   : > { %v1716_v30 = vsel %vm1713_vm6, %v8946_v61, %v1448_v63 }
 0x134   : > { %v1725_v12 = vsel %vm1723_vm7, %v1716_v30, %v1467_v38  ;;  %v5943_v30 = vcombine.low %v7146_v49, %v7146_v49 }
 0x136   : > { %v1486_v24 = vpop.permute.xlu1 %1485 }
 0x137   : > { %v1732_v23 = vsel %vm1730_vm8, %v1725_v12, %v1486_v24 }
 0x138   : > { %v1739_v54 = vsel %vm1737_vm9, %v1732_v23, %v1505_v62 }
 0x13a   : > { %v1670_v14 = vpop.permute.xlu1 %1669  ;;  %v1615_v45 = vpop.permute.xlu0 %1614 }
 0x13b   : > { %v1795_v33 = vsel %vm1744_vm10, %v1789_v0, %v1670_v14 }
 0x13c   : > { %v1801_v36 = vsel %vm1751_vm11, %v1795_v33, %v1689_v35 }
 0x13e   : > { %v1524_v56 = vpop.permute.xlu1 %1523 }
 0x13f   : > { %v1746_v11 = vsel %vm1744_vm10, %v1739_v54, %v1524_v56 }
 0x140   : > { %v1753_v60 = vsel %vm1751_vm11, %v1746_v11, %v1543_v18 }
 0x142   : > { %v1708_v55 = vpop.permute.xlu1 %1707 }
 0x143   : > { %v1807_v2 = vsel %vm1758_vm12, %v1801_v36, %v1708_v55 }
 0x144   : > { %1840 = vmatprep.subr.bf16.mxu0 %v1807_v2 }
 0x146   : > { %v1562_v15 = vpop.permute.xlu1 %1561 }
 0x147   : > { %v1760_v58 = vsel %vm1758_vm12, %v1753_v60, %v1562_v15 }
 0x148   : > { %1841 = vmatpush1.bf16.msra.mxu0 %v1760_v58 }
 0x152   : > { %v1469_v10 = vpop.permute.xlu0 %1468 }
 0x156   : > { %v1653_v16 = vpop.permute.xlu0 %1652 }
 0x15a   : > { %v1507_v19 = vpop.permute.xlu0 %1506 }
 0x15e   : > { %v1596_v37 = vpop.permute.xlu0 %1595 }
 0x15f   : > { %v1772_v47 = vsel %vm1713_vm6, %v8949_v7, %v1596_v37 }
 0x160   : > { %v1779_v6 = vsel %vm1723_vm7, %v1772_v47, %v1615_v45 }
 0x162   : > { %v1450_v5 = vpop.permute.xlu0 %1449  ;;  %v1452_v28 = vpop.permute.xlu1 %1451 }
 0x163   : > { %v1719_v4 = vsel %vm1713_vm6, %v5942_v40, %v1450_v5  ;;  %v1722_v56 = vsel %vm1713_vm6, %v5943_v30, %v1452_v28 }
 0x164   : > { %v1727_v62 = vsel %vm1723_vm7, %v1719_v4, %v1469_v10  ;;  %v6340_v10 = vld [vmem:[%s8894_s1] sm:$0xff]  }
 0x166   : > { %v1634_v31 = vpop.permute.xlu0 %1633  ;;  %v1598_v20 = vpop.permute.xlu1 %1597 }
 0x167   : > { %v1785_v44 = vsel %vm1730_vm8, %v1779_v6, %v1634_v31  ;;  %v1775_v3 = vsel %vm1713_vm6, %v5967_v42, %v1598_v20 }
 0x168   : > { %v1791_v35 = vsel %vm1737_vm9, %v1785_v44, %v1653_v16  ;;  %v6341_v16 = vld [vmem:[%s8894_s1 + $0x8] sm:$0xff]  }
 0x16a   : > { %v1488_v1 = vpop.permute.xlu0 %1487  ;;  %v1471_v27 = vpop.permute.xlu1 %1470 }
 0x16b   : > { %v1734_v53 = vsel %vm1730_vm8, %v1727_v62, %v1488_v1  ;;  %v1729_v23 = vsel %vm1723_vm7, %v1722_v56, %v1471_v27 }
 0x16c   : > { %v1741_v48 = vsel %vm1737_vm9, %v1734_v53, %v1507_v19 }
 0x16e   : > { %v1672_v26 = vpop.permute.xlu0 %1671  ;;  %v1617_v51 = vpop.permute.xlu1 %1616 }
 0x16f   : > { %v1797_v18 = vsel %vm1744_vm10, %v1791_v35, %v1672_v26  ;;  %v1781_v39 = vsel %vm1723_vm7, %v1775_v3, %v1617_v51 }
 0x172   : > { %v1526_v22 = vpop.permute.xlu0 %1525  ;;  %v1490_v59 = vpop.permute.xlu1 %1489 }
 0x173   : > { %v1748_v40 = vsel %vm1744_vm10, %v1741_v48, %v1526_v22  ;;  %v1736_v36 = vsel %vm1730_vm8, %v1729_v23, %v1490_v59 }
 0x176   : > { %v1691_v29 = vpop.permute.xlu0 %1690  ;;  %v1636_v46 = vpop.permute.xlu1 %1635 }
 0x177   : > { %v1803_v21 = vsel %vm1751_vm11, %v1797_v18, %v1691_v29  ;;  %v1787_v12 = vsel %vm1730_vm8, %v1781_v39, %v1636_v46 }
 0x17a   : > { %v1545_v38 = vpop.permute.xlu0 %1544  ;;  %v1509_v13 = vpop.permute.xlu1 %1508 }
 0x17b   : > { %v1755_v34 = vsel %vm1751_vm11, %v1748_v40, %v1545_v38  ;;  %v1743_v49 = vsel %vm1737_vm9, %v1736_v36, %v1509_v13 }
 0x17e   : > { %v1710_v63 = vpop.permute.xlu0 %1709  ;;  %v1655_v24 = vpop.permute.xlu1 %1654 }
 0x17f   : > { %v1810_v41 = vsel %vm1758_vm12, %v1803_v21, %v1710_v63  ;;  %v1793_v0 = vsel %vm1737_vm9, %v1787_v12, %v1655_v24 }
 0x180   : > { %1842 = vmatprep.subr.bf16.mxu0 %v1810_v41 }
 0x182   : > { %v1564_v52 = vpop.permute.xlu0 %1563  ;;  %v1674_v8 = vpop.permute.xlu1 %1673 }
 0x183   : > { %v1763_v14 = vsel %vm1758_vm12, %v1755_v34, %v1564_v52  ;;  %v1799_v9 = vsel %vm1744_vm10, %v1793_v0, %v1674_v8 }
 0x184   : > { %1843 = vmatpush1.bf16.msra.mxu0 %v1763_v14 }
 0x186   : > { %v1528_v25 = vpop.permute.xlu0 %1527  ;;  %v1693_v61 = vpop.permute.xlu1 %1692 }
 0x187   : > { %v1805_v33 = vsel %vm1751_vm11, %v1799_v9, %v1693_v61  ;;  %v1750_v2 = vsel %vm1744_vm10, %v1743_v49, %v1528_v25 }
 0x18a   : > { %v1547_v54 = vpop.permute.xlu0 %1546  ;;  %v1712_v55 = vpop.permute.xlu1 %1711 }
 0x18b   : > { %v1813_v11 = vsel %vm1758_vm12, %v1805_v33, %v1712_v55  ;;  %v1757_v15 = vsel %vm1751_vm11, %v1750_v2, %v1547_v54 }
 0x18c   : > { %5991 = vmatprep.subr.msk.bf16.mxu0 %vm1835_vm13, %v1813_v11 }
 0x18e   : > { %v1566_v60 = vpop.permute.xlu0 %1565 }
 0x18f   : > { %v1766_v58 = vsel %vm1758_vm12, %v1757_v15, %v1566_v60 }
 0x190   : > { %v1836_v45 = vsel %vm1835_vm13, %v1766_v58, 0 }
 0x191   : > { %1845 = vmatpush1.bf16.msra.mxu0 %v1836_v45 }
 0x194   : > { %5992 = vmatmul.mubr.msk.bf16.vlgmr.msra.gmra.mrb[0].mxu0 %vm1828_vm14, %v6340_v10 }
 0x195   : > { %1882 = vmatprep.mubr.bf16.mxu0 %v6381_v50 }
 0x19c   : > { %5993 = vmatmul.mubr.msk.bf16.gmra.mrb[4].mxu0 %vm1828_vm14, %v6341_v16 }
 0x267   : > { %v7266_v19 = vpop.f32.mrb[0].mxu0 }
 0x268   : > { %1897 = vrot.lane.b32.xlu0 %v7266_v19, %s6380_s5  ;;  %v7270_v37 = vpop.f32.mrb[1].mxu0 }
 0x269   : > { %v7272_v5 = vpop.f32.mrb[2].mxu0 }
 0x26a   : > { %1899 = vrot.lane.b32.xlu1 %v7272_v5, %s6380_s5  ;;  %v7276_v28 = vpop.f32.mrb[3].mxu0 }
 0x26c   : > { %1909 = vrot.lane.b32.xlu0 %v7266_v19, %s6378_s29 }
 0x26e   : > { %1911 = vrot.lane.b32.xlu1 %v7272_v5, %s6378_s29 }
 0x26f   : > { %v7282_v50 = vpop.f32.mrb[4].mxu0 }
 0x270   : > { %1921 = vrot.lane.b32.xlu0 %v7266_v19, %s6379_s30  ;;  %v7286_v31 = vpop.f32.mrb[5].mxu0 }
 0x271   : > { %v7288_v20 = vpop.f32.mrb[6].mxu0 }
 0x272   : > { %1923 = vrot.lane.b32.xlu1 %v7272_v5, %s6379_s30  ;;  %v7292_v1 = vpop.f32.mrb[7].mxu0 }
 0x274   : > { %1933 = vrot.lane.b32.xlu0 %v7266_v19, %s6375_s26 }
 0x276   : > { %1935 = vrot.lane.b32.xlu1 %v7272_v5, %s6375_s26 }
 0x278   : > { %1945 = vrot.lane.b32.xlu0 %v7266_v19, %s6377_s28 }
 0x27a   : > { %1947 = vrot.lane.b32.xlu1 %v7272_v5, %s6377_s28 }
 0x27c   : > { %1957 = vrot.lane.b32.xlu0 %v7266_v19, %s6374_s25 }
 0x27e   : > { %1959 = vrot.lane.b32.xlu1 %v7272_v5, %s6374_s25 }
 0x280   : > { %1969 = vrot.lane.b32.xlu0 %v7266_v19, %s6376_s27 }
 0x282   : > { %1971 = vrot.lane.b32.xlu1 %v7272_v5, %s6376_s27 }
 0x284   : > { %1985 = vrot.lane.b32.xlu0 %v7270_v37, %s6380_s5 }
 0x286   : > { %1987 = vrot.lane.b32.xlu1 %v7276_v28, %s6380_s5 }
 0x288   : > { %1997 = vrot.lane.b32.xlu0 %v7270_v37, %s6378_s29 }
 0x28a   : > { %1999 = vrot.lane.b32.xlu1 %v7276_v28, %s6378_s29 }
 0x28c   : > { %2009 = vrot.lane.b32.xlu0 %v7270_v37, %s6379_s30 }
 0x28e   : > { %2011 = vrot.lane.b32.xlu1 %v7276_v28, %s6379_s30 }
 0x290   : > { %2021 = vrot.lane.b32.xlu0 %v7270_v37, %s6375_s26 }
 0x292   : > { %2023 = vrot.lane.b32.xlu1 %v7276_v28, %s6375_s26 }
 0x294   : > { %2033 = vrot.lane.b32.xlu0 %v7270_v37, %s6377_s28 }
 0x296   : > { %2035 = vrot.lane.b32.xlu1 %v7276_v28, %s6377_s28 }
 0x298   : > { %2045 = vrot.lane.b32.xlu0 %v7270_v37, %s6374_s25 }
 0x29a   : > { %2047 = vrot.lane.b32.xlu1 %v7276_v28, %s6374_s25 }
 0x29c   : > { %2057 = vrot.lane.b32.xlu0 %v7270_v37, %s6376_s27 }
 0x29e   : > { %2059 = vrot.lane.b32.xlu1 %v7276_v28, %s6376_s27 }
 0x2a0   : > { %1901 = vrot.lane.b32.xlu0 %v7282_v50, %s6380_s5 }
 0x2a2   : > { %1903 = vrot.lane.b32.xlu1 %v7288_v20, %s6380_s5 }
 0x2a4   : > { %1913 = vrot.lane.b32.xlu0 %v7282_v50, %s6378_s29 }
 0x2a6   : > { %1915 = vrot.lane.b32.xlu1 %v7288_v20, %s6378_s29 }
 0x2a8   : > { %1925 = vrot.lane.b32.xlu0 %v7282_v50, %s6379_s30 }
 0x2aa   : > { %1927 = vrot.lane.b32.xlu1 %v7288_v20, %s6379_s30 }
 0x2ac   : > { %1937 = vrot.lane.b32.xlu0 %v7282_v50, %s6375_s26 }
 0x2ae   : > { %1939 = vrot.lane.b32.xlu1 %v7288_v20, %s6375_s26 }
 0x2b0   : > { %1949 = vrot.lane.b32.xlu0 %v7282_v50, %s6377_s28 }
 0x2b2   : > { %1951 = vrot.lane.b32.xlu1 %v7288_v20, %s6377_s28 }
 0x2b4   : > { %1961 = vrot.lane.b32.xlu0 %v7282_v50, %s6374_s25 }
 0x2b6   : > { %1963 = vrot.lane.b32.xlu1 %v7288_v20, %s6374_s25 }
 0x2b8   : > { %1973 = vrot.lane.b32.xlu0 %v7282_v50, %s6376_s27 }
 0x2ba   : > { %1975 = vrot.lane.b32.xlu1 %v7288_v20, %s6376_s27 }
 0x2bc   : > { %1989 = vrot.lane.b32.xlu0 %v7286_v31, %s6380_s5 }
 0x2be   : > { %1991 = vrot.lane.b32.xlu1 %v7292_v1, %s6380_s5 }
 0x2c0   : > { %2001 = vrot.lane.b32.xlu0 %v7286_v31, %s6378_s29 }
 0x2c2   : > { %2003 = vrot.lane.b32.xlu1 %v7292_v1, %s6378_s29 }
 0x2c4   : > { %2013 = vrot.lane.b32.xlu0 %v7286_v31, %s6379_s30 }
 0x2c6   : > { %2015 = vrot.lane.b32.xlu1 %v7292_v1, %s6379_s30 }
 0x2c8   : > { %2025 = vrot.lane.b32.xlu0 %v7286_v31, %s6375_s26 }
 0x2ca   : > { %2027 = vrot.lane.b32.xlu1 %v7292_v1, %s6375_s26 }
 0x2cc   : > { %2037 = vrot.lane.b32.xlu0 %v7286_v31, %s6377_s28 }
 0x2ce   : > { %2039 = vrot.lane.b32.xlu1 %v7292_v1, %s6377_s28 }
 0x2d0   : > { %2049 = vrot.lane.b32.xlu0 %v7286_v31, %s6374_s25 }
 0x2d2   : > { %2051 = vrot.lane.b32.xlu1 %v7292_v1, %s6374_s25 }
 0x2d4   : > { %2061 = vrot.lane.b32.xlu0 %v7286_v31, %s6376_s27 }
 0x2d6   : > { %2063 = vrot.lane.b32.xlu1 %v7292_v1, %s6376_s27 }
 0x2da   : > { %v1898_v27 = vpop.permute.xlu0 %1897 }
 0x2dc   : > { %v1900_v26 = vpop.permute.xlu1 %1899 }
 0x2de   : > { %v1910_v51 = vpop.permute.xlu0 %1909 }
 0x2df   : > { %v2069_v22 = vcombine.low %v7266_v19, %v1910_v51  ;;  %v2070_v59 = vcombine.high %v7266_v19, %v1910_v51 }
 0x2e0   : > { %v1912_v17 = vpop.permute.xlu1 %1911 }
 0x2e1   : > { %v2341_v43 = vcombine.low %v7272_v5, %v1912_v17  ;;  %v2342_v7 = vcombine.high %v7272_v5, %v1912_v17  ;;  %v7399_v6 = vrot.slane %v2069_v22, %v6757_v57  ;;  %v7402_v4 = vrot.slane %v2070_v59, %v6757_v57 }
 0x2e2   : > { %v1922_v47 = vpop.permute.xlu0 %1921 }
 0x2e3   : > { %v2085_v29 = vcombine.low %v1898_v27, %v1922_v47  ;;  %v2086_v46 = vcombine.high %v1898_v27, %v1922_v47  ;;  %v7419_v41 = vrot.slane %v2341_v43, %v6757_v57  ;;  %v7422_v48 = vrot.slane %v2342_v7, %v6757_v57 }
 0x2e4   : > { %v1924_v44 = vpop.permute.xlu1 %1923 }
 0x2e5   : > { %v7405_v38 = vrot.slane %v2085_v29, %v6757_v57  ;;  %v7408_v13 = vrot.slane %v2086_v46, %v6757_v57  ;;  %v2357_v62 = vcombine.low %v1900_v26, %v1924_v44  ;;  %v2358_v35 = vcombine.high %v1900_v26, %v1924_v44 }
 0x2e6   : > { %v1934_v53 = vpop.permute.xlu0 %1933 }
 0x2e7   : > { %v2133_v18 = vcombine.low %v7399_v6, %v7405_v38  ;;  %v2134_v21 = vcombine.high %v7399_v6, %v7405_v38  ;;  %v2149_v63 = vcombine.low %v7402_v4, %v7408_v13  ;;  %v2150_v24 = vcombine.high %v7402_v4, %v7408_v13 }
 0x2e8   : > { %v7425_v40 = vrot.slane %v2357_v62, %v6757_v57  ;;  %v7428_v34 = vrot.slane %v2358_v35, %v6757_v57  ;;  %v1936_v52 = vpop.permute.xlu1 %1935 }
 0x2e9   : > { %v7544_v6 = vrot.slane %v2149_v63, %v6787_v32  ;;  %v7550_v38 = vrot.slane %v2150_v24, %v6787_v32 }
 0x2ea   : > { %v2405_v8 = vcombine.low %v7419_v41, %v7425_v40  ;;  %v2406_v42 = vcombine.high %v7419_v41, %v7425_v40  ;;  %v2421_v14 = vcombine.low %v7422_v48, %v7428_v34  ;;  %v2422_v3 = vcombine.high %v7422_v48, %v7428_v34  ;;  %v1946_v39 = vpop.permute.xlu0 %1945 }
 0x2ec   : > { %v1948_v25 = vpop.permute.xlu1 %1947  ;;  %v7578_v40 = vrot.slane %v2421_v14, %v6787_v32 }
 0x2ee   : > { %v1958_v61 = vpop.permute.xlu0 %1957 }
 0x2ef   : > { %v2101_v30 = vcombine.low %v1934_v53, %v1958_v61  ;;  %v2102_v12 = vcombine.high %v1934_v53, %v1958_v61 }
 0x2f0   : > { %v1960_v0 = vpop.permute.xlu1 %1959 }
 0x2f1   : > { %v2373_v56 = vcombine.low %v1936_v52, %v1960_v0  ;;  %v2374_v9 = vcombine.high %v1936_v52, %v1960_v0  ;;  %v7439_v55 = vrot.slane %v2101_v30, %v6757_v57  ;;  %v7442_v36 = vrot.slane %v2102_v12, %v6757_v57 }
 0x2f2   : > { %v1970_v23 = vpop.permute.xlu0 %1969 }
 0x2f3   : > { %v2117_v33 = vcombine.low %v1946_v39, %v1970_v23  ;;  %v2118_v54 = vcombine.high %v1946_v39, %v1970_v23  ;;  %v7459_v5 = vrot.slane %v2373_v56, %v6757_v57  ;;  %v7462_v27 = vrot.slane %v2374_v9, %v6757_v57 }
 0x2f4   : > { %v1972_v11 = vpop.permute.xlu1 %1971 }
 0x2f5   : > { %v7445_v49 = vrot.slane %v2117_v33, %v6757_v57  ;;  %v7448_v2 = vrot.slane %v2118_v54, %v6757_v57  ;;  %v2389_v15 = vcombine.low %v1948_v25, %v1972_v11  ;;  %v2390_v60 = vcombine.high %v1948_v25, %v1972_v11 }
 0x2f6   : > { %v1986_v58 = vpop.permute.xlu0 %1985  ;;  %v7526_v54 = vrot.slane %v2133_v18, %v6787_v32 }
 0x2f7   : > { %v2165_v45 = vcombine.low %v7439_v55, %v7445_v49  ;;  %v2166_v10 = vcombine.high %v7439_v55, %v7445_v49  ;;  %v2181_v16 = vcombine.low %v7442_v36, %v7448_v2  ;;  %v2182_v19 = vcombine.high %v7442_v36, %v7448_v2 }
 0x2f8   : > { %v7465_v26 = vrot.slane %v2389_v15, %v6757_v57  ;;  %v7468_v51 = vrot.slane %v2390_v60, %v6757_v57  ;;  %v1988_v22 = vpop.permute.xlu1 %1987 }
 0x2f9   : > { %v7612_v55 = vrot.slane %v2182_v19, %v6787_v32 }
 0x2fa   : > { %v2437_v59 = vcombine.low %v7459_v5, %v7465_v26  ;;  %v2438_v17 = vcombine.high %v7459_v5, %v7465_v26  ;;  %v2453_v43 = vcombine.low %v7462_v27, %v7468_v51  ;;  %v1998_v47 = vpop.permute.xlu0 %1997  ;;  %v8950_v2 = vcombine.high %v7462_v27, %v7468_v51 }
 0x2fb   : > { %v2205_v29 = vcombine.low %v7270_v37, %v1998_v47  ;;  %v2206_v46 = vcombine.high %v7270_v37, %v1998_v47 }
 0x2fc   : > { %v2000_v44 = vpop.permute.xlu1 %1999  ;;  %v7618_v49 = vrot.slane %v2437_v59, %v6787_v32  ;;  %v7631_v36 = vrot.slane %v2453_v43, %v6787_v32 }
 0x2fd   : > { %v2477_v62 = vcombine.low %v7276_v28, %v2000_v44  ;;  %v2478_v35 = vcombine.high %v7276_v28, %v2000_v44  ;;  %v7483_v25 = vrot.slane %v2205_v29, %v6757_v57  ;;  %v7486_v61 = vrot.slane %v2206_v46, %v6757_v57 }
 0x2fe   : > { %v2010_v53 = vpop.permute.xlu0 %2009 }
 0x2ff   : > { %v2221_v52 = vcombine.low %v1986_v58, %v2010_v53  ;;  %v2222_v39 = vcombine.high %v1986_v58, %v2010_v53  ;;  %v7503_v11 = vrot.slane %v2477_v62, %v6757_v57  ;;  %v7506_v15 = vrot.slane %v2478_v35, %v6757_v57 }
 0x300   : > { %v2012_v30 = vpop.permute.xlu1 %2011 }
 0x301   : > { %v7489_v12 = vrot.slane %v2221_v52, %v6757_v57  ;;  %v7492_v37 = vrot.slane %v2222_v39, %v6757_v57  ;;  %v2493_v0 = vcombine.low %v1988_v22, %v2012_v30  ;;  %v2494_v56 = vcombine.high %v1988_v22, %v2012_v30 }
 0x302   : > { %v2022_v9 = vpop.permute.xlu0 %2021 }
 0x303   : > { %v7509_v60 = vrot.slane %v2493_v0, %v6757_v57  ;;  %v7512_v58 = vrot.slane %v2494_v56, %v6757_v57  ;;  %v8951_v5 = vcombine.low %v7483_v25, %v7489_v12  ;;  %v8953_v27 = vcombine.low %v7486_v61, %v7492_v37 }
 0x304   : > { %v2024_v22 = vpop.permute.xlu1 %2023 }
 0x305   : > { %v2541_v47 = vcombine.low %v7503_v11, %v7509_v60  ;;  %v2542_v29 = vcombine.high %v7503_v11, %v7509_v60  ;;  %v2557_v46 = vcombine.low %v7506_v15, %v7512_v58  ;;  %v2558_v44 = vcombine.high %v7506_v15, %v7512_v58 }
 0x306   : > { %v2034_v62 = vpop.permute.xlu0 %2033  ;;  %v7532_v15 = vrot.slane %v2134_v21, %v6787_v32  ;;  %v7556_v21 = vrot.slane %v2405_v8, %v6787_v32  ;;  %v7644_v26 = vrot.slane %v8951_v5, %v6787_v32  ;;  %v7656_v51 = vrot.slane %v8953_v27, %v6787_v32 }
 0x308   : > { %v2036_v35 = vpop.permute.xlu1 %2035 }
 0x30a   : > { %v2046_v53 = vpop.permute.xlu0 %2045 }
 0x30b   : > { %v2238_v52 = vcombine.high %v2022_v9, %v2046_v53  ;;  %v2237_v39 = vcombine.low %v2022_v9, %v2046_v53 }
 0x30c   : > { %v2048_v30 = vpop.permute.xlu1 %2047 }
 0x30d   : > { %v2510_v0 = vcombine.high %v2024_v22, %v2048_v30  ;;  %v2245_v58 = vrot.slane %v2237_v39, %v6757_v57  ;;  %v7536_v9 = vrot.slane %v2238_v52, %v6757_v57  ;;  %v2509_v53 = vcombine.low %v2024_v22, %v2048_v30 }
 0x30e   : > { %v2058_v56 = vpop.permute.xlu0 %2057  ;;  %v8954_v30 = vcombine.high %v7486_v61, %v7492_v37 }
 0x30f   : > { %v2253_v11 = vcombine.low %v2034_v62, %v2058_v56  ;;  %v2254_v60 = vcombine.high %v2034_v62, %v2058_v56  ;;  %v2517_v13 = vrot.slane %v2509_v53, %v6757_v57  ;;  %v7568_v24 = vrot.slane %v2510_v0, %v6757_v57 }
 0x310   : > { %v2060_v33 = vpop.permute.xlu1 %2059  ;;  %v7663_v0 = vrot.slane %v8954_v30, %v6787_v32  ;;  %v7666_v56 = vrot.slane %v2541_v47, %v6787_v32 }
 0x311   : > { %v2261_v23 = vrot.slane %v2253_v11, %v6757_v57  ;;  %v2268_v18 = vrot.slane %v2254_v60, %v6757_v57  ;;  %v2525_v28 = vcombine.low %v2036_v35, %v2060_v33  ;;  %v2526_v7 = vcombine.high %v2036_v35, %v2060_v33 }
 0x312   : > { %v7562_v33 = vrot.slane %v2406_v42, %v6787_v32  ;;  %v1902_v63 = vpop.permute.xlu0 %1901  ;;  %v7584_v42 = vrot.slane %v2422_v3, %v6787_v32  ;;  %v7606_v3 = vrot.slane %v2181_v16, %v6787_v32  ;;  %v7637_v16 = vrot.slane %v8950_v2, %v6787_v32 }
 0x313   : > { %v2301_v22 = vcombine.low %v2245_v58, %v2261_v23  ;;  %v2302_v62 = vcombine.high %v2245_v58, %v2261_v23  ;;  %v2317_v35 = vcombine.low %v7536_v9, %v2268_v18  ;;  %v2318_v4 = vcombine.high %v7536_v9, %v2268_v18 }
 0x314   : > { %v2533_v8 = vrot.slane %v2525_v28, %v6757_v57  ;;  %v7572_v52 = vrot.slane %v2526_v7, %v6757_v57  ;;  %v1904_v41 = vpop.permute.xlu1 %1903  ;;  %v7590_v28 = vrot.slane %v2165_v45, %v6787_v32  ;;  %v7596_v7 = vrot.slane %v2166_v10, %v6787_v32 }
 0x315   : > { %v7625_v10 = vrot.slane %v2438_v17, %v6787_v32  ;;  %v8952_v17 = vcombine.high %v7483_v25, %v7489_v12  ;;  %v7669_v25 = vrot.slane %v2542_v29, %v6787_v32  ;;  %v7672_v12 = vrot.slane %v2557_v46, %v6787_v32 }
 0x316   : > { %v2573_v14 = vcombine.low %v2517_v13, %v2533_v8  ;;  %v2574_v23 = vcombine.high %v2517_v13, %v2533_v8  ;;  %v2589_v39 = vcombine.low %v7568_v24, %v7572_v52  ;;  %v2590_v48 = vcombine.high %v7568_v24, %v7572_v52  ;;  %v1914_v34 = vpop.permute.xlu0 %1913 }
 0x317   : > { %v2614_v45 = vcombine.high %v7282_v50, %v1914_v34  ;;  %v2613_v19 = vcombine.low %v7282_v50, %v1914_v34  ;;  %v7650_v43 = vrot.slane %v8952_v17, %v6787_v32  ;;  %v7675_v60 = vrot.slane %v2558_v44, %v6787_v32 }
 0x318   : > { %v1916_v59 = vpop.permute.xlu1 %1915  ;;  %v7678_v58 = vrot.slane %v2301_v22, %v6787_v32  ;;  %v7681_v37 = vrot.slane %v2302_v62, %v6787_v32  ;;  %v7689_v22 = vrot.slane %v2317_v35, %v6787_v32  ;;  %v7695_v62 = vrot.slane %v2573_v14, %v6787_v32 }
 0x319   : > { %v2886_v50 = vcombine.high %v7288_v20, %v1916_v59  ;;  %v2621_v47 = vrot.slane %v2613_v19, %v6757_v57  ;;  %v2628_v29 = vrot.slane %v2614_v45, %v6757_v57  ;;  %v2885_v53 = vcombine.low %v7288_v20, %v1916_v59 }
 0x31a   : > { %v1926_v11 = vpop.permute.xlu0 %1925  ;;  %v7698_v34 = vrot.slane %v2574_v23, %v6787_v32 }
 0x31b   : > { %v2629_v9 = vcombine.low %v1902_v63, %v1926_v11  ;;  %v2630_v61 = vcombine.high %v1902_v63, %v1926_v11  ;;  %v7692_v63 = vrot.slane %v2318_v4, %v6787_v32  ;;  %v2900_v35 = vrot.slane %v2886_v50, %v6757_v57 }
 0x31c   : > { %v1928_v46 = vpop.permute.xlu1 %1927 }
 0x31d   : > { %v2637_v18 = vrot.slane %v2629_v9, %v6757_v57  ;;  %v2644_v44 = vrot.slane %v2630_v61, %v6757_v57  ;;  %v2901_v13 = vcombine.low %v1904_v41, %v1928_v46  ;;  %v2902_v8 = vcombine.high %v1904_v41, %v1928_v46 }
 0x31e   : > { %v7700_v20 = vpop.permute.xlu0 %1937  ;;  %v2893_v41 = vrot.slane %v2885_v53, %v6757_v57 }
 0x31f   : > { %v2677_v45 = vcombine.low %v2621_v47, %v2637_v18  ;;  %v2678_v2 = vcombine.high %v2621_v47, %v2637_v18  ;;  %v2693_v19 = vcombine.low %v2628_v29, %v2644_v44  ;;  %v2694_v59 = vcombine.high %v2628_v29, %v2644_v44 }
 0x320   : > { %v2909_v5 = vrot.slane %v2901_v13, %v6757_v57  ;;  %v2916_v4 = vrot.slane %v2902_v8, %v6757_v57  ;;  %v7706_v17 = vpop.permute.xlu1 %1939 }
 0x321   : > { %v2685_v14 = vrot.slane %v2677_v45, %v6787_v32  ;;  %v2692_v23 = vrot.slane %v2678_v2, %v6787_v32  ;;  %v2701_v27 = vrot.slane %v2693_v19, %v6787_v32  ;;  %v2708_v30 = vrot.slane %v2694_v59, %v6787_v32 }
 0x322   : > { %v2949_v11 = vcombine.low %v2893_v41, %v2909_v5  ;;  %v2950_v9 = vcombine.high %v2893_v41, %v2909_v5  ;;  %v2965_v61 = vcombine.low %v2900_v35, %v2916_v4  ;;  %v2966_v47 = vcombine.high %v2900_v35, %v2916_v4  ;;  %v7712_v29 = vpop.permute.xlu0 %1949 }
 0x323   : > { %v5994_v50 = vcombine.low %v7526_v54, %v2685_v14  ;;  %v6002_v53 = vcombine.high %v7526_v54, %v2685_v14  ;;  %v6010_v46 = vcombine.low %v7532_v15, %v2692_v23  ;;  %v6018_v18 = vcombine.high %v7532_v15, %v2692_v23 }
 0x324   : > { %v6026_v44 = vcombine.low %v7544_v6, %v2701_v27  ;;  %v6034_v13 = vcombine.high %v7544_v6, %v2701_v27  ;;  %v6042_v8 = vcombine.low %v7550_v38, %v2708_v30  ;;  %v6050_v45 = vcombine.high %v7550_v38, %v2708_v30  ;;  %v7722_v2 = vpop.permute.xlu1 %1951 }
 0x325   : > { %v7728_v19 = vrot.slane %v2589_v39, %v6787_v32  ;;  %v7734_v54 = vrot.slane %v2590_v48, %v6787_v32  ;;  %v3165_v15 = vrot.slane %v5994_v50, %v6757_v57  ;;  %v3301_v6 = vrot.slane %v6002_v53, %v6757_v57 }
 0x326   : > { %v3437_v38 = vrot.slane %v6010_v46, %v6757_v57  ;;  %v3573_v59 = vrot.slane %v6018_v18, %v6757_v57  ;;  %v3709_v41 = vrot.slane %v6026_v44, %v6757_v57  ;;  %v3845_v35 = vrot.slane %v6034_v13, %v6757_v57  ;;  %v7742_v39 = vpop.permute.xlu0 %1961 }
 0x327   : > { %8955 = vst [vmem:[#allocation2_spill] sm:$0xff] %v7728_v19  ;;  %8956 = vst [vmem:[#allocation3_spill] sm:$0xff] %v7734_v54  ;;  %v2957_v5 = vrot.slane %v2949_v11, %v6787_v32  ;;  %v2964_v24 = vrot.slane %v2950_v9, %v6787_v32  ;;  %v2973_v52 = vrot.slane %v2965_v61, %v6787_v32 }
 0x328   : > { %v2980_v48 = vrot.slane %v2966_v47, %v6787_v32  ;;  %v3981_v4 = vrot.slane %v6042_v8, %v6757_v57  ;;  %v4117_v14 = vrot.slane %v6050_v45, %v6757_v57  ;;  %v2645_v23 = vcombine.low %v7700_v20, %v7742_v39  ;;  %v7754_v30 = vpop.permute.xlu1 %1963 }
 0x329   : > { %v2646_v27 = vcombine.high %v7700_v20, %v7742_v39  ;;  %v5996_v11 = vcombine.low %v7556_v21, %v2957_v5  ;;  %v6004_v9 = vcombine.high %v7556_v21, %v2957_v5  ;;  %v6012_v61 = vcombine.low %v7562_v33, %v2964_v24 }
 0x32a   : > { %v6020_v47 = vcombine.high %v7562_v33, %v2964_v24  ;;  %v6028_v50 = vcombine.low %v7578_v40, %v2973_v52  ;;  %v6036_v53 = vcombine.high %v7578_v40, %v2973_v52  ;;  %v6044_v46 = vcombine.low %v7584_v42, %v2980_v48  ;;  %v1974_v44 = vpop.permute.xlu0 %1973 }
 0x32b   : > { %v6052_v18 = vcombine.high %v7584_v42, %v2980_v48  ;;  %v3181_v20 = vrot.slane %v5996_v11, %v6757_v57  ;;  %v3317_v13 = vrot.slane %v6004_v9, %v6757_v57  ;;  %v3453_v8 = vrot.slane %v6012_v61, %v6757_v57 }
 0x32c   : > { %v3589_v21 = vrot.slane %v6020_v47, %v6757_v57  ;;  %v3725_v45 = vrot.slane %v6028_v50, %v6757_v57  ;;  %v3861_v33 = vrot.slane %v6036_v53, %v6757_v57  ;;  %v3997_v39 = vrot.slane %v6044_v46, %v6757_v57  ;;  %v1976_v5 = vpop.permute.xlu1 %1975 }
 0x32d   : > { %v4133_v40 = vrot.slane %v6052_v18, %v6757_v57  ;;  %v3189_v24 = vcombine.low %v3165_v15, %v3181_v20  ;;  %v3190_v42 = vcombine.high %v3165_v15, %v3181_v20  ;;  %v3325_v52 = vcombine.low %v3301_v6, %v3317_v13 }
 0x32e   : > { %v3326_v48 = vcombine.high %v3301_v6, %v3317_v13  ;;  %v3461_v11 = vcombine.low %v3437_v38, %v3453_v8  ;;  %v3462_v54 = vcombine.high %v3437_v38, %v3453_v8  ;;  %v3597_v9 = vcombine.low %v3573_v59, %v3589_v21  ;;  %v7772_v61 = vpop.permute.xlu0 %1989 }
 0x32f   : > { %v3598_v19 = vcombine.high %v3573_v59, %v3589_v21  ;;  %v7775_v47 = vrot.slane %v3189_v24, %v6787_v32  ;;  %v7778_v50 = vrot.slane %v3190_v42, %v6787_v32  ;;  %v7781_v53 = vrot.slane %v3325_v52, %v6787_v32 }
 0x330   : > { %v7784_v46 = vrot.slane %v3326_v48, %v6787_v32  ;;  %v7787_v15 = vrot.slane %v3461_v11, %v6787_v32  ;;  %v7790_v6 = vrot.slane %v3462_v54, %v6787_v32  ;;  %v7793_v38 = vrot.slane %v3597_v9, %v6787_v32  ;;  %v7798_v18 = vpop.permute.xlu1 %1991 }
 0x331   : > { %8957 = vst [vmem:[#allocation4_spill] sm:$0xff] %v7775_v47  ;;  %8958 = vst [vmem:[#allocation5_spill] sm:$0xff] %v7778_v50  ;;  %v7796_v59 = vrot.slane %v3598_v19, %v6787_v32  ;;  %v3733_v20 = vcombine.low %v3709_v41, %v3725_v45  ;;  %v3734_v13 = vcombine.high %v3709_v41, %v3725_v45 }
 0x332   : > { %8959 = vst [vmem:[#allocation6_spill] sm:$0xff] %v7781_v53  ;;  %8960 = vst [vmem:[#allocation7_spill] sm:$0xff] %v7784_v46  ;;  %v3869_v8 = vcombine.low %v3845_v35, %v3861_v33  ;;  %v3870_v21 = vcombine.high %v3845_v35, %v3861_v33  ;;  %v4005_v24 = vcombine.low %v3981_v4, %v3997_v39  ;;  %v2002_v45 = vpop.permute.xlu0 %2001 }
 0x333   : > { %v4006_v42 = vcombine.high %v3981_v4, %v3997_v39  ;;  %v4141_v52 = vcombine.low %v4117_v14, %v4133_v40  ;;  %v4142_v48 = vcombine.high %v4117_v14, %v4133_v40  ;;  %v7801_v11 = vrot.slane %v3733_v20, %v6787_v32 }
 0x334   : > { %v7804_v54 = vrot.slane %v3734_v13, %v6787_v32  ;;  %v7807_v9 = vrot.slane %v3869_v8, %v6787_v32  ;;  %v7810_v19 = vrot.slane %v3870_v21, %v6787_v32  ;;  %v7813_v41 = vrot.slane %v4005_v24, %v6787_v32  ;;  %v7830_v13 = vpop.permute.xlu1 %2003 }
 0x335   : > { %8961 = vst [vmem:[#allocation8_spill] sm:$0xff] %v7801_v11  ;;  %v7816_v35 = vrot.slane %v4006_v42, %v6787_v32  ;;  %v7819_v4 = vrot.slane %v4141_v52, %v6787_v32  ;;  %v7822_v14 = vrot.slane %v4142_v48, %v6787_v32  ;;  %v2653_v33 = vrot.slane %v2645_v23, %v6757_v57 }
 0x336   : > { %8962 = vst [vmem:[#allocation9_spill] sm:$0xff] %v7813_v41  ;;  %v2660_v39 = vrot.slane %v2646_v27, %v6757_v57  ;;  %v2917_v40 = vcombine.low %v7706_v17, %v7754_v30  ;;  %v2918_v20 = vcombine.high %v7706_v17, %v7754_v30  ;;  %v2661_v8 = vcombine.low %v7712_v29, %v1974_v44 }
 0x337   : > { %8963 = vst [vmem:[#allocation10_spill] sm:$0xff] %v7816_v35  ;;  %8964 = vst [vmem:[#allocation11_spill] sm:$0xff] %v7819_v4  ;;  %v2662_v21 = vcombine.high %v7712_v29, %v1974_v44  ;;  %v2933_v24 = vcombine.low %v7722_v2, %v1976_v5  ;;  %v2934_v42 = vcombine.high %v7722_v2, %v1976_v5 }
 0x338   : > { %8965 = vst [vmem:[#allocation12_spill] sm:$0xff] %v7822_v14  ;;  %v2925_v23 = vrot.slane %v2917_v40, %v6757_v57  ;;  %v2932_v27 = vrot.slane %v2918_v20, %v6757_v57  ;;  %v2749_v52 = vcombine.low %v7286_v31, %v2002_v45  ;;  %v2750_v48 = vcombine.high %v7286_v31, %v2002_v45  ;;  %v7856_v4 = vpop.permute.xlu1 %2015 }
 0x339   : > { %v2669_v17 = vrot.slane %v2661_v8, %v6757_v57  ;;  %v2676_v30 = vrot.slane %v2662_v21, %v6757_v57  ;;  %v2941_v53 = vrot.slane %v2933_v24, %v6757_v57  ;;  %v2948_v29 = vrot.slane %v2934_v42, %v6757_v57  ;;  %v7854_v21 = vpop.permute.xlu0 %2013 }
 0x33a   : > { %v7845_v44 = vrot.slane %v2749_v52, %v6757_v57  ;;  %v7848_v2 = vrot.slane %v2750_v48, %v6757_v57 }
 0x33b   : > { %v2709_v45 = vcombine.low %v2653_v33, %v2669_v17  ;;  %v2710_v40 = vcombine.high %v2653_v33, %v2669_v17  ;;  %v2725_v20 = vcombine.low %v2660_v39, %v2676_v30  ;;  %v2726_v8 = vcombine.high %v2660_v39, %v2676_v30 }
 0x33c   : > { %v2981_v24 = vcombine.low %v2925_v23, %v2941_v53  ;;  %v2982_v42 = vcombine.high %v2925_v23, %v2941_v53  ;;  %v2997_v46 = vcombine.low %v2932_v27, %v2948_v29  ;;  %v2998_v52 = vcombine.high %v2932_v27, %v2948_v29 }
 0x33d   : > { %v2717_v48 = vrot.slane %v2709_v45, %v6787_v32  ;;  %v2724_v14 = vrot.slane %v2710_v40, %v6787_v32  ;;  %v2733_v5 = vrot.slane %v2725_v20, %v6787_v32  ;;  %v2740_v31 = vrot.slane %v2726_v8, %v6787_v32 }
 0x33e   : > { %v2989_v33 = vrot.slane %v2981_v24, %v6787_v32  ;;  %v2996_v39 = vrot.slane %v2982_v42, %v6787_v32  ;;  %v3005_v17 = vrot.slane %v2997_v46, %v6787_v32  ;;  %v3012_v53 = vrot.slane %v2998_v52, %v6787_v32  ;;  %v7878_v52 = vpop.permute.xlu0 %2025 }
 0x33f   : > { %v5995_v23 = vcombine.low %v7590_v28, %v2717_v48  ;;  %v6003_v27 = vcombine.high %v7590_v28, %v2717_v48  ;;  %v6011_v30 = vcombine.low %v7596_v7, %v2724_v14  ;;  %v6019_v29 = vcombine.high %v7596_v7, %v2724_v14  ;;  %v7884_v48 = vpop.permute.xlu1 %2027 }
 0x340   : > { %v6027_v45 = vcombine.low %v7606_v3, %v2733_v5  ;;  %v6035_v40 = vcombine.high %v7606_v3, %v2733_v5  ;;  %v6043_v20 = vcombine.low %v7612_v55, %v2740_v31  ;;  %v6051_v8 = vcombine.high %v7612_v55, %v2740_v31 }
 0x341   : > { %v3172_v46 = vrot.slane %v5995_v23, %v6757_v57  ;;  %v3308_v24 = vrot.slane %v6003_v27, %v6757_v57  ;;  %v3444_v42 = vrot.slane %v6011_v30, %v6757_v57  ;;  %v3580_v28 = vrot.slane %v6019_v29, %v6757_v57 }
 0x342   : > { %v3716_v7 = vrot.slane %v6027_v45, %v6757_v57  ;;  %v3852_v14 = vrot.slane %v6035_v40, %v6757_v57  ;;  %v3988_v3 = vrot.slane %v6043_v20, %v6757_v57  ;;  %v4124_v5 = vrot.slane %v6051_v8, %v6757_v57 }
 0x343   : > { %v5997_v55 = vcombine.low %v7618_v49, %v2989_v33  ;;  %v6005_v31 = vcombine.high %v7618_v49, %v2989_v33  ;;  %v6013_v23 = vcombine.low %v7625_v10, %v2996_v39  ;;  %v6021_v27 = vcombine.high %v7625_v10, %v2996_v39  ;;  %v7904_v11 = vpop.permute.xlu1 %2039 }
 0x344   : > { %v6029_v30 = vcombine.low %v7631_v36, %v3005_v17  ;;  %v6037_v29 = vcombine.high %v7631_v36, %v3005_v17  ;;  %v6045_v45 = vcombine.low %v7637_v16, %v3012_v53  ;;  %v6053_v40 = vcombine.high %v7637_v16, %v3012_v53  ;;  %v7902_v53 = vpop.permute.xlu0 %2037 }
 0x345   : > { %v3188_v20 = vrot.slane %v5997_v55, %v6757_v57  ;;  %v3324_v8 = vrot.slane %v6005_v31, %v6757_v57  ;;  %v3460_v47 = vrot.slane %v6013_v23, %v6757_v57  ;;  %v3596_v49 = vrot.slane %v6021_v27, %v6757_v57 }
 0x346   : > { %v3732_v33 = vrot.slane %v6029_v30, %v6757_v57  ;;  %v3868_v10 = vrot.slane %v6037_v29, %v6757_v57  ;;  %v4004_v39 = vrot.slane %v6045_v45, %v6757_v57  ;;  %v4140_v36 = vrot.slane %v6053_v40, %v6757_v57 }
 0x347   : > { %v3205_v17 = vcombine.low %v3172_v46, %v3188_v20  ;;  %v3206_v50 = vcombine.high %v3172_v46, %v3188_v20  ;;  %v3341_v41 = vcombine.low %v3308_v24, %v3324_v8  ;;  %v3342_v16 = vcombine.high %v3308_v24, %v3324_v8 }
 0x348   : > { %v3477_v55 = vcombine.low %v3444_v42, %v3460_v47  ;;  %v3478_v31 = vcombine.high %v3444_v42, %v3460_v47  ;;  %v3613_v35 = vcombine.low %v3580_v28, %v3596_v49  ;;  %v3614_v23 = vcombine.high %v3580_v28, %v3596_v49 }
 0x349   : > { %v7907_v27 = vrot.slane %v3205_v17, %v6787_v32  ;;  %v7910_v30 = vrot.slane %v3206_v50, %v6787_v32  ;;  %v7913_v29 = vrot.slane %v3341_v41, %v6787_v32  ;;  %v7916_v46 = vrot.slane %v3342_v16, %v6787_v32 }
 0x34a   : > { %v7919_v24 = vrot.slane %v3477_v55, %v6787_v32  ;;  %v7922_v47 = vrot.slane %v3478_v31, %v6787_v32  ;;  %v7925_v42 = vrot.slane %v3613_v35, %v6787_v32  ;;  %v7928_v28 = vrot.slane %v3614_v23, %v6787_v32  ;;  %v2050_v23 = vpop.permute.xlu0 %2049 }
 0x34b   : > { %8966 = vst [vmem:[#allocation13_spill] sm:$0xff] %v7913_v29  ;;  %8967 = vst [vmem:[#allocation14_spill] sm:$0xff] %v7916_v46  ;;  %v3749_v50 = vcombine.low %v3716_v7, %v3732_v33  ;;  %v3750_v45 = vcombine.high %v3716_v7, %v3732_v33  ;;  %v3885_v40 = vcombine.low %v3852_v14, %v3868_v10  ;;  %v7954_v33 = vpop.permute.xlu1 %2051 }
 0x34c   : > { %v3886_v41 = vcombine.high %v3852_v14, %v3868_v10  ;;  %v4021_v20 = vcombine.low %v3988_v3, %v4004_v39  ;;  %v4022_v8 = vcombine.high %v3988_v3, %v4004_v39  ;;  %v4157_v49 = vcombine.low %v4124_v5, %v4140_v36 }
 0x34d   : > { %v4158_v17 = vcombine.high %v4124_v5, %v4140_v36  ;;  %v7931_v16 = vrot.slane %v3749_v50, %v6787_v32  ;;  %v7934_v55 = vrot.slane %v3750_v45, %v6787_v32  ;;  %v7937_v35 = vrot.slane %v3885_v40, %v6787_v32 }
 0x34e   : > { %v7940_v31 = vrot.slane %v3886_v41, %v6787_v32  ;;  %v7943_v7 = vrot.slane %v4021_v20, %v6787_v32  ;;  %v7946_v14 = vrot.slane %v4022_v8, %v6787_v32  ;;  %v7949_v3 = vrot.slane %v4157_v49, %v6787_v32 }
 0x34f   : > { %v7952_v5 = vrot.slane %v4158_v17, %v6787_v32  ;;  %v8969_v10 = vcombine.low %v7292_v1, %v7830_v13  ;;  %v8970_v36 = vcombine.high %v7292_v1, %v7830_v13  ;;  %v2765_v45 = vcombine.low %v7772_v61, %v7854_v21 }
 0x350   : > { %8968 = vst [vmem:[#allocation15_spill] sm:$0xff] %v7949_v3  ;;  %v2766_v40 = vcombine.high %v7772_v61, %v7854_v21  ;;  %v3037_v41 = vcombine.low %v7798_v18, %v7856_v4  ;;  %v3038_v20 = vcombine.high %v7798_v18, %v7856_v4  ;;  %v2781_v8 = vcombine.low %v7878_v52, %v2050_v23 }
 0x351   : > { %v3029_v39 = vrot.slane %v8969_v10, %v6757_v57  ;;  %v3036_v50 = vrot.slane %v8970_v36, %v6757_v57  ;;  %v2782_v49 = vcombine.high %v7878_v52, %v2050_v23  ;;  %v2773_v17 = vrot.slane %v2765_v45, %v6757_v57 }
 0x352   : > { %v2780_v1 = vrot.slane %v2766_v40, %v6757_v57  ;;  %v3045_v21 = vrot.slane %v3037_v41, %v6757_v57  ;;  %v3052_v10 = vrot.slane %v3038_v20, %v6757_v57  ;;  %v7983_v18 = vrot.slane %v2781_v8, %v6757_v57 }
 0x353   : > { %v7986_v4 = vrot.slane %v2782_v49, %v6757_v57  ;;  %v2813_v52 = vcombine.low %v7845_v44, %v2773_v17  ;;  %v2814_v23 = vcombine.high %v7845_v44, %v2773_v17 }
 0x354   : > { %v2829_v36 = vcombine.low %v7848_v2, %v2780_v1  ;;  %v2830_v45 = vcombine.high %v7848_v2, %v2780_v1  ;;  %v3085_v40 = vcombine.low %v3029_v39, %v3045_v21  ;;  %v3086_v61 = vcombine.high %v3029_v39, %v3045_v21 }
 0x355   : > { %v3101_v13 = vcombine.low %v3036_v50, %v3052_v10  ;;  %v3102_v41 = vcombine.high %v3036_v50, %v3052_v10  ;;  %v2821_v20 = vrot.slane %v2813_v52, %v6787_v32  ;;  %v2828_v8 = vrot.slane %v2814_v23, %v6787_v32 }
 0x356   : > { %v2837_v29 = vrot.slane %v2829_v36, %v6787_v32  ;;  %v2844_v49 = vrot.slane %v2830_v45, %v6787_v32  ;;  %v3093_v46 = vrot.slane %v3085_v40, %v6787_v32  ;;  %v3100_v44 = vrot.slane %v3086_v61, %v6787_v32 }
 0x357   : > { %v3109_v17 = vrot.slane %v3101_v13, %v6787_v32  ;;  %v3116_v2 = vrot.slane %v3102_v41, %v6787_v32  ;;  %v5998_v39 = vcombine.low %v7644_v26, %v2821_v20  ;;  %v6006_v50 = vcombine.high %v7644_v26, %v2821_v20 }
 0x358   : > { %v6014_v1 = vcombine.low %v7650_v43, %v2828_v8  ;;  %v6022_v21 = vcombine.high %v7650_v43, %v2828_v8  ;;  %v6030_v10 = vcombine.low %v7656_v51, %v2837_v29  ;;  %v6038_v52 = vcombine.high %v7656_v51, %v2837_v29 }
 0x359   : > { %v6046_v23 = vcombine.low %v7663_v0, %v2844_v49  ;;  %v6054_v61 = vcombine.high %v7663_v0, %v2844_v49  ;;  %v3233_v13 = vrot.slane %v5998_v39, %v6757_v57  ;;  %v3369_v36 = vrot.slane %v6006_v50, %v6757_v57  ;;  %v6342_v0 = vld [vmem:[%s8895_s2] sm:$0xff]  }
 0x35a   : > { %v3505_v45 = vrot.slane %v6014_v1, %v6757_v57  ;;  %v3641_v26 = vrot.slane %v6022_v21, %v6757_v57  ;;  %v3777_v40 = vrot.slane %v6030_v10, %v6757_v57  ;;  %v3913_v43 = vrot.slane %v6038_v52, %v6757_v57  ;;  %6173 = vmatprep.subr.bf16.mxu1 %v6342_v0 }
 0x35b   : > { %v4049_v41 = vrot.slane %v6046_v23, %v6757_v57  ;;  %v4185_v51 = vrot.slane %v6054_v61, %v6757_v57  ;;  %v6000_v29 = vcombine.low %v7666_v56, %v3093_v46  ;;  %v6008_v20 = vcombine.high %v7666_v56, %v3093_v46  ;;  %6177 = vmatpush3.bf16.msra.mxu1 %v6342_v0 }
 0x35c   : > { %v6016_v8 = vcombine.low %v7669_v25, %v3100_v44  ;;  %v6024_v49 = vcombine.high %v7669_v25, %v3100_v44  ;;  %v6032_v39 = vcombine.low %v7672_v12, %v3109_v17  ;;  %v6040_v50 = vcombine.high %v7672_v12, %v3109_v17  ;;  %6149 = vmatprep.subr.bf16.mxu0 %v6342_v0 }
 0x35d   : > { %v6048_v1 = vcombine.low %v7675_v60, %v3116_v2  ;;  %v6056_v21 = vcombine.high %v7675_v60, %v3116_v2  ;;  %v3249_v10 = vrot.slane %v6000_v29, %v6757_v57  ;;  %v3385_v52 = vrot.slane %v6008_v20, %v6757_v57  ;;  %6150 = vmatpush3.bf16.msra.mxu0 %v6342_v0 }
 0x35e   : > { %v3521_v23 = vrot.slane %v6016_v8, %v6757_v57  ;;  %v3657_v56 = vrot.slane %v6024_v49, %v6757_v57  ;;  %v3793_v25 = vrot.slane %v6032_v39, %v6757_v57  ;;  %v3929_v46 = vrot.slane %v6040_v50, %v6757_v57 }
 0x35f   : > { %v4065_v12 = vrot.slane %v6048_v1, %v6757_v57  ;;  %v4201_v44 = vrot.slane %v6056_v21, %v6757_v57  ;;  %v3257_v60 = vcombine.low %v3233_v13, %v3249_v10  ;;  %v3258_v17 = vcombine.high %v3233_v13, %v3249_v10 }
 0x360   : > { %v3393_v2 = vcombine.low %v3369_v36, %v3385_v52  ;;  %v3394_v61 = vcombine.high %v3369_v36, %v3385_v52  ;;  %v3529_v29 = vcombine.low %v3505_v45, %v3521_v23  ;;  %v3530_v20 = vcombine.high %v3505_v45, %v3521_v23 }
 0x361   : > { %v3665_v8 = vcombine.low %v3641_v26, %v3657_v56  ;;  %v3666_v3 = vcombine.high %v3641_v26, %v3657_v56  ;;  %v8036_v49 = vrot.slane %v3257_v60, %v6787_v32  ;;  %v8039_v39 = vrot.slane %v3258_v17, %v6787_v32 }
 0x362   : > { %v8042_v50 = vrot.slane %v3393_v2, %v6787_v32  ;;  %v8045_v1 = vrot.slane %v3394_v61, %v6787_v32  ;;  %v8048_v13 = vrot.slane %v3529_v29, %v6787_v32  ;;  %v8051_v36 = vrot.slane %v3530_v20, %v6787_v32  ;;  %v2062_v2 = vpop.permute.xlu0 %2061 }
 0x363   : > { %v8054_v45 = vrot.slane %v3665_v8, %v6787_v32  ;;  %v8057_v26 = vrot.slane %v3666_v3, %v6787_v32  ;;  %v3801_v0 = vcombine.low %v3777_v40, %v3793_v25  ;;  %v3802_v21 = vcombine.high %v3777_v40, %v3793_v25  ;;  %v2064_v40 = vpop.permute.xlu1 %2063 }
 0x364   : > { %8971 = vst [vmem:[#allocation16_spill] sm:$0xff] %v8042_v50  ;;  %8972 = vst [vmem:[#allocation17_spill] sm:$0xff] %v8045_v1  ;;  %v3937_v10 = vcombine.low %v3913_v43, %v3929_v46  ;;  %v3938_v52 = vcombine.high %v3913_v43, %v3929_v46  ;;  %v4073_v23 = vcombine.low %v4049_v41, %v4065_v12 }
 0x365   : > { %v4074_v56 = vcombine.high %v4049_v41, %v4065_v12  ;;  %v4209_v60 = vcombine.low %v4185_v51, %v4201_v44  ;;  %v4210_v17 = vcombine.high %v4185_v51, %v4201_v44  ;;  %v8060_v61 = vrot.slane %v3801_v0, %v6787_v32 }
 0x366   : > { %v8063_v29 = vrot.slane %v3802_v21, %v6787_v32  ;;  %v8066_v20 = vrot.slane %v3937_v10, %v6787_v32  ;;  %v8069_v3 = vrot.slane %v3938_v52, %v6787_v32  ;;  %v8072_v43 = vrot.slane %v4073_v23, %v6787_v32 }
 0x367   : > { %v8075_v41 = vrot.slane %v4074_v56, %v6787_v32  ;;  %v8078_v51 = vrot.slane %v4209_v60, %v6787_v32  ;;  %v8081_v25 = vrot.slane %v4210_v17, %v6787_v32  ;;  %v8975_v46 = vcombine.low %v7884_v48, %v7954_v33 }
 0x368   : > { %v8976_v44 = vcombine.high %v7884_v48, %v7954_v33  ;;  %v2797_v0 = vcombine.low %v7902_v53, %v2062_v2  ;;  %v2798_v21 = vcombine.high %v7902_v53, %v2062_v2  ;;  %v3069_v10 = vcombine.low %v7904_v11, %v2064_v40 }
 0x369   : > { %8973 = vst [vmem:[#allocation18_spill] sm:$0xff] %v8078_v51  ;;  %8974 = vst [vmem:[#allocation19_spill] sm:$0xff] %v8081_v25  ;;  %v3061_v12 = vrot.slane %v8975_v46, %v6757_v57  ;;  %v3070_v52 = vcombine.high %v7904_v11, %v2064_v40  ;;  %v4653_v23 = vcombine.low %v7793_v38, %v7796_v59 }
 0x36a   : > { %v3068_v8 = vrot.slane %v8976_v44, %v6757_v57  ;;  %v6070_v56 = vcombine.high %v7793_v38, %v7796_v59  ;;  %v2805_v60 = vrot.slane %v2797_v0, %v6757_v57  ;;  %v2812_v17 = vrot.slane %v2798_v21, %v6757_v57 }
 0x36b   : > { %v3077_v33 = vrot.slane %v3069_v10, %v6757_v57  ;;  %v3084_v11 = vrot.slane %v3070_v52, %v6757_v57  ;;  %v8108_v2 = vrot.slane %v4653_v23, %v6757_v57 }
 0x36c   : > { %v8111_v40 = vrot.slane %v6070_v56, %v6757_v57  ;;  %v2845_v38 = vcombine.low %v7983_v18, %v2805_v60  ;;  %v2846_v59 = vcombine.high %v7983_v18, %v2805_v60  ;;  %v2861_v46 = vcombine.low %v7986_v4, %v2812_v17 }
 0x36d   : > { %v2862_v44 = vcombine.high %v7986_v4, %v2812_v17  ;;  %v3117_v0 = vcombine.low %v3061_v12, %v3077_v33  ;;  %v3118_v21 = vcombine.high %v3061_v12, %v3077_v33  ;;  %v3133_v53 = vcombine.low %v3068_v8, %v3084_v11 }
 0x36e   : > { %v3134_v10 = vcombine.high %v3068_v8, %v3084_v11  ;;  %v2853_v52 = vrot.slane %v2845_v38, %v6787_v32  ;;  %v2860_v23 = vrot.slane %v2846_v59, %v6787_v32  ;;  %v2869_v48 = vrot.slane %v2861_v46, %v6787_v32 }
 0x36f   : > { %v2876_v56 = vrot.slane %v2862_v44, %v6787_v32  ;;  %v3125_v50 = vrot.slane %v3117_v0, %v6787_v32  ;;  %v3132_v18 = vrot.slane %v3118_v21, %v6787_v32  ;;  %v3141_v60 = vrot.slane %v3133_v53, %v6787_v32 }
 0x370   : > { %v3148_v4 = vrot.slane %v3134_v10, %v6787_v32  ;;  %v5999_v12 = vcombine.low %v7678_v58, %v2853_v52  ;;  %v6007_v8 = vcombine.high %v7678_v58, %v2853_v52  ;;  %v6015_v17 = vcombine.low %v7681_v37, %v2860_v23 }
 0x371   : > { %v6023_v33 = vcombine.high %v7681_v37, %v2860_v23  ;;  %v6031_v11 = vcombine.low %v7689_v22, %v2869_v48  ;;  %v6039_v38 = vcombine.high %v7689_v22, %v2869_v48  ;;  %v6047_v59 = vcombine.low %v7692_v63, %v2876_v56 }
 0x372   : > { %v6055_v46 = vcombine.high %v7692_v63, %v2876_v56  ;;  %v3240_v53 = vrot.slane %v5999_v12, %v6757_v57  ;;  %v3376_v44 = vrot.slane %v6007_v8, %v6757_v57  ;;  %v3512_v0 = vrot.slane %v6015_v17, %v6757_v57  ;;  %v8977_v56 = vld [vmem:[#allocation2_spill] sm:$0xff]  ;;  %v8978_v17 = vld [vmem:[#allocation3_spill] sm:$0xff] }
 0x373   : > { %v3648_v58 = vrot.slane %v6023_v33, %v6757_v57  ;;  %v3784_v21 = vrot.slane %v6031_v11, %v6757_v57  ;;  %v3920_v37 = vrot.slane %v6039_v38, %v6757_v57  ;;  %v4056_v10 = vrot.slane %v6047_v59, %v6757_v57 }
 0x374   : > { %v4192_v22 = vrot.slane %v6055_v46, %v6757_v57  ;;  %v6001_v48 = vcombine.low %v7695_v62, %v3125_v50  ;;  %v6009_v63 = vcombine.high %v7695_v62, %v3125_v50  ;;  %v6017_v52 = vcombine.low %v7698_v34, %v3132_v18 }
 0x375   : > { %v6025_v23 = vcombine.high %v7698_v34, %v3132_v18  ;;  %v6033_v12 = vcombine.low %v8977_v56, %v3141_v60  ;;  %v6041_v8 = vcombine.high %v8977_v56, %v3141_v60  ;;  %v6049_v33 = vcombine.low %v8978_v17, %v3148_v4 }
 0x376   : > { %v6057_v11 = vcombine.high %v8978_v17, %v3148_v4  ;;  %v3256_v38 = vrot.slane %v6001_v48, %v6757_v57  ;;  %v3392_v59 = vrot.slane %v6009_v63, %v6757_v57  ;;  %v3528_v46 = vrot.slane %v6017_v52, %v6757_v57 }
 0x377   : > { %v3664_v62 = vrot.slane %v6025_v23, %v6757_v57  ;;  %v3800_v50 = vrot.slane %v6033_v12, %v6757_v57  ;;  %v3936_v34 = vrot.slane %v6041_v8, %v6757_v57  ;;  %v4072_v18 = vrot.slane %v6049_v33, %v6757_v57 }
 0x378   : > { %v4208_v60 = vrot.slane %v6057_v11, %v6757_v57  ;;  %v3273_v56 = vcombine.low %v3240_v53, %v3256_v38  ;;  %v3274_v1 = vcombine.high %v3240_v53, %v3256_v38  ;;  %v3409_v51 = vcombine.low %v3376_v44, %v3392_v59 }
 0x379   : > { %v3410_v4 = vcombine.high %v3376_v44, %v3392_v59  ;;  %v3545_v17 = vcombine.low %v3512_v0, %v3528_v46  ;;  %v3546_v48 = vcombine.high %v3512_v0, %v3528_v46  ;;  %v3681_v25 = vcombine.low %v3648_v58, %v3664_v62 }
 0x37a   : > { %v3682_v63 = vcombine.high %v3648_v58, %v3664_v62  ;;  %v8158_v52 = vrot.slane %v3273_v56, %v6787_v32  ;;  %v8161_v23 = vrot.slane %v3274_v1, %v6787_v32  ;;  %v8164_v12 = vrot.slane %v3409_v51, %v6787_v32 }
 0x37b   : > { %v8167_v8 = vrot.slane %v3410_v4, %v6787_v32  ;;  %v8170_v53 = vrot.slane %v3545_v17, %v6787_v32  ;;  %v8173_v44 = vrot.slane %v3546_v48, %v6787_v32  ;;  %v3689_v0 = vrot.slane %v3681_v25, %v6787_v32 }
 0x37c   : > { %8979 = vst [vmem:[#allocation2_spill] sm:$0xff] %v8164_v12  ;;  %v3696_v58 = vrot.slane %v3682_v63, %v6787_v32  ;;  %v3817_v33 = vcombine.low %v3784_v21, %v3800_v50  ;;  %v3818_v11 = vcombine.high %v3784_v21, %v3800_v50  ;;  %v3953_v1 = vcombine.low %v3920_v37, %v3936_v34 }
 0x37d   : > { %v3954_v38 = vcombine.high %v3920_v37, %v3936_v34  ;;  %v4089_v59 = vcombine.low %v4056_v10, %v4072_v18  ;;  %v4090_v51 = vcombine.high %v4056_v10, %v4072_v18  ;;  %v4225_v46 = vcombine.low %v4192_v22, %v4208_v60 }
 0x37e   : > { %v4226_v62 = vcombine.high %v4192_v22, %v4208_v60  ;;  %v8178_v56 = vrot.slane %v3817_v33, %v6787_v32  ;;  %v8181_v4 = vrot.slane %v3818_v11, %v6787_v32  ;;  %v8184_v17 = vrot.slane %v3953_v1, %v6787_v32 }
 0x37f   : > { %v8187_v25 = vrot.slane %v3954_v38, %v6787_v32  ;;  %v8190_v21 = vrot.slane %v4089_v59, %v6787_v32  ;;  %v8193_v37 = vrot.slane %v4090_v51, %v6787_v32  ;;  %v8196_v10 = vrot.slane %v4225_v46, %v6787_v32 }
 0x380   : > { %v8199_v22 = vrot.slane %v4226_v62, %v6787_v32  ;;  %v8980_v50 = vcombine.low %v7925_v42, %v7928_v28  ;;  %v8981_v18 = vcombine.high %v7925_v42, %v7928_v28  ;;  %v4685_v48 = vcombine.low %v8108_v2, %v8111_v40 }
 0x381   : > { %v4721_v63 = vcombine.low %v8054_v45, %v8057_v26  ;;  %v6072_v33 = vcombine.high %v8054_v45, %v8057_v26  ;;  %v4737_v11 = vcombine.low %v3689_v0, %v3696_v58  ;;  %v6073_v1 = vcombine.high %v3689_v0, %v3696_v58 }
 0x382   : > { %v4676_v34 = vrot.slane %v8980_v50, %v6757_v57  ;;  %v4684_v60 = vrot.slane %v8981_v18, %v6757_v57  ;;  %v4517_v38 = vcombine.low %v7787_v15, %v7790_v6  ;;  %v8218_v59 = vrot.slane %v4685_v48, %v6787_v32 }
 0x383   : > { %v4728_v42 = vrot.slane %v4721_v63, %v6757_v57  ;;  %v6066_v28 = vcombine.high %v7787_v15, %v7790_v6  ;;  %v4736_v46 = vrot.slane %v6072_v33, %v6757_v57  ;;  %v4744_v62 = vrot.slane %v4737_v11, %v6757_v57 }
 0x384   : > { %8982 = vst [vmem:[#allocation3_spill] sm:$0xff] %v8218_v59  ;;  %v4701_v51 = vcombine.low %v4676_v34, %v4684_v60  ;;  %v4752_v45 = vrot.slane %v6073_v1, %v6757_v57  ;;  %v4524_v26 = vrot.slane %v4517_v38, %v6757_v57  ;;  %v4533_v50 = vcombine.low %v7919_v24, %v7922_v47 }
 0x385   : > { %v4532_v58 = vrot.slane %v6066_v28, %v6757_v57  ;;  %v6067_v18 = vcombine.high %v7919_v24, %v7922_v47  ;;  %v4753_v15 = vcombine.low %v4728_v42, %v4736_v46  ;;  %v4585_v48 = vcombine.low %v8048_v13, %v8051_v36 }
 0x386   : > { %v8228_v0 = vrot.slane %v4701_v51, %v6787_v32  ;;  %v4769_v6 = vcombine.low %v4744_v62, %v4752_v45  ;;  %v6068_v63 = vcombine.high %v8048_v13, %v8051_v36  ;;  %v4540_v11 = vrot.slane %v4533_v50, %v6757_v57 }
 0x387   : > { %v4548_v1 = vrot.slane %v6067_v18, %v6757_v57  ;;  %v4549_v38 = vcombine.low %v4524_v26, %v4532_v58  ;;  %v8244_v51 = vrot.slane %v4753_v15, %v6787_v32  ;;  %v4592_v47 = vrot.slane %v4585_v48, %v6757_v57 }
 0x388   : > { %8983 = vst [vmem:[#allocation20_spill] sm:$0xff] %v8228_v0  ;;  %v4718_v33 = vcombine.high %v8218_v59, %v8228_v0  ;;  %v8247_v24 = vrot.slane %v4769_v6, %v6787_v32  ;;  %v4600_v28 = vrot.slane %v6068_v63, %v6757_v57  ;;  %v4601_v50 = vcombine.low %v8170_v53, %v8173_v44  ;;  %v6343_v63 = vld [vmem:[%s8895_s2 + $0x8] sm:$0xff]  }
 0x389   : > { %8984 = vst [vmem:[#allocation21_spill] sm:$0xff] %v8244_v51  ;;  %v8252_v13 = vrot.slane %v4549_v38, %v6787_v32  ;;  %v4565_v36 = vcombine.low %v4540_v11, %v4548_v1  ;;  %v6069_v18 = vcombine.high %v8170_v53, %v8173_v44  ;;  %v4686_v6 = vcombine.high %v8108_v2, %v8111_v40  ;;  %v6344_v40 = vld [vmem:[%s8895_s2 + $0x10] sm:$0xff]  }
 0x38a   : > { %8985 = vst [vmem:[#allocation22_spill] sm:$0xff] %v8247_v24  ;;  %v4786_v15 = vcombine.high %v8244_v51, %v8247_v24  ;;  %v4617_v59 = vcombine.low %v4592_v47, %v4600_v28  ;;  %v4702_v48 = vcombine.high %v4676_v34, %v4684_v60  ;;  %v4608_v0 = vrot.slane %v4601_v50, %v6757_v57 }
 0x38b   : > { %8986 = vst [vmem:[#allocation23_spill] sm:$0xff] %v8252_v13  ;;  %v8266_v38 = vrot.slane %v4565_v36, %v6787_v32  ;;  %v4616_v12 = vrot.slane %v6069_v18, %v6757_v57  ;;  %v4754_v53 = vcombine.high %v4728_v42, %v4736_v46  ;;  %v4700_v24 = vrot.slane %v4686_v6, %v6787_v32 }
 0x38c   : > { %v6223_v44 = vpack.i.bf16 %v4786_v15, %v4718_v33  ;;  %v8271_v51 = vrot.slane %v4617_v59, %v6787_v32  ;;  %v4716_v2 = vrot.slane %v4702_v48, %v6787_v32  ;;  %6174 = vmatprep.subr.bf16.mxu1 %v6343_v63  ;;  %v4770_v42 = vcombine.high %v4744_v62, %v4752_v45 }
 0x38d   : > { %8987 = vst [vmem:[#allocation24_spill] sm:$0xff] %v8266_v38  ;;  %v4582_v34 = vcombine.high %v8252_v13, %v8266_v38  ;;  %v4633_v60 = vcombine.low %v4608_v0, %v4616_v12  ;;  %v4768_v36 = vrot.slane %v4754_v53, %v6787_v32  ;;  %6178 = vmatpush3.bf16.msra.mxu1 %v6343_v63 }
 0x38e   : > { %8988 = vst [vmem:[#allocation25_spill] sm:$0xff] %v8271_v51  ;;  %6224 = vrot.lane.b32.xlu1 %v6223_v44, %s6376_s27  ;;  %v4719_v59 = vcombine.low %v4700_v24, %v4716_v2  ;;  %v4550_v46 = vcombine.high %v4524_v26, %v4532_v58  ;;  %v4566_v33 = vcombine.high %v4540_v11, %v4548_v1  ;;  %v6345_v26 = vld [vmem:[%s8895_s2 + $0x18] sm:$0xff]  }
 0x38f   : > { %v4618_v50 = vcombine.high %v4592_v47, %v4600_v28  ;;  %v8283_v18 = vrot.slane %v4633_v60, %v6787_v32  ;;  %v4784_v15 = vrot.slane %v4770_v42, %v6787_v32  ;;  %v4634_v6 = vcombine.high %v4608_v0, %v4616_v12  ;;  %6175 = vmatprep.subr.bf16.mxu1 %v6344_v40 }
 0x390   : > { %v4720_v48 = vcombine.high %v4700_v24, %v4716_v2  ;;  %v4564_v13 = vrot.slane %v4550_v46, %v6787_v32  ;;  %v4580_v53 = vrot.slane %v4566_v33, %v6787_v32  ;;  %v4925_v45 = vcombine.low %v7807_v9, %v7810_v19  ;;  %6151 = vmatprep.subr.bf16.mxu0 %v6343_v63 }
 0x391   : > { %8989 = vst [vmem:[#allocation26_spill] sm:$0xff] %v8283_v18  ;;  %v4632_v62 = vrot.slane %v4618_v50, %v6787_v32  ;;  %v4650_v58 = vcombine.high %v8271_v51, %v8283_v18  ;;  %v4787_v12 = vcombine.low %v4768_v36, %v4784_v15  ;;  %v4648_v0 = vrot.slane %v4634_v6, %v6787_v32 }
 0x392   : > { %v4788_v11 = vcombine.high %v4768_v36, %v4784_v15  ;;  %6179 = vmatpush3.bf16.msra.mxu1 %v6344_v40  ;;  %v4583_v1 = vcombine.low %v4564_v13, %v4580_v53  ;;  %v4584_v24 = vcombine.high %v4564_v13, %v4580_v53  ;;  %v8298_v47 = vrot.slane %v4925_v45, %v6757_v57  ;;  %v8990_v53 = vld [vmem:[#allocation8_spill] sm:$0xff] }
 0x393   : > { %v6078_v28 = vcombine.high %v7807_v9, %v7810_v19  ;;  %6176 = vmatprep.subr.bf16.mxu1 %v6345_v26  ;;  %v6218_v44 = vpack.i.bf16 %v4650_v58, %v4582_v34  ;;  %v6233_v2 = vpack.i.bf16 %v4787_v12, %v4719_v59  ;;  %v4651_v60 = vcombine.low %v4632_v62, %v4648_v0 }
 0x394   : > { %v6243_v42 = vpack.i.bf16 %v4788_v11, %v4720_v48  ;;  %6152 = vmatpush3.bf16.msra.mxu0 %v6343_v63  ;;  %v4652_v46 = vcombine.high %v4632_v62, %v4648_v0  ;;  %v4941_v36 = vcombine.low %v7937_v35, %v7940_v31  ;;  %v6079_v13 = vcombine.high %v7937_v35, %v7940_v31 }
 0x395   : > { %v4940_v33 = vrot.slane %v6078_v28, %v6757_v57  ;;  %6153 = vmatprep.subr.bf16.mxu0 %v6344_v40  ;;  %6219 = vrot.lane.b32.xlu0 %v6218_v44, %s6376_s27  ;;  %v6228_v9 = vpack.i.bf16 %v4651_v60, %v4583_v1  ;;  %v4993_v19 = vcombine.low %v8066_v20, %v8069_v3 }
 0x396   : > { %6234 = vrot.lane.b32.xlu1 %v6233_v2, %s6374_s25  ;;  %v6080_v63 = vcombine.high %v8066_v20, %v8069_v3  ;;  %v6238_v34 = vpack.i.bf16 %v4652_v46, %v4584_v24  ;;  %v4948_v59 = vrot.slane %v4941_v36, %v6757_v57  ;;  %v4956_v50 = vrot.slane %v6079_v13, %v6757_v57 }
 0x397   : > { %v4957_v15 = vcombine.low %v8298_v47, %v4940_v33  ;;  %6180 = vmatpush3.bf16.msra.mxu1 %v6345_v26  ;;  %v5000_v35 = vrot.slane %v4993_v19, %v6757_v57  ;;  %v5009_v6 = vcombine.low %v8184_v17, %v8187_v25  ;;  %v6081_v48 = vcombine.high %v8184_v17, %v8187_v25 }
 0x398   : > { %v5008_v31 = vrot.slane %v6080_v63, %v6757_v57  ;;  %6154 = vmatpush3.bf16.msra.mxu0 %v6344_v40  ;;  %v4973_v3 = vcombine.low %v4948_v59, %v4956_v50  ;;  %v4789_v62 = vcombine.low %v8990_v53, %v7804_v54  ;;  %v6074_v45 = vcombine.high %v8990_v53, %v7804_v54 }
 0x399   : > { %v8323_v20 = vrot.slane %v4957_v15, %v6787_v32  ;;  %6155 = vmatprep.subr.bf16.mxu0 %v6345_v26  ;;  %6229 = vrot.lane.b32.xlu0 %v6228_v9, %s6374_s25  ;;  %v5016_v58 = vrot.slane %v5009_v6, %v6757_v57  ;;  %v5024_v17 = vrot.slane %v6081_v48, %v6757_v57 }
 0x39a   : > { %6244 = vrot.lane.b32.xlu1 %v6243_v42, %s6377_s28  ;;  %v5025_v25 = vcombine.low %v5000_v35, %v5008_v31  ;;  %v8334_v40 = vrot.slane %v4973_v3, %v6787_v32  ;;  %v4796_v12 = vrot.slane %v4789_v62, %v6757_v57  ;;  %v4804_v0 = vrot.slane %v6074_v45, %v6757_v57 }
 0x39b   : > { %v4805_v54 = vcombine.low %v7931_v16, %v7934_v55  ;;  %v5041_v1 = vcombine.low %v5016_v58, %v5024_v17  ;;  %v6075_v24 = vcombine.high %v7931_v16, %v7934_v55  ;;  %v4857_v28 = vcombine.low %v8060_v61, %v8063_v29 }
 0x39c   : > { %v8341_v11 = vrot.slane %v5025_v25, %v6787_v32  ;;  %6156 = vmatpush3.bf16.msra.mxu0 %v6345_v26  ;;  %v4990_v44 = vcombine.high %v8323_v20, %v8334_v40  ;;  %v4821_v60 = vcombine.low %v4796_v12, %v4804_v0  ;;  %v6076_v42 = vcombine.high %v8060_v61, %v8063_v29 }
 0x39d   : > { %v4812_v2 = vrot.slane %v4805_v54, %v6757_v57  ;;  %6239 = vrot.lane.b32.xlu0 %v6238_v34, %s6377_s28  ;;  %v8354_v46 = vrot.slane %v5041_v1, %v6787_v32  ;;  %v4820_v16 = vrot.slane %v6075_v24, %v6757_v57  ;;  %v4864_v55 = vrot.slane %v4857_v28, %v6757_v57 }
 0x39e   : > { %v4873_v26 = vcombine.low %v8178_v56, %v8181_v4  ;;  %v8361_v36 = vrot.slane %v4821_v60, %v6787_v32  ;;  %v4872_v13 = vrot.slane %v6076_v42, %v6757_v57  ;;  %v6077_v61 = vcombine.high %v8178_v56, %v8181_v4 }
 0x39f   : > { %v4958_v29 = vcombine.high %v8298_v47, %v4940_v33  ;;  %v5058_v9 = vcombine.high %v8341_v11, %v8354_v46  ;;  %v4837_v19 = vcombine.low %v4812_v2, %v4820_v16  ;;  %v4974_v34 = vcombine.high %v4948_v59, %v4956_v50 }
 0x3a0   : > { %v4880_v63 = vrot.slane %v4873_v26, %v6757_v57  ;;  %v4888_v15 = vrot.slane %v6077_v61, %v6757_v57  ;;  %v4889_v6 = vcombine.low %v4864_v55, %v4872_v13  ;;  %v5026_v3 = vcombine.high %v5000_v35, %v5008_v31 }
 0x3a1   : > { %v4972_v48 = vrot.slane %v4958_v29, %v6787_v32  ;;  %v6253_v53 = vpack.i.bf16 %v5058_v9, %v4990_v44  ;;  %v8373_v62 = vrot.slane %v4837_v19, %v6787_v32  ;;  %v4988_v56 = vrot.slane %v4974_v34, %v6787_v32 }
 0x3a2   : > { %v5042_v4 = vcombine.high %v5016_v58, %v5024_v17  ;;  %v8377_v47 = vrot.slane %v4889_v6, %v6787_v32  ;;  %v4905_v33 = vcombine.low %v4880_v63, %v4888_v15  ;;  %v5040_v45 = vrot.slane %v5026_v3, %v6787_v32 }
 0x3a3   : > { %v4822_v59 = vcombine.high %v4796_v12, %v4804_v0  ;;  %6254 = vrot.lane.b32.xlu1 %v6253_v53, %s6376_s27  ;;  %v4854_v50 = vcombine.high %v8361_v36, %v8373_v62  ;;  %v4991_v35 = vcombine.low %v4972_v48, %v4988_v56  ;;  %v4838_v25 = vcombine.high %v4812_v2, %v4820_v16  ;;  %v8991_v2 = vld [vmem:[#allocation10_spill] sm:$0xff]  ;;  %v8992_v16 = vld [vmem:[#allocation9_spill] sm:$0xff] }
 0x3a4   : > { %v5056_v31 = vrot.slane %v5042_v4, %v6787_v32  ;;  %v8385_v54 = vrot.slane %v4905_v33, %v6787_v32  ;;  %v4890_v17 = vcombine.high %v4864_v55, %v4872_v13  ;;  %v4906_v1 = vcombine.high %v4880_v63, %v4888_v15 }
 0x3a5   : > { %v4836_v58 = vrot.slane %v4822_v59, %v6787_v32  ;;  %v4852_v28 = vrot.slane %v4838_v25, %v6787_v32  ;;  %v4992_v12 = vcombine.high %v4972_v48, %v4988_v56  ;;  %v5061_v26 = vcombine.low %v8992_v16, %v8991_v2 }
 0x3a6   : > { %v5059_v24 = vcombine.low %v5040_v45, %v5056_v31  ;;  %v5060_v0 = vcombine.high %v5040_v45, %v5056_v31  ;;  %v4922_v44 = vcombine.high %v8377_v47, %v8385_v54  ;;  %v4904_v60 = vrot.slane %v4890_v17, %v6787_v32  ;;  %v8994_v31 = vld [vmem:[#allocation4_spill] sm:$0xff] }
 0x3a7   : > { %v4920_v42 = vrot.slane %v4906_v1, %v6787_v32  ;;  %v4855_v29 = vcombine.low %v4836_v58, %v4852_v28  ;;  %v4856_v55 = vcombine.high %v4836_v58, %v4852_v28  ;;  %v8396_v34 = vrot.slane %v5061_v26, %v6757_v57 }
 0x3a8   : > { %v6263_v61 = vpack.i.bf16 %v5059_v24, %v4991_v35  ;;  %v6273_v9 = vpack.i.bf16 %v5060_v0, %v4992_v12  ;;  %v6248_v13 = vpack.i.bf16 %v4922_v44, %v4854_v50  ;;  %v6082_v15 = vcombine.high %v8992_v16, %v8991_v2  ;;  %v8993_v35 = vld [vmem:[#allocation5_spill] sm:$0xff] }
 0x3a9   : > { %v4923_v19 = vcombine.low %v4904_v60, %v4920_v42  ;;  %v4924_v63 = vcombine.high %v4904_v60, %v4920_v42  ;;  %v5077_v6 = vcombine.low %v7943_v7, %v7946_v14  ;;  %v6083_v48 = vcombine.high %v7943_v7, %v7946_v14 }
 0x3aa   : > { %6264 = vrot.lane.b32.xlu1 %v6263_v61, %s6374_s25  ;;  %v5129_v3 = vcombine.low %v8072_v43, %v8075_v41  ;;  %6249 = vrot.lane.b32.xlu0 %v6248_v13, %s6376_s27  ;;  %v6084_v4 = vcombine.high %v8072_v43, %v8075_v41  ;;  %v5145_v33 = vcombine.low %v8190_v21, %v8193_v37 }
 0x3ab   : > { %v6258_v53 = vpack.i.bf16 %v4923_v19, %v4855_v29  ;;  %v6268_v56 = vpack.i.bf16 %v4924_v63, %v4856_v55  ;;  %v8413_v45 = vrot.slane %v6082_v15, %v6757_v57  ;;  %v8416_v59 = vrot.slane %v5077_v6, %v6757_v57  ;;  %v8995_v6 = vld [vmem:[#allocation12_spill] sm:$0xff] }
 0x3ac   : > { %v8419_v7 = vrot.slane %v6083_v48, %v6757_v57  ;;  %v8422_v14 = vrot.slane %v5129_v3, %v6757_v57  ;;  %v8425_v50 = vrot.slane %v6084_v4, %v6757_v57  ;;  %v8428_v43 = vrot.slane %v5145_v33, %v6757_v57  ;;  %v8996_v48 = vld [vmem:[#allocation11_spill] sm:$0xff] }
 0x3ad   : > { %v6085_v41 = vcombine.high %v8190_v21, %v8193_v37  ;;  %v4245_v25 = vcombine.low %v8994_v31, %v8993_v35  ;;  %v5093_v58 = vcombine.low %v8396_v34, %v8413_v45  ;;  %v6058_v1 = vcombine.high %v8994_v31, %v8993_v35 }
 0x3ae   : > { %6274 = vrot.lane.b32.xlu1 %v6273_v9, %s6377_s28  ;;  %v5109_v17 = vcombine.low %v8416_v59, %v8419_v7  ;;  %v4261_v24 = vcombine.low %v7907_v27, %v7910_v30  ;;  %6259 = vrot.lane.b32.xlu0 %v6258_v53, %s6374_s25  ;;  %v5161_v37 = vcombine.low %v8422_v14, %v8425_v50 }
 0x3af   : > { %v8445_v21 = vrot.slane %v6085_v41, %v6757_v57  ;;  %v8450_v28 = vrot.slane %v4245_v25, %v6757_v57  ;;  %v6059_v12 = vcombine.high %v7907_v27, %v7910_v30  ;;  %v8455_v0 = vrot.slane %v5093_v58, %v6787_v32  ;;  %v8997_v41 = vld [vmem:[#allocation15_spill] sm:$0xff] }
 0x3b0   : > { %v8458_v44 = vrot.slane %v5109_v17, %v6787_v32  ;;  %v8461_v60 = vrot.slane %v6058_v1, %v6757_v57  ;;  %v8464_v42 = vrot.slane %v4261_v24, %v6757_v57  ;;  %v8467_v2 = vrot.slane %v5161_v37, %v6787_v32 }
 0x3b1   : > { %v5177_v16 = vcombine.low %v8428_v43, %v8445_v21  ;;  %v8472_v27 = vrot.slane %v6059_v12, %v6757_v57  ;;  %v4313_v30 = vcombine.low %v8036_v49, %v8039_v39  ;;  %v6060_v29 = vcombine.high %v8036_v49, %v8039_v39 }
 0x3b2   : > { %v5126_v26 = vcombine.high %v8455_v0, %v8458_v44  ;;  %v4277_v61 = vcombine.low %v8450_v28, %v8461_v60  ;;  %v4329_v9 = vcombine.low %v8158_v52, %v8161_v23  ;;  %6269 = vrot.lane.b32.xlu0 %v6268_v56, %s6377_s28  ;;  %v6061_v63 = vcombine.high %v8158_v52, %v8161_v23 }
 0x3b3   : > { %v8486_v55 = vrot.slane %v5177_v16, %v6787_v32  ;;  %v4293_v13 = vcombine.low %v8464_v42, %v8472_v27  ;;  %v8491_v19 = vrot.slane %v4313_v30, %v6757_v57  ;;  %v8499_v49 = vrot.slane %v6060_v29, %v6757_v57  ;;  %v8999_v16 = vld [vmem:[#allocation18_spill] sm:$0xff] }
 0x3b4   : > { %v8496_v15 = vrot.slane %v4277_v61, %v6787_v32  ;;  %v8502_v39 = vrot.slane %v4329_v9, %v6757_v57  ;;  %v5197_v3 = vcombine.low %v8996_v48, %v8995_v6  ;;  %v8512_v52 = vrot.slane %v6061_v63, %v6757_v57 }
 0x3b5   : > { %v5194_v53 = vcombine.high %v8467_v2, %v8486_v55  ;;  %v8509_v56 = vrot.slane %v4293_v13, %v6787_v32  ;;  %v6086_v23 = vcombine.high %v8996_v48, %v8995_v6  ;;  %v4345_v4 = vcombine.low %v8491_v19, %v8499_v49  ;;  %v9000_v48 = vld [vmem:[#allocation7_spill] sm:$0xff] }
 0x3b6   : > { %v8519_v33 = vrot.slane %v5197_v3, %v6757_v57  ;;  %v5213_v35 = vcombine.low %v8997_v41, %v7952_v5  ;;  %v6087_v31 = vcombine.high %v8997_v41, %v7952_v5  ;;  %v4361_v17 = vcombine.low %v8502_v39, %v8512_v52  ;;  %v8998_v5 = vld [vmem:[#allocation19_spill] sm:$0xff]  ;;  %v9001_v3 = vld [vmem:[#allocation6_spill] sm:$0xff] }
 0x3b7   : > { %v6283_v25 = vpack.i.bf16 %v5194_v53, %v5126_v26  ;;  %v4310_v58 = vcombine.high %v8496_v15, %v8509_v56  ;;  %v8530_v1 = vrot.slane %v6086_v23, %v6757_v57  ;;  %v8533_v24 = vrot.slane %v4345_v4, %v6787_v32 }
 0x3b8   : > { %v8536_v37 = vrot.slane %v5213_v35, %v6757_v57  ;;  %v8539_v12 = vrot.slane %v6087_v31, %v6757_v57  ;;  %v5265_v30 = vcombine.low %v8999_v16, %v8998_v5  ;;  %v8545_v26 = vrot.slane %v4361_v17, %v6787_v32 }
 0x3b9   : > { %6284 = vrot.lane.b32.xlu1 %v6283_v25, %s6376_s27  ;;  %v5229_v61 = vcombine.low %v8519_v33, %v8530_v1  ;;  %v6088_v29 = vcombine.high %v8999_v16, %v8998_v5  ;;  %v5281_v9 = vcombine.low %v8196_v10, %v8199_v22  ;;  %v6089_v6 = vcombine.high %v8196_v10, %v8199_v22  ;;  %v9004_v16 = vld [vmem:[#allocation14_spill] sm:$0xff] }
 0x3ba   : > { %v5245_v13 = vcombine.low %v8536_v37, %v8539_v12  ;;  %v8556_v63 = vrot.slane %v5265_v30, %v6757_v57  ;;  %v4381_v53 = vcombine.low %v9001_v3, %v9000_v48  ;;  %v4378_v23 = vcombine.high %v8533_v24, %v8545_v26  ;;  %v9005_v30 = vld [vmem:[#allocation13_spill] sm:$0xff] }
 0x3bb   : > { %v8565_v4 = vrot.slane %v5229_v61, %v6787_v32  ;;  %v8568_v41 = vrot.slane %v6088_v29, %v6757_v57  ;;  %v8571_v35 = vrot.slane %v5281_v9, %v6757_v57  ;;  %v8577_v10 = vrot.slane %v6089_v6, %v6757_v57 }
 0x3bc   : > { %v8574_v31 = vrot.slane %v5245_v13, %v6787_v32  ;;  %v8580_v22 = vrot.slane %v4381_v53, %v6757_v57  ;;  %v6062_v25 = vcombine.high %v9001_v3, %v9000_v48  ;;  %v6278_v17 = vpack.i.bf16 %v4378_v23, %v4310_v58  ;;  %v9006_v48 = vld [vmem:[#allocation17_spill] sm:$0xff]  ;;  %v9007_v58 = vld [vmem:[#allocation16_spill] sm:$0xff] }
 0x3bd   : > { %9002 = vst [vmem:[#allocation8_spill] sm:$0xff] %v8565_v4  ;;  %v5297_v5 = vcombine.low %v8556_v63, %v8568_v41  ;;  %v4397_v61 = vcombine.low %v9005_v30, %v9004_v16  ;;  %v6063_v29 = vcombine.high %v9005_v30, %v9004_v16  ;;  %v5313_v13 = vcombine.low %v8571_v35, %v8577_v10 }
 0x3be   : > { %9003 = vst [vmem:[#allocation10_spill] sm:$0xff] %v8574_v31  ;;  %v5262_v9 = vcombine.high %v8565_v4, %v8574_v31  ;;  %v8595_v6 = vrot.slane %v6062_v25, %v6757_v57  ;;  %v4449_v3 = vcombine.low %v9007_v58, %v9006_v48  ;;  %6279 = vrot.lane.b32.xlu0 %v6278_v17, %s6376_s27 }
 0x3bf   : > { %v8601_v53 = vrot.slane %v5297_v5, %v6787_v32  ;;  %v8604_v23 = vrot.slane %v4397_v61, %v6757_v57  ;;  %v8607_v16 = vrot.slane %v6063_v29, %v6757_v57  ;;  %v6064_v30 = vcombine.high %v9007_v58, %v9006_v48  ;;  %v9008_v5 = vld [vmem:[#allocation2_spill] sm:$0xff] }
 0x3c0   : > { %v8612_v25 = vrot.slane %v5313_v13, %v6787_v32  ;;  %v4413_v51 = vcombine.low %v8580_v22, %v8595_v6  ;;  %v4456_v17 = vrot.slane %v4449_v3, %v6757_v57  ;;  %v4465_v18 = vcombine.low %v9008_v5, %v8167_v8 }
 0x3c1   : > { %v4429_v61 = vcombine.low %v8604_v23, %v8607_v16  ;;  %v4464_v29 = vrot.slane %v6064_v30, %v6757_v57  ;;  %v6065_v38 = vcombine.high %v9008_v5, %v8167_v8  ;;  %v5094_v13 = vcombine.high %v8396_v34, %v8413_v45 }
 0x3c2   : > { %v5330_v48 = vcombine.high %v8601_v53, %v8612_v25  ;;  %v8629_v58 = vrot.slane %v4413_v51, %v6787_v32  ;;  %v4472_v3 = vrot.slane %v4465_v18, %v6757_v57  ;;  %v5110_v4 = vcombine.high %v8416_v59, %v8419_v7 }
 0x3c3   : > { %v8635_v31 = vrot.slane %v4429_v61, %v6787_v32  ;;  %v4480_v30 = vrot.slane %v6065_v38, %v6757_v57  ;;  %v4481_v8 = vcombine.low %v4456_v17, %v4464_v29  ;;  %v5108_v5 = vrot.slane %v5094_v13, %v6787_v32 }
 0x3c4   : > { %v6293_v34 = vpack.i.bf16 %v5330_v48, %v5262_v9  ;;  %v5124_v45 = vrot.slane %v5110_v4, %v6787_v32  ;;  %v5162_v51 = vcombine.high %v8422_v14, %v8425_v50  ;;  %v5178_v18 = vcombine.high %v8428_v43, %v8445_v21 }
 0x3c5   : > { %v4446_v59 = vcombine.high %v8629_v58, %v8635_v31  ;;  %v8647_v7 = vrot.slane %v4481_v8, %v6787_v32  ;;  %v4497_v61 = vcombine.low %v4472_v3, %v4480_v30  ;;  %v4278_v57 = vcombine.high %v8450_v28, %v8461_v60 }
 0x3c6   : > { %6294 = vrot.lane.b32.xlu1 %v6293_v34, %s6376_s27  ;;  %v5127_v38 = vcombine.low %v5108_v5, %v5124_v45  ;;  %v5176_v4 = vrot.slane %v5162_v51, %v6787_v32  ;;  %v5192_v14 = vrot.slane %v5178_v18, %v6787_v32  ;;  %v4294_v50 = vcombine.high %v8464_v42, %v8472_v27 }
 0x3c7   : > { %v8657_v43 = vrot.slane %v4497_v61, %v6787_v32  ;;  %v4292_v21 = vrot.slane %v4278_v57, %v6787_v32  ;;  %v4346_v9 = vcombine.high %v8491_v19, %v8499_v49  ;;  %v4362_v28 = vcombine.high %v8502_v39, %v8512_v52 }
 0x3c8   : > { %v5195_v60 = vcombine.low %v5176_v4, %v5192_v14  ;;  %v4308_v13 = vrot.slane %v4294_v50, %v6787_v32  ;;  %v5230_v48 = vcombine.high %v8519_v33, %v8530_v1  ;;  %v5246_v42 = vcombine.high %v8536_v37, %v8539_v12 }
 0x3c9   : > { %v4514_v27 = vcombine.high %v8647_v7, %v8657_v43  ;;  %v4360_v8 = vrot.slane %v4346_v9, %v6787_v32  ;;  %v4376_v34 = vrot.slane %v4362_v28, %v6787_v32  ;;  %v5298_v19 = vcombine.high %v8556_v63, %v8568_v41 }
 0x3ca   : > { %v6303_v49 = vpack.i.bf16 %v5195_v60, %v5127_v38  ;;  %v4311_v39 = vcombine.low %v4292_v21, %v4308_v13  ;;  %v5244_v52 = vrot.slane %v5230_v48, %v6787_v32  ;;  %v5260_v51 = vrot.slane %v5246_v42, %v6787_v32 }
 0x3cb   : > { %v6288_v33 = vpack.i.bf16 %v4514_v27, %v4446_v59  ;;  %v4379_v1 = vcombine.low %v4360_v8, %v4376_v34  ;;  %v5312_v37 = vrot.slane %v5298_v19, %v6787_v32  ;;  %v5314_v12 = vcombine.high %v8571_v35, %v8577_v10 }
 0x3cc   : > { %6304 = vrot.lane.b32.xlu1 %v6303_v49, %s6374_s25  ;;  %v5263_v18 = vcombine.low %v5244_v52, %v5260_v51  ;;  %v4414_v61 = vcombine.high %v8580_v22, %v8595_v6  ;;  %v4430_v63 = vcombine.high %v8604_v23, %v8607_v16  ;;  %v4482_v41 = vcombine.high %v4456_v17, %v4464_v29 }
 0x3cd   : > { %6289 = vrot.lane.b32.xlu0 %v6288_v33, %s6376_s27  ;;  %v6298_v57 = vpack.i.bf16 %v4379_v1, %v4311_v39  ;;  %v5328_v59 = vrot.slane %v5314_v12, %v6787_v32  ;;  %v4498_v38 = vcombine.high %v4472_v3, %v4480_v30  ;;  %v5128_v50 = vcombine.high %v5108_v5, %v5124_v45 }
 0x3ce   : > { %v4428_v9 = vrot.slane %v4414_v61, %v6787_v32  ;;  %v4444_v35 = vrot.slane %v4430_v63, %v6787_v32  ;;  %v4496_v10 = vrot.slane %v4482_v41, %v6787_v32  ;;  %v5196_v28 = vcombine.high %v5176_v4, %v5192_v14  ;;  %v6102_v61 = vld [vmem:[%s8896_s3] ss:$0 sm:$0xff]  ;;  %v6104_v63 = vld [vmem:[%s8896_s3 + $0x2] ss:$0 sm:$0xff]  ;;  %v6105_v41 = vld [vmem:[%s8896_s3 + $0x3] ss:$0 sm:$0xff] }
 0x3cf   : > { %v5331_v60 = vcombine.low %v5312_v37, %v5328_v59  ;;  %v4512_v22 = vrot.slane %v4498_v38, %v6787_v32  ;;  %v4312_v6 = vcombine.high %v4292_v21, %v4308_v13  ;;  %v4380_v23 = vcombine.high %v4360_v8, %v4376_v34  ;;  %v6108_v38 = vld [vmem:[%s8896_s3 + $0x6] ss:$0 sm:$0xff] }
 0x3d0   : > { %v4447_v16 = vcombine.low %v4428_v9, %v4444_v35  ;;  %v6323_v17 = vpack.i.bf16 %v5196_v28, %v5128_v50  ;;  %v5264_v29 = vcombine.high %v5244_v52, %v5260_v51  ;;  %v5332_v48 = vcombine.high %v5312_v37, %v5328_v59  ;;  %v9009_v52 = vld [vmem:[#allocation10_spill] sm:$0xff]  ;;  %v9010_v51 = vld [vmem:[#allocation8_spill] sm:$0xff] }
 0x3d1   : > { %6299 = vrot.lane.b32.xlu0 %v6298_v57, %s6374_s25  ;;  %v6313_v3 = vpack.i.bf16 %v5331_v60, %v5263_v18  ;;  %v4515_v30 = vcombine.low %v4496_v10, %v4512_v22  ;;  %v6318_v5 = vpack.i.bf16 %v4380_v23, %v4312_v6  ;;  %v4448_v45 = vcombine.high %v4428_v9, %v4444_v35  ;;  %v6103_v18 = vld [vmem:[%s8896_s3 + $0x1] ss:$0 sm:$0xff]  ;;  %v6106_v57 = vld [vmem:[%s8896_s3 + $0x4] ss:$0 sm:$0xff]  ;;  %v6107_v59 = vld [vmem:[%s8896_s3 + $0x5] ss:$0 sm:$0xff] }
 0x3d2   : > { %v6333_v42 = vpack.i.bf16 %v5332_v48, %v5264_v29  ;;  %v4516_v27 = vcombine.high %v4496_v10, %v4512_v22  ;;  %v4989_v32 = vcombine.low %v8323_v20, %v8334_v40  ;;  %v5057_v21 = vcombine.low %v8341_v11, %v8354_v46  ;;  %v6109_v50 = vld [vmem:[%s8896_s3 + $0x7] ss:$0 sm:$0xff]  ;;  %v9011_v23 = vld [vmem:[#allocation20_spill] sm:$0xff]  ;;  %v9014_v48 = vld [vmem:[#allocation21_spill] sm:$0xff] }
 0x3d3   : > { %6314 = vrot.lane.b32.xlu1 %v6313_v3, %s6374_s25  ;;  %v6308_v4 = vpack.i.bf16 %v4515_v30, %v4447_v16  ;;  %v4853_v13 = vcombine.low %v8361_v36, %v8373_v62  ;;  %v4921_v8 = vcombine.low %v8377_v47, %v8385_v54  ;;  %v5125_v34 = vcombine.low %v8455_v0, %v8458_v44  ;;  %v9012_v16 = vld [vmem:[#allocation3_spill] sm:$0xff]  ;;  %v9013_v29 = vld [vmem:[#allocation22_spill] sm:$0xff] }
 0x3d4   : > { %v6328_v14 = vpack.i.bf16 %v4516_v27, %v4448_v45  ;;  %v5193_v19 = vcombine.low %v8467_v2, %v8486_v55  ;;  %v4309_v49 = vcombine.low %v8496_v15, %v8509_v56  ;;  %v4377_v39 = vcombine.low %v8533_v24, %v8545_v26 }
 0x3d5   : > { %6309 = vrot.lane.b32.xlu0 %v6308_v4, %s6374_s25  ;;  %v5261_v33 = vcombine.low %v9010_v51, %v9009_v52  ;;  %v5329_v1 = vcombine.low %v8601_v53, %v8612_v25  ;;  %v4445_v37 = vcombine.low %v8629_v58, %v8635_v31  ;;  %v4513_v12 = vcombine.low %v8647_v7, %v8657_v43 }
 0x3d6   : > { %v4785_v3 = vcombine.low %v9014_v48, %v9013_v29 }
 0x3d7   : > { %6324 = vrot.lane.b32.xlu1 %v6323_v17, %s6377_s28  ;;  %v4717_v17 = vcombine.low %v9012_v16, %v9011_v23 }
 0x3d9   : > { %6319 = vrot.lane.b32.xlu0 %v6318_v5, %s6377_s28 }
 0x3db   : > { %6334 = vrot.lane.b32.xlu1 %v6333_v42, %s6377_s28 }
 0x3dd   : > { %6329 = vrot.lane.b32.xlu0 %v6328_v14, %s6377_s28 }
 0x3df   : > { %5787 = vperm.xlu1 %6339, %v6103_v18  }
 0x3e1   : > { %5783 = vperm.xlu0 %6338, %v6102_v61  }
 0x3e3   : > { %5791 = vperm.xlu1 %6339, %v6104_v63  }
 0x3e5   : > { %5795 = vperm.xlu0 %6338, %v6105_v41   ;;  %v9015_v41 = vld [vmem:[#allocation24_spill] sm:$0xff] }
 0x3e7   : > { %5799 = vperm.xlu1 %6339, %v6106_v57   ;;  %v9016_v57 = vld [vmem:[#allocation23_spill] sm:$0xff] }
 0x3e9   : > { %5803 = vperm.xlu0 %6338, %v6107_v59   ;;  %v4581_v59 = vcombine.low %v9016_v57, %v9015_v41 }
 0x3eb   : > { %5807 = vperm.xlu1 %6339, %v6108_v38   ;;  %v9017_v38 = vld [vmem:[#allocation26_spill] sm:$0xff] }
 0x3ed   : > { %5811 = vperm.xlu0 %6338, %v6109_v50   ;;  %v9018_v50 = vld [vmem:[#allocation25_spill] sm:$0xff] }
 0x400   : > { %v6225_v9 = vpop.permute.xlu1 %6224 }
 0x401   : > { %v6227_v28 = vunpack.i.h.bf16 %v6225_v9  ;;  %v6226_v60 = vunpack.i.l.bf16 %v6225_v9  ;;  %v4649_v9 = vcombine.low %v9018_v50, %v9017_v38 }
 0x403   : > { %v5531_v14 = vsel %vm1713_vm6, %v4717_v17, %v6226_v60  ;;  %v5532_v18 = vsel %vm1713_vm6, %v4785_v3, %v6227_v28 }
 0x407   : > { %v6220_v35 = vpop.permute.xlu0 %6219 }
 0x408   : > { %v6235_v10 = vpop.permute.xlu1 %6234  ;;  %v6222_v45 = vunpack.i.h.bf16 %v6220_v35  ;;  %v6221_v42 = vunpack.i.l.bf16 %v6220_v35 }
 0x409   : > { %v6237_v22 = vunpack.i.h.bf16 %v6235_v10  ;;  %v6236_v6 = vunpack.i.l.bf16 %v6235_v10 }
 0x40a   : > { %v5529_v60 = vsel %vm1713_vm6, %v4581_v59, %v6221_v42  ;;  %v5530_v28 = vsel %vm1713_vm6, %v4649_v9, %v6222_v45 }
 0x40b   : > { %v6230_v30 = vpop.permute.xlu0 %6229  ;;  %v5547_v10 = vsel %vm1723_vm7, %v5531_v14, %v6236_v6  ;;  %v5548_v23 = vsel %vm1723_vm7, %v5532_v18, %v6237_v22 }
 0x40c   : > { %v6245_v5 = vpop.permute.xlu1 %6244  ;;  %v6232_v61 = vunpack.i.h.bf16 %v6230_v30  ;;  %v6231_v63 = vunpack.i.l.bf16 %v6230_v30 }
 0x40d   : > { %v6247_v27 = vunpack.i.h.bf16 %v6245_v5  ;;  %v6246_v4 = vunpack.i.l.bf16 %v6245_v5 }
 0x40e   : > { %v5545_v3 = vsel %vm1723_vm7, %v5529_v60, %v6231_v63  ;;  %v5546_v30 = vsel %vm1723_vm7, %v5530_v28, %v6232_v61 }
 0x40f   : > { %v5563_v35 = vsel %vm1730_vm8, %v5547_v10, %v6246_v4  ;;  %v5564_v16 = vsel %vm1730_vm8, %v5548_v23, %v6247_v27  ;;  %v6240_v29 = vpop.permute.xlu0 %6239 }
 0x410   : > { %v6242_v17 = vunpack.i.h.bf16 %v6240_v29  ;;  %v6241_v48 = vunpack.i.l.bf16 %v6240_v29  ;;  %v5576_v5 = vpack.c.bf16 %v5564_v16, %v5563_v35 }
 0x412   : > { %v5561_v6 = vsel %vm1730_vm8, %v5545_v3, %v6241_v48  ;;  %v5562_v22 = vsel %vm1730_vm8, %v5546_v30, %v6242_v17 }
 0x413   : > { %v5575_v14 = vpack.c.bf16 %v5562_v22, %v5561_v6 }
 0x415   : > { %v6255_v4 = vpop.permute.xlu1 %6254  ;;  %6161 = vmatprep.mubr.msk.bf16.mxu1 %vm1737_vm9, %v5575_v14 }
 0x416   : > { %6162 = vmatmul.mubr.msk.bf16.vlgmr.msra.gmra.mrb[0].mxu1 %vm1737_vm9, %v5576_v5  ;;  %v6257_v27 = vunpack.i.h.bf16 %v6255_v4  ;;  %v6256_v45 = vunpack.i.l.bf16 %v6255_v4 }
 0x418   : > { %v5536_v61 = vsel %vm1713_vm6, %v5057_v21, %v6257_v27  ;;  %v5535_v59 = vsel %vm1713_vm6, %v4989_v32, %v6256_v45 }
 0x41c   : > { %v6265_v42 = vpop.permute.xlu1 %6264  ;;  %v6250_v18 = vpop.permute.xlu0 %6249 }
 0x41d   : > { %v6267_v41 = vunpack.i.h.bf16 %v6265_v42  ;;  %v6266_v57 = vunpack.i.l.bf16 %v6265_v42  ;;  %v6252_v10 = vunpack.i.h.bf16 %v6250_v18  ;;  %v6251_v23 = vunpack.i.l.bf16 %v6250_v18 }
 0x41f   : > { %v5551_v35 = vsel %vm1723_vm7, %v5535_v59, %v6266_v57  ;;  %v5552_v16 = vsel %vm1723_vm7, %v5536_v61, %v6267_v41  ;;  %v5534_v20 = vsel %vm1713_vm6, %v4921_v8, %v6252_v10  ;;  %v5533_v40 = vsel %vm1713_vm6, %v4853_v13, %v6251_v23 }
 0x420   : > { %v6275_v63 = vpop.permute.xlu1 %6274  ;;  %v6260_v38 = vpop.permute.xlu0 %6259 }
 0x421   : > { %v6277_v50 = vunpack.i.h.bf16 %v6275_v63  ;;  %v6276_v9 = vunpack.i.l.bf16 %v6275_v63  ;;  %v6262_v29 = vunpack.i.h.bf16 %v6260_v38  ;;  %v6261_v60 = vunpack.i.l.bf16 %v6260_v38 }
 0x423   : > { %v5567_v11 = vsel %vm1730_vm8, %v5551_v35, %v6276_v9  ;;  %v5568_v46 = vsel %vm1730_vm8, %v5552_v16, %v6277_v50  ;;  %v5549_v48 = vsel %vm1723_vm7, %v5533_v40, %v6261_v60  ;;  %v5550_v3 = vsel %vm1723_vm7, %v5534_v20, %v6262_v29 }
 0x424   : > { %v5578_v21 = vpack.c.bf16 %v5568_v46, %v5567_v11  ;;  %v6270_v28 = vpop.permute.xlu0 %6269 }
 0x425   : > { %v6272_v32 = vunpack.i.h.bf16 %v6270_v28  ;;  %v6271_v17 = vunpack.i.l.bf16 %v6270_v28 }
 0x427   : > { %v5565_v30 = vsel %vm1730_vm8, %v5549_v48, %v6271_v17  ;;  %v5566_v5 = vsel %vm1730_vm8, %v5550_v3, %v6272_v32 }
 0x428   : > { %v5577_v6 = vpack.c.bf16 %v5566_v5, %v5565_v30 }
 0x42a   : > { %6165 = vmatprep.mubr.msk.bf16.mxu1 %vm1737_vm9, %v5577_v6 }
 0x42b   : > { %6166 = vmatmul.mubr.msk.bf16.gmra.mrb[4].mxu1 %vm1737_vm9, %v5578_v21  ;;  %v6285_v47 = vpop.permute.xlu1 %6284 }
 0x42c   : > { %v6287_v22 = vunpack.i.h.bf16 %v6285_v47  ;;  %v6286_v14 = vunpack.i.l.bf16 %v6285_v47 }
 0x42e   : > { %v5538_v38 = vsel %vm1713_vm6, %v5193_v19, %v6287_v22  ;;  %v5537_v50 = vsel %vm1713_vm6, %v5125_v34, %v6286_v14 }
 0x430   : > { %v6280_v54 = vpop.permute.xlu0 %6279 }
 0x431   : > { %v6282_v4 = vunpack.i.h.bf16 %v6280_v54  ;;  %v6281_v42 = vunpack.i.l.bf16 %v6280_v54 }
 0x433   : > { %v5525_v9 = vsel %vm1713_vm6, %v4309_v49, %v6281_v42  ;;  %v5526_v10 = vsel %vm1713_vm6, %v4377_v39, %v6282_v4 }
 0x438   : > { %v6295_v36 = vpop.permute.xlu1 %6294 }
 0x439   : > { %v6297_v27 = vunpack.i.h.bf16 %v6295_v36  ;;  %v6296_v45 = vunpack.i.l.bf16 %v6295_v36 }
 0x43b   : > { %v5540_v2 = vsel %vm1713_vm6, %v5329_v1, %v6297_v27  ;;  %v5539_v0 = vsel %vm1713_vm6, %v5261_v33, %v6296_v45 }
 0x43e   : > { %v6305_v13 = vpop.permute.xlu1 %6304 }
 0x43f   : > { %v6290_v62 = vpop.permute.xlu0 %6289  ;;  %v6307_v41 = vunpack.i.h.bf16 %v6305_v13  ;;  %v6306_v57 = vunpack.i.l.bf16 %v6305_v13 }
 0x440   : > { %v6292_v63 = vunpack.i.h.bf16 %v6290_v62  ;;  %v6291_v44 = vunpack.i.l.bf16 %v6290_v62 }
 0x441   : > { %v5553_v56 = vsel %vm1723_vm7, %v5537_v50, %v6306_v57  ;;  %v5554_v34 = vsel %vm1723_vm7, %v5538_v38, %v6307_v41 }
 0x442   : > { %v5528_v53 = vsel %vm1713_vm6, %v4513_v12, %v6292_v63  ;;  %v5527_v46 = vsel %vm1713_vm6, %v4445_v37, %v6291_v44 }
 0x443   : > { %v6300_v8 = vpop.permute.xlu0 %6299 }
 0x444   : > { %v6301_v61 = vunpack.i.l.bf16 %v6300_v8  ;;  %v6302_v55 = vunpack.i.h.bf16 %v6300_v8 }
 0x445   : > { %v6315_v18 = vpop.permute.xlu1 %6314 }
 0x446   : > { %v5541_v25 = vsel %vm1723_vm7, %v5525_v9, %v6301_v61  ;;  %v6317_v19 = vunpack.i.h.bf16 %v6315_v18  ;;  %v6316_v49 = vunpack.i.l.bf16 %v6315_v18  ;;  %v5542_v23 = vsel %vm1723_vm7, %v5526_v10, %v6302_v55 }
 0x447   : > { %v6310_v59 = vpop.permute.xlu0 %6309 }
 0x448   : > { %v6312_v35 = vunpack.i.h.bf16 %v6310_v59  ;;  %v6311_v16 = vunpack.i.l.bf16 %v6310_v59  ;;  %v5555_v21 = vsel %vm1723_vm7, %v5539_v0, %v6316_v49  ;;  %v5556_v28 = vsel %vm1723_vm7, %v5540_v2, %v6317_v19 }
 0x449   : > { %v6325_v15 = vpop.permute.xlu1 %6324 }
 0x44a   : > { %v6327_v24 = vunpack.i.h.bf16 %v6325_v15  ;;  %v6326_v26 = vunpack.i.l.bf16 %v6325_v15  ;;  %v5543_v30 = vsel %vm1723_vm7, %v5527_v46, %v6311_v16  ;;  %v5544_v31 = vsel %vm1723_vm7, %v5528_v53, %v6312_v35 }
 0x44b   : > { %v6320_v39 = vpop.permute.xlu0 %6319 }
 0x44c   : > { %v5569_v52 = vsel %vm1730_vm8, %v5553_v56, %v6326_v26  ;;  %v5570_v51 = vsel %vm1730_vm8, %v5554_v34, %v6327_v24  ;;  %v6322_v33 = vunpack.i.h.bf16 %v6320_v39  ;;  %v6321_v1 = vunpack.i.l.bf16 %v6320_v39 }
 0x44d   : > { %v5579_v29 = vpack.c.bf16 %v5570_v51, %v5569_v52  ;;  %v6335_v60 = vpop.permute.xlu1 %6334 }
 0x44e   : > { %v5557_v7 = vsel %vm1730_vm8, %v5541_v25, %v6321_v1  ;;  %v5558_v43 = vsel %vm1730_vm8, %v5542_v23, %v6322_v33  ;;  %v6337_v12 = vunpack.i.h.bf16 %v6335_v60  ;;  %v6336_v11 = vunpack.i.l.bf16 %v6335_v60 }
 0x44f   : > { %v5573_v20 = vpack.c.bf16 %v5558_v43, %v5557_v7  ;;  %v6330_v40 = vpop.permute.xlu0 %6329  ;;  %6169 = vmatprep.mubr.msk.bf16.mxu1 %vm1737_vm9, %v5579_v29 }
 0x450   : > { %v5571_v32 = vsel %vm1730_vm8, %v5555_v21, %v6336_v11  ;;  %v5572_v17 = vsel %vm1730_vm8, %v5556_v28, %v6337_v12  ;;  %v6332_v48 = vunpack.i.h.bf16 %v6330_v40  ;;  %v6331_v3 = vunpack.i.l.bf16 %v6330_v40 }
 0x451   : > { %v5580_v58 = vpack.c.bf16 %v5572_v17, %v5571_v32  ;;  %6157 = vmatprep.mubr.msk.bf16.mxu0 %vm1737_vm9, %v5573_v20 }
 0x452   : > { %v5559_v37 = vsel %vm1730_vm8, %v5543_v30, %v6331_v3  ;;  %v5560_v5 = vsel %vm1730_vm8, %v5544_v31, %v6332_v48 }
 0x453   : > { %v5574_v6 = vpack.c.bf16 %v5560_v5, %v5559_v37  ;;  %6170 = vmatmul.mubr.msk.bf16.gmra.mrb[8].mxu1 %vm1737_vm9, %v5580_v58 }
 0x455   : > { %6158 = vmatmul.mubr.msk.bf16.vlgmr.msra.gmra.mrb[8].mxu0 %vm1737_vm9, %v5574_v6 }
 0x45e   : > { %v5788_v54 = vpop.permute.xlu1 %5787 }
 0x460   : > { %v5784_v47 = vpop.permute.xlu0 %5783 }
 0x462   : > { %v5792_v62 = vpop.permute.xlu1 %5791 }
 0x464   : > { %v5796_v36 = vpop.permute.xlu0 %5795 }
 0x466   : > { %v5800_v41 = vpop.permute.xlu1 %5799 }
 0x468   : > { %v5804_v18 = vpop.permute.xlu0 %5803 }
 0x46a   : > { %v5808_v44 = vpop.permute.xlu1 %5807 }
 0x46c   : > { %v5812_v2 = vpop.permute.xlu0 %5811 }
 0x4e9   : > { %v6163_v13 = vpop.f32.mrb[0].mxu1 }
 0x4ea   : > { %v5820_v8 = vadd.f32 %v6163_v13, %v5796_v36  ;;  %v5687_v22 = vpop.f32.mrb[1].mxu1 }
 0x4eb   : > { %v5818_v14 = vadd.f32 %v5792_v62, %v5687_v22  ;;  %v6164_v4 = vpop.f32.mrb[2].mxu1 }
 0x4ec   : > { %5836 = vst.msk [vmem:[%s8850_s19 + $0x30] sm:$0xff] %vm1737_vm9, %v5820_v8  ;;  %v5821_v42 = vadd.f32 %v6164_v4, %v5796_v36  ;;  %v5690_v27 = vpop.f32.mrb[3].mxu1 }
 0x4ed   : > { %5834 = vst.msk [vmem:[%s8850_s19 + $0x20] sm:$0xff] %vm1737_vm9, %v5818_v14  ;;  %v5819_v45 = vadd.f32 %v5792_v62, %v5690_v27 }
 0x4ee   : > { %5837 = vst.msk [vmem:[%s8850_s19 + $0x38] sm:$0xff] %vm1737_vm9, %v5821_v42 }
 0x4ef   : > { %5835 = vst.msk [vmem:[%s8850_s19 + $0x28] sm:$0xff] %vm1737_vm9, %v5819_v45 }
 0x4fe   : > { %v6167_v57 = vpop.f32.mrb[4].mxu1 }
 0x4ff   : > { %v5824_v63 = vadd.f32 %v6167_v57, %v5804_v18  ;;  %v5703_v61 = vpop.f32.mrb[5].mxu1 }
 0x500   : > { %v5822_v59 = vadd.f32 %v5800_v41, %v5703_v61  ;;  %v6168_v38 = vpop.f32.mrb[6].mxu1 }
 0x501   : > { %5840 = vst.msk [vmem:[%s8850_s19 + $0x50] sm:$0xff] %vm1737_vm9, %v5824_v63  ;;  %v5825_v50 = vadd.f32 %v6168_v38, %v5804_v18  ;;  %v5706_v9 = vpop.f32.mrb[7].mxu1 }
 0x502   : > { %5838 = vst.msk [vmem:[%s8850_s19 + $0x40] sm:$0xff] %vm1737_vm9, %v5822_v59  ;;  %v5823_v10 = vadd.f32 %v5800_v41, %v5706_v9 }
 0x503   : > { %5841 = vst.msk [vmem:[%s8850_s19 + $0x58] sm:$0xff] %vm1737_vm9, %v5825_v50 }
 0x504   : > { %5839 = vst.msk [vmem:[%s8850_s19 + $0x48] sm:$0xff] %vm1737_vm9, %v5823_v10 }
 0x526   : > { %v6171_v0 = vpop.f32.mrb[8].mxu1 }
 0x527   : > { %v5828_v55 = vadd.f32 %v6171_v0, %v5812_v2  ;;  %v5719_v15 = vpop.f32.mrb[9].mxu1 }
 0x528   : > { %v6159_v56 = vpop.f32.mrb[8].mxu0  ;;  %v5826_v34 = vadd.f32 %v5808_v44, %v5719_v15  ;;  %v6172_v24 = vpop.f32.mrb[10].mxu1 }
 0x529   : > { %v5816_v26 = vadd.f32 %v6159_v56, %v5788_v54  ;;  %5844 = vst.msk [vmem:[%s8850_s19 + $0x70] sm:$0xff] %vm1737_vm9, %v5828_v55  ;;  %v5671_v53 = vpop.f32.mrb[9].mxu0  ;;  %v5829_v25 = vadd.f32 %v6172_v24, %v5812_v2  ;;  %v5722_v19 = vpop.f32.mrb[11].mxu1 }
 0x52a   : > { %v5814_v49 = vadd.f32 %v5784_v47, %v5671_v53  ;;  %5842 = vst.msk [vmem:[%s8850_s19 + $0x60] sm:$0xff] %vm1737_vm9, %v5826_v34  ;;  %v6160_v39 = vpop.f32.mrb[10].mxu0  ;;  %v5827_v52 = vadd.f32 %v5808_v44, %v5722_v19 }
 0x52b   : > { %5832 = vst.msk [vmem:[%s8850_s19 + $0x10] sm:$0xff] %vm1737_vm9, %v5816_v26  ;;  %v5817_v51 = vadd.f32 %v6160_v39, %v5788_v54  ;;  %5845 = vst.msk [vmem:[%s8850_s19 + $0x78] sm:$0xff] %vm1737_vm9, %v5829_v25  ;;  %v5674_v33 = vpop.f32.mrb[11].mxu0 }
 0x52c   : > { %5830 = vst.msk [vmem:[%s8850_s19] sm:$0xff] %vm1737_vm9, %v5814_v49  ;;  %v5815_v1 = vadd.f32 %v5784_v47, %v5674_v33  ;;  %5843 = vst.msk [vmem:[%s8850_s19 + $0x68] sm:$0xff] %vm1737_vm9, %v5827_v52 }
 0x52d   : > { %5833 = vst.msk [vmem:[%s8850_s19 + $0x18] sm:$0xff] %vm1737_vm9, %v5817_v51 }
 0x52e   : > { %5831 = vst.msk [vmem:[%s8850_s19 + $0x8] sm:$0xff] %vm1737_vm9, %v5815_v1 }
 0x52f PF: > { %s14_s17 = sadd.s32 1, %s6368_s17   ;;  %s9019_s15 = smov %s6364_s16 }
 0x530   : > { %p11_p5 = scmp.ge.s32.totalorder %s14_s17, 4   ;;  %s9020_s16 = smov %s9022_s18 }
 0x532   :  { %13 = sbr.rel (!%p11_p5) target bundleno = 2 (0x2), region = 67 }

</bundles_post_ra>
